<compile_context>
chip_gen: v7x
topology: tpu7x:2x2x1
jax: 0.10.0
libtpu: 0.0.40
codegen_flags: <defaults>
</compile_context>

<pallas_src>
import numpy as np
import jax
import jax.numpy as jnp
from jax import lax
from jax.experimental import pallas as pl
from jax.experimental.pallas import tpu as pltpu


_POOL_K, _POOL_S = 5, 3      # F.avg_pool2d(kernel_size=5, stride=3)
_C0, _C1 = 128, 768          # conv0 / conv1 output channels
_K1 = 5                      # conv1 kernel size


# ----------------------------------------------------------------------------
# Fused Pallas kernel: avg-pool -> conv0(1x1)+CReLU -> conv1(5x5)+CReLU
#                      -> global-avg (identity here) -> complex FC
# ----------------------------------------------------------------------------
def _aux_head_kernel(pool_ref, x_ref, w0_ref, b0_ref, w1_ref, b1_ref,
                     wf_ref, bfc_ref, out_r_ref, out_i_ref,
                     a_rr_scr, a_ii_scr, acc_scr):
    t = pl.program_id(1)
    n_steps = pl.num_programs(1)
    c0 = w0_ref.shape[1] // 2                  # 128
    taps_per_step = w1_ref.shape[0] // (2 * c0)

    # --- first tap-group of each batch element: pooling + 1x1 conv + CReLU ---
    @pl.when(t == 0)
    def _init():
        x = x_ref[0]                                              # (H*W, 2*Cin) f32
        pooled = jnp.dot(pool_ref[...], x,
                         preferred_element_type=jnp.float32)      # (25, 2*Cin)
        y0 = jnp.dot(pooled.astype(jnp.bfloat16), w0_ref[...],
                     preferred_element_type=jnp.float32) + b0_ref[...]
        x0 = jnp.maximum(y0, 0.0)                                 # CReLU, (25, 2*c0)
        x0r = x0[:, :c0]
        x0i = x0[:, c0:]
        a_rr_scr[...] = jnp.concatenate([x0r, -x0i], axis=-1)     # -> real accum rows
        a_ii_scr[...] = jnp.concatenate([x0i, x0r], axis=-1)      # -> imag accum rows
        acc_scr[...] = jnp.zeros_like(acc_scr)

    # --- every step: accumulate this group of 5x5-conv taps (streamed weight) -
    rows_rr = [a_rr_scr[pl.ds(t * taps_per_step + s, 1), :]
               for s in range(taps_per_step)]
    rows_ii = [a_ii_scr[pl.ds(t * taps_per_step + s, 1), :]
               for s in range(taps_per_step)]
    a2 = jnp.concatenate([jnp.concatenate(rows_rr, axis=-1),
                          jnp.concatenate(rows_ii, axis=-1)], axis=0)  # (2, g*2*c0)
    acc_scr[...] += jnp.dot(a2.astype(jnp.bfloat16), w1_ref[...],
                            preferred_element_type=jnp.float32)        # (2, 768)

    # --- last step: conv1 bias+CReLU, global avg (identity), complex FC -------
    @pl.when(t == n_steps - 1)
    def _finalize():
        y1 = jnp.maximum(acc_scr[...] + b1_ref[...], 0.0)         # (2, 768): [re; im]
        y1r = y1[0:1, :]
        y1i = y1[1:2, :]
        a_fc = jnp.concatenate(
            [jnp.concatenate([y1r, -y1i], axis=-1),
             jnp.concatenate([y1i, y1r], axis=-1)], axis=0)       # (2, 2*768)
        out = jnp.dot(a_fc.astype(jnp.bfloat16), wf_ref[...],
                      preferred_element_type=jnp.float32) + bfc_ref[...]   # (2, nc)
        out_r_ref[0] = out[0:1, :]
        out_i_ref[0] = out[1:2, :]


# ----------------------------------------------------------------------------
# Wrapper
# ----------------------------------------------------------------------------
def _pooling_matrix(H, W):
    """avg_pool2d(k=5, s=3) as a dense (Po*Po, H*W) matrix (built once, host side)."""
    Ph = (H - _POOL_K) // _POOL_S + 1
    Pw = (W - _POOL_K) // _POOL_S + 1
    p = np.zeros((Ph * Pw, H * W), np.float32)
    inv = 1.0 / (_POOL_K * _POOL_K)
    for oh in range(Ph):
        for ow in range(Pw):
            for dh in range(_POOL_K):
                for dw in range(_POOL_K):
                    p[oh * Pw + ow, (_POOL_S * oh + dh) * W + (_POOL_S * ow + dw)] = inv
    return p, Ph, Pw


@jax.jit
def complex_inception_aux(x_real, x_im, params):
    N, Cin, H, W = x_real.shape
    nc = params["fc"]["wr"].shape[1]

    pool_np, Ph, Pw = _pooling_matrix(H, W)
    # TODO(synk): only the canonical aux-head geometry is implemented (pooled map
    # == conv1 kernel, i.e. 5x5, so conv1 output is 1x1 and adaptive_avg_pool2d
    # is the identity); general spatial sizes would need a real conv1 im2col.
    assert Ph == _K1 and Pw == _K1, (Ph, Pw)
    taps = Ph * Pw                      # 25 conv1 taps
    group = _K1                         # 5 taps (one kernel row) per grid step
    n_tap_steps = taps // group

    pool = jnp.asarray(pool_np)                                    # (25, H*W)

    # Activations: NCHW -> NHWC -> (N, H*W, C); real|imag concatenated on channels.
    xr = jnp.transpose(x_real, (0, 2, 3, 1)).reshape(N, H * W, Cin)
    xi = jnp.transpose(x_im, (0, 2, 3, 1)).reshape(N, H * W, Cin)
    x_cat = jnp.concatenate([xr, xi], axis=-1)                     # (N, H*W, 2*Cin)

    c0p, c1p, fcp = params["conv0"], params["conv1"], params["fc"]

    # conv0 (1x1) as one real GEMM:  [pr|pi] @ [[Wr,Wi],[-Wi,Wr]]
    w0r = c0p["wr"].reshape(Cin, _C0)
    w0i = c0p["wi"].reshape(Cin, _C0)
    w0_big = jnp.concatenate(
        [jnp.concatenate([w0r, w0i], axis=1),
         jnp.concatenate([-w0i, w0r], axis=1)], axis=0).astype(jnp.bfloat16)  # (2Cin, 256)
    b0_big = jnp.concatenate([c0p["br"], c0p["bi"]]).reshape(1, 2 * _C0)

    # conv1 (5x5, output 1x1): per-tap stacked [Wr_s; Wi_s] rows (no duplication).
    w1r = c1p["wr"].reshape(taps, _C0, _C1)
    w1i = c1p["wi"].reshape(taps, _C0, _C1)
    w1_flat = jnp.stack([w1r, w1i], axis=1).reshape(taps * 2 * _C0, _C1)
    w1_flat = w1_flat.astype(jnp.bfloat16)                         # (6400, 768)
    b1_2 = jnp.stack([c1p["br"], c1p["bi"]], axis=0)               # (2, 768)

    # fc (ComplexLinear): same 2-row trick.
    wf_cat = jnp.concatenate([fcp["wr"], fcp["wi"]], axis=0).astype(jnp.bfloat16)
    bf_2 = jnp.stack([fcp["br"], fcp["bi"]], axis=0)               # (2, nc)

    out_r, out_i = pl.pallas_call(
        _aux_head_kernel,
        grid=(N, n_tap_steps),
        in_specs=[
            pl.BlockSpec((taps, H * W), lambda b, t: (0, 0)),            # pooling matrix
            pl.BlockSpec((1, H * W, 2 * Cin), lambda b, t: (b, 0, 0)),   # x (real|imag)
            pl.BlockSpec((2 * Cin, 2 * _C0), lambda b, t: (0, 0)),       # conv0 W (big)
            pl.BlockSpec((1, 2 * _C0), lambda b, t: (0, 0)),             # conv0 bias
            pl.BlockSpec((group * 2 * _C0, _C1), lambda b, t: (t, 0)),   # conv1 W (streamed)
            pl.BlockSpec((2, _C1), lambda b, t: (0, 0)),                 # conv1 bias
            pl.BlockSpec((2 * _C1, nc), lambda b, t: (0, 0)),            # fc W
            pl.BlockSpec((2, nc), lambda b, t: (0, 0)),                  # fc bias
        ],
        out_specs=[
            pl.BlockSpec((1, 1, nc), lambda b, t: (b, 0, 0)),
            pl.BlockSpec((1, 1, nc), lambda b, t: (b, 0, 0)),
        ],
        out_shape=[jax.ShapeDtypeStruct((N, 1, nc), jnp.float32)] * 2,
        scratch_shapes=[
            pltpu.VMEM((taps, 2 * _C0), jnp.float32),   # [x0r | -x0i] rows
            pltpu.VMEM((taps, 2 * _C0), jnp.float32),   # [x0i |  x0r] rows
            pltpu.VMEM((2, _C1), jnp.float32),          # conv1 accumulator
        ],
        compiler_params=pltpu.CompilerParams(
            dimension_semantics=("parallel", "arbitrary")),
    )(pool, x_cat, w0_big, b0_big, w1_flat, b1_2, wf_cat, bf_2)

    return out_r.reshape(N, nc), out_i.reshape(N, nc)


# ----------------------------------------------------------------------------
# Parameters (deterministic synthetic init, shapes per the PyTorch module)
# ----------------------------------------------------------------------------
def init_params(in_channels, num_classes, key):
    def conv_p(k, kh, kw, cin, cout, stddev=None):
        k1, k2, k3, k4 = jax.random.split(k, 4)
        scale = stddev if stddev is not None else 1.0 / np.sqrt(cin * kh * kw)
        return dict(
            wr=jax.random.normal(k1, (kh, kw, cin, cout), jnp.float32) * scale,
            wi=jax.random.normal(k2, (kh, kw, cin, cout), jnp.float32) * scale,
            br=jax.random.normal(k3, (cout,), jnp.float32) * 0.02,
            bi=jax.random.normal(k4, (cout,), jnp.float32) * 0.02)

    k0, k1, k2 = jax.random.split(key, 3)
    kf1, kf2, kf3, kf4 = jax.random.split(k2, 4)
    return {
        "conv0": conv_p(k0, 1, 1, in_channels, _C0),
        "conv1": conv_p(k1, _K1, _K1, _C0, _C1, stddev=0.01),   # module: stddev=0.01
        "fc": dict(
            wr=jax.random.normal(kf1, (_C1, num_classes), jnp.float32) * 0.01,
            wi=jax.random.normal(kf2, (_C1, num_classes), jnp.float32) * 0.01,
            br=jax.random.normal(kf3, (num_classes,), jnp.float32) * 0.02,
            bi=jax.random.normal(kf4, (num_classes,), jnp.float32) * 0.02),
    }


# ----------------------------------------------------------------------------
# Pure-JAX reference (for correctness check only)
# ----------------------------------------------------------------------------
def _crelu_conv2d_ref(xr, xi, p):
    def conv(x, w):
        return lax.conv_general_dilated(
            x, w, window_strides=(1, 1), padding="VALID",
            dimension_numbers=("NHWC", "HWIO", "NHWC"))
    rr = conv(xr, p["wr"]) - conv(xi, p["wi"]) + p["br"]
    ii = conv(xi, p["wr"]) + conv(xr, p["wi"]) + p["bi"]
    return jnp.maximum(rr, 0.0), jnp.maximum(ii, 0.0)


def complex_inception_aux_ref(x_real, x_im, params):
    xr = jnp.transpose(x_real, (0, 2, 3, 1))
    xi = jnp.transpose(x_im, (0, 2, 3, 1))

    def avg_pool(x):
        s = lax.reduce_window(x, 0.0, lax.add,
                              (1, _POOL_K, _POOL_K, 1),
                              (1, _POOL_S, _POOL_S, 1), "VALID")
        return s / float(_POOL_K * _POOL_K)

    xr, xi = avg_pool(xr), avg_pool(xi)
    xr, xi = _crelu_conv2d_ref(xr, xi, params["conv0"])
    xr, xi = _crelu_conv2d_ref(xr, xi, params["conv1"])
    yr = jnp.mean(xr, axis=(1, 2))          # adaptive_avg_pool2d((1,1)) + flatten
    yi = jnp.mean(xi, axis=(1, 2))
    fc = params["fc"]
    out_r = yr @ fc["wr"] - yi @ fc["wi"] + fc["br"]
    out_i = yi @ fc["wr"] + yr @ fc["wi"] + fc["bi"]
    return out_r, out_i


# ----------------------------------------------------------------------------
# Main
# ----------------------------------------------------------------------------
if __name__ == "__main__":
    key = jax.random.PRNGKey(0)
    kx, kp = jax.random.split(key)

    # 17x17 is the canonical InceptionAux input geometry (5x5-pool -> 5x5 conv).
    N, C, H, W = 2, 4, 17, 17
    num_classes = 10
    x_real = jax.random.normal(jax.random.fold_in(kx, 0), (N, C, H, W), jnp.float32)
    x_im = jax.random.normal(jax.random.fold_in(kx, 1), (N, C, H, W), jnp.float32)
    params = init_params(C, num_classes, kp)

    out_r, out_i = complex_inception_aux(x_real, x_im, params)
    jax.block_until_ready((out_r, out_i))
    assert out_r.shape == (N, num_classes), out_r.shape
    assert out_i.shape == (N, num_classes), out_i.shape

    # Numerical check against pure-JAX f32 reference (tol covers bf16 MXU path).
    ref_r, ref_i = complex_inception_aux_ref(x_real, x_im, params)
    for got, ref in ((out_r, ref_r), (out_i, ref_i)):
        got = np.asarray(got)
        ref = np.asarray(ref)
        err = np.max(np.abs(got - ref))
        scale = np.max(np.abs(ref)) + 1e-6
        assert err / scale < 5e-2, (err, scale)

    print("KERNEL_OK")
</pallas_src>

<mosaic_0001>
module attributes {stable_mosaic.version = 11 : i64} {
  func.func @_aux_head_kernel(%arg0: i32, %arg1: i32, %arg2: memref<25x289xf32, #tpu.memory_space<vmem>>, %arg3: memref<1x289x8xf32, #tpu.memory_space<vmem>>, %arg4: memref<8x256xbf16, #tpu.memory_space<vmem>>, %arg5: memref<1x256xf32, #tpu.memory_space<vmem>>, %arg6: memref<1280x768xbf16, #tpu.memory_space<vmem>>, %arg7: memref<2x768xf32, #tpu.memory_space<vmem>>, %arg8: memref<1536x10xbf16, #tpu.memory_space<vmem>>, %arg9: memref<2x10xf32, #tpu.memory_space<vmem>>, %arg10: memref<1x1x10xf32, #tpu.memory_space<vmem>>, %arg11: memref<1x1x10xf32, #tpu.memory_space<vmem>>, %arg12: memref<25x256xf32, #tpu.memory_space<vmem>>, %arg13: memref<25x256xf32, #tpu.memory_space<vmem>>, %arg14: memref<2x768xf32, #tpu.memory_space<vmem>>) attributes {dimension_semantics = [#tpu.dimension_semantics<parallel>, #tpu.dimension_semantics<arbitrary>], iteration_bounds = array<i64: 2, 5>, scalar_prefetch = 0 : i64, scratch_operands = 3 : i64, tpu.core_type = #tpu.core_type<tc>, window_params = [{pipeline_mode = #tpu.pipeline_mode<synchronous>, transform_indices = @transform_0, window_bounds = array<i64: 25, 289>}, {transform_indices = @transform_1, window_bounds = array<i64: 1, 289, 8>}, {pipeline_mode = #tpu.pipeline_mode<synchronous>, transform_indices = @transform_2, window_bounds = array<i64: 8, 256>}, {pipeline_mode = #tpu.pipeline_mode<synchronous>, transform_indices = @transform_3, window_bounds = array<i64: 1, 256>}, {transform_indices = @transform_4, window_bounds = array<i64: 1280, 768>}, {pipeline_mode = #tpu.pipeline_mode<synchronous>, transform_indices = @transform_5, window_bounds = array<i64: 2, 768>}, {pipeline_mode = #tpu.pipeline_mode<synchronous>, transform_indices = @transform_6, window_bounds = array<i64: 1536, 10>}, {pipeline_mode = #tpu.pipeline_mode<synchronous>, transform_indices = @transform_7, window_bounds = array<i64: 2, 10>}, {transform_indices = @transform_8, window_bounds = array<i64: 1, 1, 10>}, {transform_indices = @transform_9, window_bounds = array<i64: 1, 1, 10>}]} {
    %c0_i32 = arith.constant 0 : i32
    %0 = arith.cmpi eq, %arg1, %c0_i32 : i32
    %1 = arith.extui %0 : i1 to i32
    %c0_i32_0 = arith.constant 0 : i32
    %2 = arith.cmpi ne, %1, %c0_i32_0 : i32
    scf.if %2 {
      %c0_33 = arith.constant 0 : index
      %c0_34 = arith.constant 0 : index
      %c0_35 = arith.constant 0 : index
      %55 = vector.load %arg3[%c0_33, %c0_34, %c0_35] : memref<1x289x8xf32, #tpu.memory_space<vmem>>, vector<1x289x8xf32>
      %56 = vector.shape_cast %55 : vector<1x289x8xf32> to vector<289x8xf32>
      %c0_36 = arith.constant 0 : index
      %c0_37 = arith.constant 0 : index
      %57 = vector.load %arg2[%c0_36, %c0_37] : memref<25x289xf32, #tpu.memory_space<vmem>>, vector<25x289xf32>
      %cst_38 = arith.constant dense<0.000000e+00> : vector<25x8xf32>
      %58 = tpu.matmul %57, %56, %cst_38 {dimension_numbers = #tpu.dot_dimension_numbers<[1], [0], [0], [1], [0, 0, 1, 1], [], []>} : vector<25x289xf32>, vector<289x8xf32>, vector<25x8xf32> -> vector<25x8xf32>
      %59 = arith.truncf %58 : vector<25x8xf32> to vector<25x8xbf16>
      %c0_39 = arith.constant 0 : index
      %c0_40 = arith.constant 0 : index
      %60 = vector.load %arg4[%c0_39, %c0_40] : memref<8x256xbf16, #tpu.memory_space<vmem>>, vector<8x256xbf16>
      %cst_41 = arith.constant dense<0.000000e+00> : vector<25x256xf32>
      %61 = tpu.matmul %59, %60, %cst_41 {dimension_numbers = #tpu.dot_dimension_numbers<[1], [0], [0], [1], [0, 0, 1, 1], [], []>} : vector<25x8xbf16>, vector<8x256xbf16>, vector<25x256xf32> -> vector<25x256xf32>
      %c0_42 = arith.constant 0 : index
      %c0_43 = arith.constant 0 : index
      %62 = vector.load %arg5[%c0_42, %c0_43] : memref<1x256xf32, #tpu.memory_space<vmem>>, vector<1x256xf32>
      %63 = vector.broadcast %62 : vector<1x256xf32> to vector<25x256xf32>
      %64 = arith.addf %61, %63 : vector<25x256xf32>
      %cst_44 = arith.constant 0.000000e+00 : f32
      %65 = vector.broadcast %cst_44 : f32 to vector<25x256xf32>
      %66 = arith.maximumf %64, %65 : vector<25x256xf32>
      %67 = vector.extract_strided_slice %66 {offsets = [0, 0], sizes = [25, 128], strides = [1, 1]} : vector<25x256xf32> to vector<25x128xf32>
      %68 = vector.extract_strided_slice %66 {offsets = [0, 128], sizes = [25, 128], strides = [1, 1]} : vector<25x256xf32> to vector<25x128xf32>
      %cst_45 = arith.constant 0.000000e+00 : f32
      %69 = vector.broadcast %cst_45 : f32 to vector<25x128xf32>
      %70 = arith.subf %69, %68 : vector<25x128xf32>
      %71 = tpu.concatenate %67, %70 in 1 : vector<25x128xf32>, vector<25x128xf32> -> vector<25x256xf32>
      %c0_46 = arith.constant 0 : index
      %c0_47 = arith.constant 0 : index
      %72 = vector.load %arg12[%c0_46, %c0_47] : memref<25x256xf32, #tpu.memory_space<vmem>>, vector<25x256xf32>
      tpu.vector_store %arg12[%c0_46, %c0_47], %71 {strides = array<i32>} : memref<25x256xf32, #tpu.memory_space<vmem>>, vector<25x256xf32>,
      %73 = tpu.concatenate %68, %67 in 1 : vector<25x128xf32>, vector<25x128xf32> -> vector<25x256xf32>
      %c0_48 = arith.constant 0 : index
      %c0_49 = arith.constant 0 : index
      %74 = vector.load %arg13[%c0_48, %c0_49] : memref<25x256xf32, #tpu.memory_space<vmem>>, vector<25x256xf32>
      tpu.vector_store %arg13[%c0_48, %c0_49], %73 {strides = array<i32>} : memref<25x256xf32, #tpu.memory_space<vmem>>, vector<25x256xf32>,
      %cst_50 = arith.constant 0.000000e+00 : f32
      %75 = vector.broadcast %cst_50 : f32 to vector<2x768xf32>
      %c0_51 = arith.constant 0 : index
      %c0_52 = arith.constant 0 : index
      %76 = vector.load %arg14[%c0_51, %c0_52] : memref<2x768xf32, #tpu.memory_space<vmem>>, vector<2x768xf32>
      tpu.vector_store %arg14[%c0_51, %c0_52], %75 {strides = array<i32>} : memref<2x768xf32, #tpu.memory_space<vmem>>, vector<2x768xf32>,
    } else {
    }
    %c5_i32 = arith.constant 5 : i32
    %3 = arith.muli %arg1, %c5_i32 : i32
    %c0_i32_1 = arith.constant 0 : i32
    %4 = arith.addi %3, %c0_i32_1 : i32
    %5 = arith.index_cast %4 : i32 to index
    %c0 = arith.constant 0 : index
    %6 = vector.load %arg12[%5, %c0] : memref<25x256xf32, #tpu.memory_space<vmem>>, vector<1x256xf32>
    %c5_i32_2 = arith.constant 5 : i32
    %7 = arith.muli %arg1, %c5_i32_2 : i32
    %c1_i32 = arith.constant 1 : i32
    %8 = arith.addi %7, %c1_i32 : i32
    %9 = arith.index_cast %8 : i32 to index
    %c0_3 = arith.constant 0 : index
    %10 = vector.load %arg12[%9, %c0_3] : memref<25x256xf32, #tpu.memory_space<vmem>>, vector<1x256xf32>
    %c5_i32_4 = arith.constant 5 : i32
    %11 = arith.muli %arg1, %c5_i32_4 : i32
    %c2_i32 = arith.constant 2 : i32
    %12 = arith.addi %11, %c2_i32 : i32
    %13 = arith.index_cast %12 : i32 to index
    %c0_5 = arith.constant 0 : index
    %14 = vector.load %arg12[%13, %c0_5] : memref<25x256xf32, #tpu.memory_space<vmem>>, vector<1x256xf32>
    %c5_i32_6 = arith.constant 5 : i32
    %15 = arith.muli %arg1, %c5_i32_6 : i32
    %c3_i32 = arith.constant 3 : i32
    %16 = arith.addi %15, %c3_i32 : i32
    %17 = arith.index_cast %16 : i32 to index
    %c0_7 = arith.constant 0 : index
    %18 = vector.load %arg12[%17, %c0_7] : memref<25x256xf32, #tpu.memory_space<vmem>>, vector<1x256xf32>
    %c5_i32_8 = arith.constant 5 : i32
    %19 = arith.muli %arg1, %c5_i32_8 : i32
    %c4_i32 = arith.constant 4 : i32
    %20 = arith.addi %19, %c4_i32 : i32
    %21 = arith.index_cast %20 : i32 to index
    %c0_9 = arith.constant 0 : index
    %22 = vector.load %arg12[%21, %c0_9] : memref<25x256xf32, #tpu.memory_space<vmem>>, vector<1x256xf32>
    %c5_i32_10 = arith.constant 5 : i32
    %23 = arith.muli %arg1, %c5_i32_10 : i32
    %c0_i32_11 = arith.constant 0 : i32
    %24 = arith.addi %23, %c0_i32_11 : i32
    %25 = arith.index_cast %24 : i32 to index
    %c0_12 = arith.constant 0 : index
    %26 = vector.load %arg13[%25, %c0_12] : memref<25x256xf32, #tpu.memory_space<vmem>>, vector<1x256xf32>
    %c5_i32_13 = arith.constant 5 : i32
    %27 = arith.muli %arg1, %c5_i32_13 : i32
    %c1_i32_14 = arith.constant 1 : i32
    %28 = arith.addi %27, %c1_i32_14 : i32
    %29 = arith.index_cast %28 : i32 to index
    %c0_15 = arith.constant 0 : index
    %30 = vector.load %arg13[%29, %c0_15] : memref<25x256xf32, #tpu.memory_space<vmem>>, vector<1x256xf32>
    %c5_i32_16 = arith.constant 5 : i32
    %31 = arith.muli %arg1, %c5_i32_16 : i32
    %c2_i32_17 = arith.constant 2 : i32
    %32 = arith.addi %31, %c2_i32_17 : i32
    %33 = arith.index_cast %32 : i32 to index
    %c0_18 = arith.constant 0 : index
    %34 = vector.load %arg13[%33, %c0_18] : memref<25x256xf32, #tpu.memory_space<vmem>>, vector<1x256xf32>
    %c5_i32_19 = arith.constant 5 : i32
    %35 = arith.muli %arg1, %c5_i32_19 : i32
    %c3_i32_20 = arith.constant 3 : i32
    %36 = arith.addi %35, %c3_i32_20 : i32
    %37 = arith.index_cast %36 : i32 to index
    %c0_21 = arith.constant 0 : index
    %38 = vector.load %arg13[%37, %c0_21] : memref<25x256xf32, #tpu.memory_space<vmem>>, vector<1x256xf32>
    %c5_i32_22 = arith.constant 5 : i32
    %39 = arith.muli %arg1, %c5_i32_22 : i32
    %c4_i32_23 = arith.constant 4 : i32
    %40 = arith.addi %39, %c4_i32_23 : i32
    %41 = arith.index_cast %40 : i32 to index
    %c0_24 = arith.constant 0 : index
    %42 = vector.load %arg13[%41, %c0_24] : memref<25x256xf32, #tpu.memory_space<vmem>>, vector<1x256xf32>
    %43 = tpu.concatenate %6, %10, %14, %18, %22 in 1 : vector<1x256xf32>, vector<1x256xf32>, vector<1x256xf32>, vector<1x256xf32>, vector<1x256xf32> -> vector<1x1280xf32>
    %44 = tpu.concatenate %26, %30, %34, %38, %42 in 1 : vector<1x256xf32>, vector<1x256xf32>, vector<1x256xf32>, vector<1x256xf32>, vector<1x256xf32> -> vector<1x1280xf32>
    %45 = tpu.concatenate %43, %44 in 0 : vector<1x1280xf32>, vector<1x1280xf32> -> vector<2x1280xf32>
    %c0_25 = arith.constant 0 : index
    %c0_26 = arith.constant 0 : index
    %46 = vector.load %arg14[%c0_25, %c0_26] : memref<2x768xf32, #tpu.memory_space<vmem>>, vector<2x768xf32>
    %47 = arith.truncf %45 : vector<2x1280xf32> to vector<2x1280xbf16>
    %c0_27 = arith.constant 0 : index
    %c0_28 = arith.constant 0 : index
    %48 = vector.load %arg6[%c0_27, %c0_28] : memref<1280x768xbf16, #tpu.memory_space<vmem>>, vector<1280x768xbf16>
    %cst = arith.constant dense<0.000000e+00> : vector<2x768xf32>
    %49 = tpu.matmul %47, %48, %cst {dimension_numbers = #tpu.dot_dimension_numbers<[1], [0], [0], [1], [0, 0, 1, 1], [], []>} : vector<2x1280xbf16>, vector<1280x768xbf16>, vector<2x768xf32> -> vector<2x768xf32>
    %50 = arith.addf %46, %49 : vector<2x768xf32>
    %c0_29 = arith.constant 0 : index
    %c0_30 = arith.constant 0 : index
    %51 = vector.load %arg14[%c0_29, %c0_30] : memref<2x768xf32, #tpu.memory_space<vmem>>, vector<2x768xf32>
    tpu.vector_store %arg14[%c0_29, %c0_30], %50 {strides = array<i32>} : memref<2x768xf32, #tpu.memory_space<vmem>>, vector<2x768xf32>,
    %c4_i32_31 = arith.constant 4 : i32
    %52 = arith.cmpi eq, %arg1, %c4_i32_31 : i32
    %53 = arith.extui %52 : i1 to i32
    %c0_i32_32 = arith.constant 0 : i32
    %54 = arith.cmpi ne, %53, %c0_i32_32 : i32
    scf.if %54 {
      %c0_33 = arith.constant 0 : index
      %c0_34 = arith.constant 0 : index
      %55 = vector.load %arg14[%c0_33, %c0_34] : memref<2x768xf32, #tpu.memory_space<vmem>>, vector<2x768xf32>
      %c0_35 = arith.constant 0 : index
      %c0_36 = arith.constant 0 : index
      %56 = vector.load %arg7[%c0_35, %c0_36] : memref<2x768xf32, #tpu.memory_space<vmem>>, vector<2x768xf32>
      %57 = arith.addf %55, %56 : vector<2x768xf32>
      %cst_37 = arith.constant 0.000000e+00 : f32
      %58 = vector.broadcast %cst_37 : f32 to vector<2x768xf32>
      %59 = arith.maximumf %57, %58 : vector<2x768xf32>
      %60 = vector.extract_strided_slice %59 {offsets = [0, 0], sizes = [1, 768], strides = [1, 1]} : vector<2x768xf32> to vector<1x768xf32>
      %61 = vector.extract_strided_slice %59 {offsets = [1, 0], sizes = [1, 768], strides = [1, 1]} : vector<2x768xf32> to vector<1x768xf32>
      %cst_38 = arith.constant 0.000000e+00 : f32
      %62 = vector.broadcast %cst_38 : f32 to vector<1x768xf32>
      %63 = arith.subf %62, %61 : vector<1x768xf32>
      %64 = tpu.concatenate %60, %63 in 1 : vector<1x768xf32>, vector<1x768xf32> -> vector<1x1536xf32>
      %65 = tpu.concatenate %61, %60 in 1 : vector<1x768xf32>, vector<1x768xf32> -> vector<1x1536xf32>
      %66 = tpu.concatenate %64, %65 in 0 : vector<1x1536xf32>, vector<1x1536xf32> -> vector<2x1536xf32>
      %67 = arith.truncf %66 : vector<2x1536xf32> to vector<2x1536xbf16>
      %c0_39 = arith.constant 0 : index
      %c0_40 = arith.constant 0 : index
      %68 = vector.load %arg8[%c0_39, %c0_40] : memref<1536x10xbf16, #tpu.memory_space<vmem>>, vector<1536x10xbf16>
      %cst_41 = arith.constant dense<0.000000e+00> : vector<2x10xf32>
      %69 = tpu.matmul %67, %68, %cst_41 {dimension_numbers = #tpu.dot_dimension_numbers<[1], [0], [0], [1], [0, 0, 1, 1], [], []>} : vector<2x1536xbf16>, vector<1536x10xbf16>, vector<2x10xf32> -> vector<2x10xf32>
      %c0_42 = arith.constant 0 : index
      %c0_43 = arith.constant 0 : index
      %70 = vector.load %arg9[%c0_42, %c0_43] : memref<2x10xf32, #tpu.memory_space<vmem>>, vector<2x10xf32>
      %71 = arith.addf %69, %70 : vector<2x10xf32>
      %72 = vector.extract_strided_slice %71 {offsets = [0, 0], sizes = [1, 10], strides = [1, 1]} : vector<2x10xf32> to vector<1x10xf32>
      %c0_44 = arith.constant 0 : index
      %c0_45 = arith.constant 0 : index
      %c0_46 = arith.constant 0 : index
      %73 = vector.load %arg10[%c0_44, %c0_45, %c0_46] : memref<1x1x10xf32, #tpu.memory_space<vmem>>, vector<1x1x10xf32>
      %74 = vector.shape_cast %73 : vector<1x1x10xf32> to vector<1x10xf32>
      %75 = vector.shape_cast %72 : vector<1x10xf32> to vector<1x1x10xf32>
      tpu.vector_store %arg10[%c0_44, %c0_45, %c0_46], %75 {strides = array<i32>} : memref<1x1x10xf32, #tpu.memory_space<vmem>>, vector<1x1x10xf32>,
      %76 = vector.extract_strided_slice %71 {offsets = [1, 0], sizes = [1, 10], strides = [1, 1]} : vector<2x10xf32> to vector<1x10xf32>
      %c0_47 = arith.constant 0 : index
      %c0_48 = arith.constant 0 : index
      %c0_49 = arith.constant 0 : index
      %77 = vector.load %arg11[%c0_47, %c0_48, %c0_49] : memref<1x1x10xf32, #tpu.memory_space<vmem>>, vector<1x1x10xf32>
      %78 = vector.shape_cast %77 : vector<1x1x10xf32> to vector<1x10xf32>
      %79 = vector.shape_cast %76 : vector<1x10xf32> to vector<1x1x10xf32>
      tpu.vector_store %arg11[%c0_47, %c0_48, %c0_49], %79 {strides = array<i32>} : memref<1x1x10xf32, #tpu.memory_space<vmem>>, vector<1x1x10xf32>,
    } else {
    }
    return
  }
  func.func @transform_0(%arg0: i32, %arg1: i32) -> (i32, i32) {
    %c0_i32 = arith.constant 0 : i32
    %c0_i32_0 = arith.constant 0 : i32
    %c0_i32_1 = arith.constant 0 : i32
    return %c0_i32, %c0_i32_0 : i32, i32
  }
  func.func @transform_1(%arg0: i32, %arg1: i32) -> (i32, i32, i32) {
    %c0_i32 = arith.constant 0 : i32
    %c0_i32_0 = arith.constant 0 : i32
    %c0_i32_1 = arith.constant 0 : i32
    return %arg0, %c0_i32, %c0_i32_0 : i32, i32, i32
  }
  func.func @transform_2(%arg0: i32, %arg1: i32) -> (i32, i32) {
    %c0_i32 = arith.constant 0 : i32
    %c0_i32_0 = arith.constant 0 : i32
    %c0_i32_1 = arith.constant 0 : i32
    return %c0_i32, %c0_i32_0 : i32, i32
  }
  func.func @transform_3(%arg0: i32, %arg1: i32) -> (i32, i32) {
    %c0_i32 = arith.constant 0 : i32
    %c0_i32_0 = arith.constant 0 : i32
    %c0_i32_1 = arith.constant 0 : i32
    return %c0_i32, %c0_i32_0 : i32, i32
  }
  func.func @transform_4(%arg0: i32, %arg1: i32) -> (i32, i32) {
    %c0_i32 = arith.constant 0 : i32
    %c0_i32_0 = arith.constant 0 : i32
    return %arg1, %c0_i32 : i32, i32
  }
  func.func @transform_5(%arg0: i32, %arg1: i32) -> (i32, i32) {
    %c0_i32 = arith.constant 0 : i32
    %c0_i32_0 = arith.constant 0 : i32
    %c0_i32_1 = arith.constant 0 : i32
    return %c0_i32, %c0_i32_0 : i32, i32
  }
  func.func @transform_6(%arg0: i32, %arg1: i32) -> (i32, i32) {
    %c0_i32 = arith.constant 0 : i32
    %c0_i32_0 = arith.constant 0 : i32
    %c0_i32_1 = arith.constant 0 : i32
    return %c0_i32, %c0_i32_0 : i32, i32
  }
  func.func @transform_7(%arg0: i32, %arg1: i32) -> (i32, i32) {
    %c0_i32 = arith.constant 0 : i32
    %c0_i32_0 = arith.constant 0 : i32
    %c0_i32_1 = arith.constant 0 : i32
    return %c0_i32, %c0_i32_0 : i32, i32
  }
  func.func @transform_8(%arg0: i32, %arg1: i32) -> (i32, i32, i32) {
    %c0_i32 = arith.constant 0 : i32
    %c0_i32_0 = arith.constant 0 : i32
    %c0_i32_1 = arith.constant 0 : i32
    return %arg0, %c0_i32, %c0_i32_0 : i32, i32, i32
  }
  func.func @transform_9(%arg0: i32, %arg1: i32) -> (i32, i32, i32) {
    %c0_i32 = arith.constant 0 : i32
    %c0_i32_0 = arith.constant 0 : i32
    %c0_i32_1 = arith.constant 0 : i32
    return %arg0, %c0_i32, %c0_i32_0 : i32, i32, i32
  }
}

</mosaic_0001>

<bundles_post_ra>
// kernel: complex_inception_aux.1
= control target key start
LH: loop header
LB: loop body
LE: loop exit
PB: predicated region body
PF: predicated region fallthrough
CT: control target
= control target key end

     0   :  { %s9014_s0 = inlined_call_operand.vmem [shape: f32[25,289], index: 0, kind: input, shape index: {}]   ;;  %s9015_s1 = inlined_call_operand.vmem [shape: f32[2,289,8], index: 1, kind: input, shape index: {}]   ;;  %s9016_s2 = inlined_call_operand.vmem [shape: bf16[8,256], index: 2, kind: input, shape index: {}]   ;;  %s9017_s3 = inlined_call_operand.vmem [shape: f32[1,256], index: 3, kind: input, shape index: {}]   ;;  %s9018_s4 = inlined_call_operand.vmem [shape: bf16[6400,768], index: 4, kind: input, shape index: {}]   ;;  %s9019_s5 = inlined_call_operand.vmem [shape: f32[2,768], index: 5, kind: input, shape index: {}]   ;;  %s9020_s6 = inlined_call_operand.vmem [shape: bf16[1536,10], index: 6, kind: input, shape index: {}]   ;;  %s9021_s7 = inlined_call_operand.vmem [shape: f32[2,10], index: 7, kind: input, shape index: {}]   ;;  %s9022_s8 = inlined_call_operand.hbm [shape: f32[2,1,10], index: 8, kind: output, shape index: {0}]   ;;  %s9023_s9 = inlined_call_operand.hbm [shape: f32[2,1,10], index: 9, kind: output, shape index: {1}]  }
   0x1   :  { %9027 = sst [smem:[#allocation16_spill]] %s9014_s0 }
   0x2   :  { %15 = vsyncpa [#allocation6], 0 }
   0x3   :  { %17 = vsyncpa [#allocation6 + $0x1], 0 }
   0x4   :  { %18 = vsyncpa [#allocation8], 0 }
   0x5   :  { %20 = vsyncpa [#allocation8 + $0x1], 0  ;;  %s7764_s30 = smov 0   ;;  %s7766_s10 = smov 0  }
   0x6   :  { %s7768_s11 = smov 0   ;;  %s7770_s12 = smov 0  }
   0x7   :  { %s7772_s13 = smov 0   ;;  %s7774_s14 = smov 0  }
   0x8   :  { %s7776_s15 = smov 0   ;;  %s7778_s16 = smov 0  }
   0x9 LB: > { %9028 = sst [smem:[#allocation11_spill]] %s7699_s14  ;;  %s5781_s17 = sadd.s32 4294967295, %s7707_s16   ;;  %s7707_s16 = sphi %s7778_s16, %s26_s16   ;;  %s7703_s15 = sphi %s7776_s15, %s9042_s15   ;;  %s7699_s14 = sphi %s7774_s14, %s9041_s14   ;;  %s7695_s13 = sphi %s7772_s13, %s9040_s13   ;;  %s7691_s12 = sphi %s7770_s12, %s9039_s12   ;;  %s7687_s11 = sphi %s7768_s11, %s9045_s11   ;;  %s7683_s10 = sphi %s7766_s10, %s9044_s10   ;;  %s7679_s30 = sphi %s7764_s30, %s9043_s30  }
   0xa   : > { %9029 = sst [smem:[#allocation12_spill]] %s7703_s15  ;;  %s5782_s18 = sadd.s32 4294967294, %s7707_s16  }
   0xb   : > { %s35_s19 = sadd.s32 1, %s7699_s14  ;;  %s38_s20 = sadd.s32 1, %s7703_s15 }
   0xc   : > { %p36_p0 = scmp.ge.s32.totalorder %s35_s19, 5  ;;  %p233_p1 = scmp.ne.s32.totalorder %s7687_s11, %s7683_s10 }
   0xd   : > { %p234_p2 = scmp.eq.s32.totalorder %s5781_s17, 9  ;;  %p239_p4 = scmp.ne.s32.totalorder %s7683_s10, %s7679_s30 }
   0xe   : > { %s9047_s19 = smov (%p36_p0, %s35_s19), 0  ;;  %s9049_s20 = smov (!%p36_p0, %s38_s20), %s7703_s15 }
   0xf   : > { %9030 = sst [smem:[#allocation13_spill]] %s9047_s19  ;;  %p7813_p3 = por %p234_p2, %p233_p1 }
  0x10   : > { %p40_p5 = scmp.ge.s32.totalorder %s9049_s20, 2  ;;  %p240_p6 = scmp.eq.s32.totalorder %s5782_s18, 9 }
  0x11   : > { %p5785_p7 = scmp.ge.s32.totalorder %s7707_s16, 1  ;;  %p320_p8 = scmp.lt.s32.totalorder %s7707_s16, 11 }
  0x12   : > { %s9051_s20 = smov (%p40_p5, %s9049_s20), 0  ;;  %p7823_p9 = por %p240_p6, %p239_p4 }
  0x13   : > { %9032 = sst [smem:[#allocation14_spill]] %s9051_s20  ;;  %p321_p10 = pnand %p5785_p7, %p320_p8 }
  0x14   : > { %s220_s23 = ssub.s32 %s7703_s15, %s9051_s20  ;;  %s223_s24 = sadd.s32 1, %s7687_s11 }
  0x15   : > { %p221_p11 = scmp.eq.s32.totalorder %s220_s23, 0  ;;  %324 = sbr.rel (%p321_p10) target bundleno = 1588 (0x634), region = 52 }
  0x16   : > { %s7834_s26 = sand.u32 (!%p321_p10), 1, %s7683_s10   ;;  %p365_p12 = scmp.lt.s32.totalorder (!%p321_p10), %s7695_s13, 1 }
  0x17   : > { %s7831_s25 = scalar_select %p221_p11, %s7687_s11, %s223_s24  }
  0x18   : > { %s370_s28 = smul.u32 (!%p321_p10), 160, %s7691_s12  ;;  %s358_s14 = scalar_lea.vmem (!%p321_p10), [#allocation5], %s7834_s26 }
  0x19   : > { %9034 = sst [smem:[#allocation15_spill]] %s7831_s25  ;;  %p5788_p0 = scmp.ne.s32.totalorder (!%p321_p10), %s7691_s12, 0 }
  0x1a   : > { %p371_p13 = scmp.lt.s32.totalorder (!%p321_p10), %s370_s28, 799 }
  0x1c   : > { %s366_s27 = scalar_select %p365_p12, %s7695_s13, 1 }
  0x1d   : > { %s9053_s28 = smov (!%p371_p13, %s370_s28), 799  ;;  %381 = sbr.rel (%p5788_p0) target bundleno = 521 (0x209), region = 56 }
  0x1e   : > { %s6682_s29 = smul.u32 296, %s366_s27  ;;  %s9035_s0 = sld [smem:[#allocation16_spill]] (!%p5788_p0)  ;;  %vm431_vm0 = vcmask (!%p5788_p0), 269312   ;;  %vm444_vm1 = vcmask (!%p5788_p0), 1040384   ;;  %vm645_vm2 = vcmask (!%p5788_p0), 1043456   ;;  %vm638_vm3 = vcmask (!%p5788_p0), 64512  }
  0x1f   : > { %s6683_s24 = smul.u32 24, %s9053_s28 }
  0x20   : > { %s7842_s23 = scalar_lea.vmem %s9015_s1, %s6682_s29 }
  0x21   : > { %s7847_s15 = scalar_lea.vmem %s9018_s4, %s6683_s24  ;;  %v398_v0 = vld [vmem:[%s7842_s23 + $0x80] sm:$0xff] (!%p5788_p0)  ;;  %v399_v1 = vld [vmem:[%s7842_s23 + $0x88] sm:$0xff] (!%p5788_p0)  ;;  %v400_v5 = vld [vmem:[%s7842_s23 + $0x90] sm:$0xff] (!%p5788_p0) }
  0x22   : > { %v382_v2 = vld [vmem:[%s7842_s23] sm:$0xff] (!%p5788_p0)  ;;  %v6596_v3 = vpack.c.bf16 (!%p5788_p0), %v399_v1, %v398_v0  ;;  %v383_v4 = vld [vmem:[%s7842_s23 + $0x8] sm:$0xff] (!%p5788_p0)  ;;  %v401_v6 = vld [vmem:[%s7842_s23 + $0x98] sm:$0xff] (!%p5788_p0) }
  0x23   : > { %v6598_v7 = vpack.c.bf16 (!%p5788_p0), %v383_v4, %v382_v2  ;;  %v6600_v8 = vpack.c.bf16 (!%p5788_p0), %v401_v6, %v400_v5  ;;  %v384_v9 = vld [vmem:[%s7842_s23 + $0x10] sm:$0xff] (!%p5788_p0)  ;;  %v385_v10 = vld [vmem:[%s7842_s23 + $0x18] sm:$0xff] (!%p5788_p0)  ;;  %v402_v11 = vld [vmem:[%s7842_s23 + $0xa0] sm:$0xff] (!%p5788_p0) }
  0x24   : > { %6597 = vmatprep.subr.bf16.mxu0 %v6596_v3  ;;  %v403_v12 = vld [vmem:[%s7842_s23 + $0xa8] sm:$0xff]  ;;  %v6602_v13 = vpack.c.bf16 %v385_v10, %v384_v9  ;;  %v386_v15 = vld [vmem:[%s7842_s23 + $0x20] sm:$0xff]  ;;  %v404_v17 = vld [vmem:[%s7842_s23 + $0xb0] sm:$0xff] }
  0x25   : > { %6599 = vmatpush3.bf16.msra.mxu0 %v6598_v7  ;;  %v6604_v14 = vpack.c.bf16 %v403_v12, %v402_v11  ;;  %v387_v16 = vld [vmem:[%s7842_s23 + $0x28] sm:$0xff]  ;;  %v405_v18 = vld [vmem:[%s7842_s23 + $0xb8] sm:$0xff]  ;;  %v414_v20 = vld [vmem:[%s7842_s23 + $0x100] sm:$0xff]  ;;  %v7709_v7 = vmov 0  }
  0x26   : > { %6601 = vmatprep.subr.bf16.mxu0 %v6600_v8  ;;  %v6606_v19 = vpack.c.bf16 %v387_v16, %v386_v15  ;;  %v6608_v21 = vpack.c.bf16 %v405_v18, %v404_v17  ;;  %v388_v22 = vld [vmem:[%s7842_s23 + $0x30] sm:$0xff]  ;;  %v389_v23 = vld [vmem:[%s7842_s23 + $0x38] sm:$0xff]  ;;  %v415_v24 = vld [vmem:[%s7842_s23 + $0x108] sm:$0xff] }
  0x27   : > { %v406_v25 = vld [vmem:[%s7842_s23 + $0xc0] sm:$0xff]  ;;  %v407_v26 = vld [vmem:[%s7842_s23 + $0xc8] sm:$0xff]  ;;  %v6628_v27 = vpack.c.bf16 %v415_v24, %v414_v20  ;;  %v416_v28 = vld [vmem:[%s7842_s23 + $0x110] sm:$0xff]  ;;  %v6610_v30 = vpack.c.bf16 %v389_v23, %v388_v22 }
  0x28   : > { %v417_v29 = vld [vmem:[%s7842_s23 + $0x118] sm:$0xff]  ;;  %v420_v32 = vld [vmem:[%s9035_s0 + $0x8] sm:$0xff]  ;;  %v6612_v33 = vpack.c.bf16 %v407_v26, %v406_v25  ;;  %v390_v34 = vld [vmem:[%s7842_s23 + $0x40] sm:$0xff] }
  0x29   : > { %6603 = vmatpush3.bf16.msra.mxu0 %v6602_v13  ;;  %6629 = vmatprep.subr.bf16.mxu1 %v6628_v27  ;;  %v6632_v31 = vpack.c.bf16 %v417_v29, %v416_v28  ;;  %v391_v35 = vld [vmem:[%s7842_s23 + $0x48] sm:$0xff]  ;;  %v421_v36 = vld [vmem:[%s9035_s0 + $0x10] sm:$0xff]  ;;  %v409_v38 = vld [vmem:[%s7842_s23 + $0xd8] sm:$0xff] }
  0x2a   : > { %6605 = vmatprep.subr.bf16.mxu0 %v6604_v14  ;;  %6631 = vmatpush3.bf16.msra.mxu1 %v6628_v27  ;;  %v408_v37 = vld [vmem:[%s7842_s23 + $0xd0] sm:$0xff]  ;;  %v418_v39 = vld [vmem:[%s7842_s23 + $0x120] sm:$0x1]  ;;  %v6614_v40 = vpack.c.bf16 %v391_v35, %v390_v34  ;;  %v393_v43 = vld [vmem:[%s7842_s23 + $0x58] sm:$0xff] }
  0x2b   : > { %6633 = vmatprep.subr.bf16.mxu1 %v6632_v31  ;;  %512 = vmatprep.mubr.f32.mxu0 %v420_v32  ;;  %v6616_v41 = vpack.c.bf16 %v409_v38, %v408_v37  ;;  %v392_v42 = vld [vmem:[%s7842_s23 + $0x50] sm:$0xff]  ;;  %v410_v44 = vld [vmem:[%s7842_s23 + $0xe0] sm:$0xff]  ;;  %v411_v45 = vld [vmem:[%s7842_s23 + $0xe8] sm:$0xff] }
  0x2c   : > { %6590 = vmatprep.mubr.msk.f32.mxu1 %vm431_vm0, %v421_v36  ;;  %v424_v46 = vld [vmem:[%s9035_s0 + $0x28] sm:$0xff]  ;;  %v6618_v47 = vpack.c.bf16 %v393_v43, %v392_v42  ;;  %v427_v48 = vld [vmem:[%s9035_s0 + $0x40] sm:$0xff]  ;;  %v6620_v49 = vpack.c.bf16 %v411_v45, %v410_v44  ;;  %v412_v52 = vld [vmem:[%s7842_s23 + $0xf0] sm:$0xff] }
  0x2d   : > { %6607 = vmatpush3.bf16.msra.mxu0 %v6606_v19  ;;  %v394_v50 = vld [vmem:[%s7842_s23 + $0x60] sm:$0xff]  ;;  %v395_v51 = vld [vmem:[%s7842_s23 + $0x68] sm:$0xff]  ;;  %v413_v53 = vld [vmem:[%s7842_s23 + $0xf8] sm:$0xff] }
  0x2e   : > { %6609 = vmatprep.subr.bf16.mxu0 %v6608_v21  ;;  %6635 = vmatpush3.bf16.msra.mxu1 %v6632_v31  ;;  %v430_v54 = vld [vmem:[%s9035_s0 + $0x58] sm:$0x1]  ;;  %v6622_v55 = vpack.c.bf16 %v395_v51, %v394_v50  ;;  %v6624_v56 = vpack.c.bf16 %v413_v53, %v412_v52  ;;  %v396_v57 = vld [vmem:[%s7842_s23 + $0x70] sm:$0xff]  ;;  %v419_v60 = vld [vmem:[%s9035_s0] sm:$0xff]  ;;  %v623_v31 = vlaneseq }
  0x2f   : > { %6588 = vmatprep.subr.msk.mxu1 %vm444_vm1, %v418_v39  ;;  %v397_v58 = vld [vmem:[%s7842_s23 + $0x78] sm:$0xff]  ;;  %v423_v61 = vld [vmem:[%s9035_s0 + $0x20] sm:$0xff]  ;;  %v425_v0 = vld [vmem:[%s9035_s0 + $0x30] sm:$0xff] }
  0x30   : > { %v6626_v59 = vpack.c.bf16 %v397_v58, %v396_v57  ;;  %v422_v62 = vld [vmem:[%s9035_s0 + $0x18] sm:$0xff]  ;;  %v429_v1 = vld [vmem:[%s9035_s0 + $0x50] sm:$0x1]  ;;  %v428_v2 = vld [vmem:[%s9035_s0 + $0x48] sm:$0x1]  ;;  %v624_v32 = vshrl.u32 %v623_v31, 7 }
  0x31   : > { %6611 = vmatpush3.bf16.msra.mxu0 %v6610_v30  ;;  %v426_v63 = vld [vmem:[%s9035_s0 + $0x38] sm:$0xff]  ;;  %v620_v3 = vld [vmem:[%s9016_s2] sm:$0xff]  ;;  %v7710_v30 = vmov 0.0  }
  0x32   : > { %6613 = vmatprep.subr.bf16.mxu0 %v6612_v33  ;;  %6589 = vmatpush3.msk.msra.mxu1 %vm444_vm1, %v418_v39  ;;  %v5795_v4 = vcombine.high %v620_v3, %v620_v3  ;;  %v5794_v5 = vcombine.low %v620_v3, %v620_v3  ;;  %733 = vst [vmem:[#allocation4] sm:$0xff] %v7710_v30  ;;  %734 = vst [vmem:[#allocation4 + $0x8] sm:$0xf] %v7710_v30  ;;  %v625_v33 = vsub.s32 0, %v624_v32  ;;  %v621_v34 = vld [vmem:[%s9017_s3] sm:$0x3] }
  0x33   : > { %6591 = vmatmul.mubr.msk.f32.vlgmr.msra.gmra.mrb[0].mxu1 %vm431_vm0, %v424_v46  ;;  %v629_v35 = vsub.s32 1, %v624_v32 }
  0x34   : > { %6593 = vmatprep.mubr.msk.f32.mxu1 %vm431_vm0, %v427_v48  ;;  %5796 = vmatprep.subr.msk.bf16.mxu1 %vm645_vm2, %v5795_v4  ;;  %v647_v6 = vsel %vm645_vm2, %v5794_v5, 0  ;;  %v626_v36 = vrot.slane %v621_v34, %v625_v33 }
  0x35   : > { %6615 = vmatpush3.bf16.msra.mxu0 %v6614_v40  ;;  %653 = vmatpush1.bf16.msra.mxu1 %v647_v6  ;;  %v630_v37 = vrot.slane %v621_v34, %v629_v35 }
  0x36   : > { %6617 = vmatprep.subr.bf16.mxu0 %v6616_v41 }
  0x37   : > { %6594 = vmatmul.mubr.msk.f32.gmra.mrb[2].mxu1 %vm431_vm0, %v430_v54 }
  0x38   : > { %684 = vmatprep.mubr.bf16.mxu1 %v7709_v7 }
  0x39   : > { %6619 = vmatpush3.bf16.msra.mxu0 %v6618_v47 }
  0x3a   : > { %6621 = vmatprep.subr.bf16.mxu0 %v6620_v49 }
  0x3d   : > { %6623 = vmatpush3.bf16.msra.mxu0 %v6622_v55 }
  0x3e   : > { %6625 = vmatprep.subr.bf16.mxu0 %v6624_v56 }
  0x41   : > { %6627 = vmatpush3.bf16.msra.mxu0 %v6626_v59 }
  0x44   : > { %513 = vmatmul.mubr.f32.vlgmr.msra.gmra.mrb[0].mxu0 %v419_v60 }
  0x45   : > { %517 = vmatprep.mubr.f32.mxu0 %v423_v61 }
  0x48   : > { %518 = vmatmul.mubr.f32.gmra.mrb[2].mxu0 %v422_v62 }
  0x49   : > { %522 = vmatprep.mubr.f32.mxu0 %v426_v63 }
  0x4c   : > { %523 = vmatmul.mubr.f32.gmra.mrb[4].mxu0 %v425_v0 }
  0x4d   : > { %527 = vmatprep.mubr.f32.mxu0 %v429_v1 }
  0x50   : > { %528 = vmatmul.mubr.f32.gmra.mrb[6].mxu0 %v428_v2 }
 0x106   : > { %v6592_v8 = vpop.f32.mrb[0].mxu1 }
 0x107   : > { %v599_v9 = vpop.f32.mrb[1].mxu1 }
 0x10a   : > { %v6595_v10 = vpop.f32.mrb[2].mxu1 }
 0x10b   : > { %v609_v11 = vpop.f32.mrb[3].mxu1 }
 0x117   : > { %v6427_v12 = vpop.f32.mrb[0].mxu0 }
 0x118   : > { %v6428_v13 = vpop.f32.mrb[1].mxu0 }
 0x119   : > { %v6429_v14 = vadd.f32 %v6428_v13, %v6427_v12 }
 0x11b   : > { %v600_v15 = vadd.f32 %v6429_v14, %v599_v9  ;;  %v6430_v16 = vpop.f32.mrb[2].mxu0 }
 0x11c   : > { %v6431_v17 = vpop.f32.mrb[3].mxu0 }
 0x11d   : > { %v6432_v18 = vadd.f32 %v6431_v17, %v6430_v16 }
 0x11f   : > { %v605_v19 = vadd.f32 %v6592_v8, %v6432_v18  ;;  %v6433_v20 = vpop.f32.mrb[4].mxu0 }
 0x120   : > { %v6434_v21 = vpop.f32.mrb[5].mxu0 }
 0x121   : > { %v618_v22 = vpack.c.bf16 %v605_v19, %v600_v15  ;;  %v6435_v23 = vadd.f32 %v6434_v21, %v6433_v20 }
 0x123   : > { %v610_v24 = vadd.f32 %v6435_v23, %v609_v11  ;;  %v6436_v25 = vpop.f32.mrb[6].mxu0  ;;  %5797 = vmatmul.mubr.msk.bf16.vlgmr.msra.gmra.mrb[4].mxu1 %vm638_vm3, %v618_v22 }
 0x124   : > { %v6437_v26 = vpop.f32.mrb[7].mxu0  ;;  %694 = vmatprep.mubr.bf16.mxu1 %v7709_v7 }
 0x125   : > { %v6438_v27 = vadd.f32 %v6437_v26, %v6436_v25 }
 0x127   : > { %v615_v28 = vadd.f32 %v6595_v10, %v6438_v27 }
 0x129   : > { %v619_v29 = vpack.c.bf16 %v615_v28, %v610_v24 }
 0x12b   : > { %5798 = vmatmul.mubr.msk.bf16.gmra.mrb[8].mxu1 %vm638_vm3, %v619_v29 }
 0x1f6   : > { %v686_v38 = vpop.f32.mrb[4].mxu1 }
 0x1f7   : > { %v687_v39 = vadd.f32 %v686_v38, %v626_v36  ;;  %v688_v40 = vpop.f32.mrb[5].mxu1 }
 0x1f8   : > { %v689_v41 = vadd.f32 %v688_v40, %v630_v37  ;;  %v690_v42 = vpop.f32.mrb[6].mxu1 }
 0x1f9   : > { %v705_v43 = vmax.f32 %v687_v39, 0.0  ;;  %v691_v44 = vadd.f32 %v690_v42, %v626_v36  ;;  %v692_v45 = vpop.f32.mrb[7].mxu1 }
 0x1fa   : > { %v706_v46 = vmax.f32 %v689_v41, 0.0  ;;  %v693_v47 = vadd.f32 %v692_v45, %v630_v37 }
 0x1fb   : > { %717 = vst [vmem:[#allocation2] sm:$0xff] %v705_v43  ;;  %726 = vst [vmem:[#allocation3 + $0x8] sm:$0xff] %v705_v43  ;;  %v707_v48 = vmax.f32 %v691_v44, 0.0 }
 0x1fc   : > { %v713_v49 = vsub.f32 0.0, %v706_v46  ;;  %725 = vst [vmem:[#allocation3] sm:$0xff] %v706_v46  ;;  %v708_v50 = vmax.f32 %v693_v47, 0.0 }
 0x1fd   : > { %719 = vst [vmem:[#allocation2 + $0x10] sm:$0xff] %v707_v48  ;;  %728 = vst [vmem:[#allocation3 + $0x18] sm:$0xff] %v707_v48 }
 0x1fe   : > { %718 = vst [vmem:[#allocation2 + $0x8] sm:$0xff] %v713_v49  ;;  %v714_v51 = vsub.f32 0.0, %v708_v50  ;;  %727 = vst [vmem:[#allocation3 + $0x10] sm:$0xff] %v708_v50  ;;  %v696_v52 = vpop.f32.mrb[8].mxu1 }
 0x1ff   : > { %v697_v53 = vadd.f32 %v696_v52, %v626_v36  ;;  %v698_v54 = vpop.f32.mrb[9].mxu1 }
 0x200   : > { %720 = vst [vmem:[#allocation2 + $0x18] sm:$0xff] %v714_v51  ;;  %v699_v55 = vadd.f32 %v698_v54, %v630_v37  ;;  %v700_v56 = vpop.f32.mrb[10].mxu1 }
 0x201   : > { %v709_v57 = vmax.f32 %v697_v53, 0.0  ;;  %v701_v58 = vadd.f32 %v700_v56, %v626_v36  ;;  %v702_v59 = vpop.f32.mrb[11].mxu1 }
 0x202   : > { %v710_v60 = vmax.f32 %v699_v55, 0.0  ;;  %v703_v61 = vadd.f32 %v702_v59, %v630_v37 }
 0x203   : > { %721 = vst [vmem:[#allocation2 + $0x20] sm:$0xff] %v709_v57  ;;  %730 = vst [vmem:[#allocation3 + $0x28] sm:$0xff] %v709_v57  ;;  %v711_v62 = vmax.f32 %v701_v58, 0.0 }
 0x204   : > { %v715_v63 = vsub.f32 0.0, %v710_v60  ;;  %729 = vst [vmem:[#allocation3 + $0x20] sm:$0xff] %v710_v60  ;;  %v712_v0 = vmax.f32 %v703_v61, 0.0 }
 0x205   : > { %723 = vst [vmem:[#allocation2 + $0x30] sm:$0x1] %v711_v62  ;;  %732 = vst [vmem:[#allocation3 + $0x38] sm:$0x1] %v711_v62 }
 0x206   : > { %722 = vst [vmem:[#allocation2 + $0x28] sm:$0xff] %v715_v63  ;;  %v716_v1 = vsub.f32 0.0, %v712_v0  ;;  %731 = vst [vmem:[#allocation3 + $0x30] sm:$0x1] %v712_v0 }
 0x208   : > { %724 = vst [vmem:[#allocation2 + $0x38] sm:$0x1] %v716_v1 }
 0x209 PF: > { %v6765_v2 = vld [vmem:[%s7847_s15 + $0x4] ss:$24 sps:$4 sm:$0xff]   ;;  %v6769_v4 = vld [vmem:[%s7847_s15] ss:$24 sps:$4 sm:$0xff]   ;;  %v6771_v6 = vld [vmem:[%s7847_s15 + $0x34] ss:$24 sps:$4 sm:$0xff]   ;;  %v796_v38 = vlaneseq }
 0x20a   : > { %v6767_v3 = vld [vmem:[%s7847_s15 + $0x604] ss:$24 sps:$4 sm:$0xff]   ;;  %3818 = vmatprep.subr.bf16.mxu1 %v6765_v2  ;;  %v6770_v5 = vld [vmem:[%s7847_s15 + $0x600] ss:$24 sps:$4 sm:$0xff]   ;;  %v6773_v7 = vld [vmem:[%s7847_s15 + $0x634] ss:$24 sps:$4 sm:$0xff]  }
 0x20b   : > { %3900 = vmatprep.subr.bf16.mxu0 %v6767_v3  ;;  %3819 = vmatpush1.bf16.msra.mxu1 %v6769_v4  ;;  %v6775_v8 = vld [vmem:[%s7847_s15 + $0x30] ss:$24 sps:$4 sm:$0xff]   ;;  %v6777_v10 = vld [vmem:[%s7847_s15 + $0x64] ss:$24 sps:$4 sm:$0xff]   ;;  %v6781_v12 = vld [vmem:[%s7847_s15 + $0x60] ss:$24 sps:$4 sm:$0xff]  }
 0x20c   : > { %3901 = vmatpush1.bf16.msra.mxu0 %v6770_v5  ;;  %3820 = vmatprep.subr.bf16.mxu1 %v6771_v6  ;;  %v6776_v9 = vld [vmem:[%s7847_s15 + $0x630] ss:$24 sps:$4 sm:$0xff]   ;;  %v6779_v11 = vld [vmem:[%s7847_s15 + $0x664] ss:$24 sps:$4 sm:$0xff]   ;;  %v6782_v13 = vld [vmem:[%s7847_s15 + $0x660] ss:$24 sps:$4 sm:$0xff]  }
 0x20d   : > { %3902 = vmatprep.subr.bf16.mxu0 %v6773_v7  ;;  %v6783_v14 = vld [vmem:[%s7847_s15 + $0x94] ss:$24 sps:$4 sm:$0xff]   ;;  %v6787_v16 = vld [vmem:[%s7847_s15 + $0x90] ss:$24 sps:$4 sm:$0xff]   ;;  %v6789_v18 = vld [vmem:[%s7847_s15 + $0xc4] ss:$24 sps:$4 sm:$0xff]  }
 0x20e   : > { %v6785_v15 = vld [vmem:[%s7847_s15 + $0x694] ss:$24 sps:$4 sm:$0xff]   ;;  %v6788_v17 = vld [vmem:[%s7847_s15 + $0x690] ss:$24 sps:$4 sm:$0xff]   ;;  %v6791_v19 = vld [vmem:[%s7847_s15 + $0x6c4] ss:$24 sps:$4 sm:$0xff]  }
 0x20f   : > { %3821 = vmatpush1.bf16.msra.mxu1 %v6775_v8  ;;  %v6793_v20 = vld [vmem:[%s7847_s15 + $0xc0] ss:$24 sps:$4 sm:$0xff]   ;;  %v6795_v22 = vld [vmem:[%s7847_s15 + $0xf4] ss:$24 sps:$4 sm:$0xff]   ;;  %v6799_v24 = vld [vmem:[%s7847_s15 + $0xf0] ss:$24 sps:$4 sm:$0xff]  }
 0x210   : > { %3903 = vmatpush1.bf16.msra.mxu0 %v6776_v9  ;;  %3822 = vmatprep.subr.bf16.mxu1 %v6777_v10  ;;  %v6794_v21 = vld [vmem:[%s7847_s15 + $0x6c0] ss:$24 sps:$4 sm:$0xff]   ;;  %v6797_v23 = vld [vmem:[%s7847_s15 + $0x6f4] ss:$24 sps:$4 sm:$0xff]   ;;  %v6800_v25 = vld [vmem:[%s7847_s15 + $0x6f0] ss:$24 sps:$4 sm:$0xff]  }
 0x211   : > { %3904 = vmatprep.subr.bf16.mxu0 %v6779_v11  ;;  %v6801_v26 = vld [vmem:[%s7847_s15 + $0x124] ss:$24 sps:$4 sm:$0xff]   ;;  %v6805_v28 = vld [vmem:[%s7847_s15 + $0x120] ss:$24 sps:$4 sm:$0xff]   ;;  %v6807_v30 = vld [vmem:[%s7847_s15 + $0x154] ss:$24 sps:$4 sm:$0xff]  }
 0x212   : > { %v6803_v27 = vld [vmem:[%s7847_s15 + $0x724] ss:$24 sps:$4 sm:$0xff]   ;;  %v6806_v29 = vld [vmem:[%s7847_s15 + $0x720] ss:$24 sps:$4 sm:$0xff]   ;;  %v6809_v31 = vld [vmem:[%s7847_s15 + $0x754] ss:$24 sps:$4 sm:$0xff]  }
 0x213   : > { %3823 = vmatpush1.bf16.msra.mxu1 %v6781_v12  ;;  %s7968_s19 = smul.u32 5, %s7691_s12  ;;  %v6811_v32 = vld [vmem:[%s7847_s15 + $0x150] ss:$24 sps:$4 sm:$0xff]   ;;  %v6813_v34 = vld [vmem:[%s7847_s15 + $0x184] ss:$24 sps:$4 sm:$0xff]   ;;  %v7982_v42 = vshrl.u32 %v796_v38, 7 }
 0x214   : > { %3905 = vmatpush1.bf16.msra.mxu0 %v6782_v13  ;;  %3824 = vmatprep.subr.bf16.mxu1 %v6783_v14  ;;  %v6812_v33 = vld [vmem:[%s7847_s15 + $0x750] ss:$24 sps:$4 sm:$0xff]   ;;  %v6815_v35 = vld [vmem:[%s7847_s15 + $0x784] ss:$24 sps:$4 sm:$0xff]   ;;  %v6817_v36 = vld [vmem:[%s7847_s15 + $0x180] ss:$24 sps:$4 sm:$0xff]  }
 0x215   : > { %3906 = vmatprep.subr.bf16.mxu0 %v6785_v15  ;;  %s755_s20 = sadd.s32 2, %s7968_s19  ;;  %v6818_v37 = vld [vmem:[%s7847_s15 + $0x780] ss:$24 sps:$4 sm:$0xff]   ;;  %s736_s27 = sshra.s32 %s7968_s19, 3  ;;  %v6819_v39 = vld [vmem:[%s7847_s15 + $0x1b4] ss:$24 sps:$4 sm:$0xff]  }
 0x216   : > { %v6821_v40 = vld [vmem:[%s7847_s15 + $0x7b4] ss:$24 sps:$4 sm:$0xff]   ;;  %s756_s28 = sshra.s32 %s755_s20, 3  ;;  %s739_s29 = sand.u32 7, %s7968_s19  ;;  %v6823_v41 = vld [vmem:[%s7847_s15 + $0x1b0] ss:$24 sps:$4 sm:$0xff]  }
 0x217   : > { %3825 = vmatpush1.bf16.msra.mxu1 %v6787_v16  ;;  %s6390_s17 = sshll.u32 %s736_s27, 4  ;;  %s759_s18 = sand.u32 7, %s755_s20  ;;  %v6824_v43 = vld [vmem:[%s7847_s15 + $0x7b0] ss:$24 sps:$4 sm:$0xff]   ;;  %v6825_v44 = vld [vmem:[%s7847_s15 + $0x1e4] ss:$24 sps:$4 sm:$0xff]  }
 0x218   : > { %3907 = vmatpush1.bf16.msra.mxu0 %v6788_v17  ;;  %3826 = vmatprep.subr.bf16.mxu1 %v6789_v18  ;;  %s6392_s24 = sshll.u32 %s756_s28, 4  ;;  %v6827_v45 = vld [vmem:[%s7847_s15 + $0x7e4] ss:$24 sps:$4 sm:$0xff]   ;;  %s742_s25 = sadd.s32 %s6390_s17, %s739_s29  ;;  %v6829_v46 = vld [vmem:[%s7847_s15 + $0x1e0] ss:$24 sps:$4 sm:$0xff]   ;;  %v7991_v49 = vsub.s32 1, %v7982_v42 }
 0x219   : > { %3908 = vmatprep.subr.bf16.mxu0 %v6791_v19  ;;  %v6830_v47 = vld [vmem:[%s7847_s15 + $0x7e0] ss:$24 sps:$4 sm:$0xff]   ;;  %s762_s23 = sadd.s32 %s6392_s24, %s759_s18  ;;  %v6831_v48 = vld [vmem:[%s7847_s15 + $0x214] ss:$24 sps:$4 sm:$0xff]   ;;  %v6835_v51 = vld [vmem:[%s7847_s15 + $0x210] ss:$24 sps:$4 sm:$0xff]  }
 0x21a   : > { %v6833_v50 = vld [vmem:[%s7847_s15 + $0x814] ss:$24 sps:$4 sm:$0xff]   ;;  %v6836_v52 = vld [vmem:[%s7847_s15 + $0x810] ss:$24 sps:$4 sm:$0xff]   ;;  %s743_s20 = scalar_lea.vmem [#allocation2], %s742_s25  ;;  %s785_s27 = scalar_lea.vmem [#allocation3], %s742_s25 }
 0x21b   : > { %3827 = vmatpush1.bf16.msra.mxu1 %v6793_v20  ;;  %v7996_v53 = vld [vmem:[%s743_s20] ss:$8 sm:$0x3]  ;;  %v6837_v55 = vld [vmem:[%s7847_s15 + $0x244] ss:$24 sps:$4 sm:$0xff]   ;;  %vm915_vm4 = vcmask 1040384  }
 0x21c   : > { %3909 = vmatpush1.bf16.msra.mxu0 %v6794_v21  ;;  %3828 = vmatprep.subr.bf16.mxu1 %v6795_v22  ;;  %v786_v54 = vld [vmem:[%s785_s27] ss:$8 sm:$0x3]  ;;  %v6839_v56 = vld [vmem:[%s7847_s15 + $0x844] ss:$24 sps:$4 sm:$0xff]   ;;  %v803_v57 = vrot.slane %v7996_v53, %v7991_v49  ;;  %s763_s28 = scalar_lea.vmem [#allocation2], %s762_s23 }
 0x21d   : > { %3910 = vmatprep.subr.bf16.mxu0 %v6797_v23  ;;  %v858_v58 = vrot.slane %v786_v54, %v7991_v49  ;;  %v764_v59 = vld [vmem:[%s763_s28] ss:$8 sm:$0x3]  ;;  %s789_s29 = scalar_lea.vmem [#allocation3], %s762_s23  ;;  %v8006_v0 = vsub.s32 0, %v7982_v42  ;;  %s745_s17 = sadd.s32 1, %s7968_s19 }
 0x21e   : > { %v790_v60 = vld [vmem:[%s789_s29] ss:$8 sm:$0x3]  ;;  %v825_v62 = vrot.slane %v764_v59, %v7991_v49  ;;  %v6843_v5 = vld [vmem:[%s7847_s15 + $0x274] ss:$24 sps:$4 sm:$0xff]   ;;  %s765_s18 = sadd.s32 3, %s7968_s19 }
 0x21f   : > { %3829 = vmatpush1.bf16.msra.mxu1 %v6799_v24  ;;  %v896_v61 = vrot.slane %v858_v58, 7  ;;  %v876_v63 = vrot.slane %v790_v60, %v7991_v49  ;;  %v6841_v1 = vld [vmem:[%s7847_s15 + $0x240] ss:$24 sps:$4 sm:$0xff]   ;;  %v6845_v6 = vld [vmem:[%s7847_s15 + $0x874] ss:$24 sps:$4 sm:$0xff]   ;;  %v854_v12 = vrot.slane %v786_v54, %v8006_v0  ;;  %v872_v13 = vrot.slane %v790_v60, %v8006_v0  ;;  %s746_s24 = sshra.s32 %s745_s17, 3 }
 0x220   : > { %3911 = vmatpush1.bf16.msra.mxu0 %v6800_v25  ;;  %3830 = vmatprep.subr.bf16.mxu1 %v6801_v26  ;;  %v6842_v2 = vld [vmem:[%s7847_s15 + $0x840] ss:$24 sps:$4 sm:$0xff]   ;;  %v6847_v10 = vld [vmem:[%s7847_s15 + $0x270] ss:$24 sps:$4 sm:$0xff]   ;;  %v6849_v14 = vld [vmem:[%s7847_s15 + $0x2a4] ss:$24 sps:$4 sm:$0xff]   ;;  %v799_v18 = vrot.slane %v7996_v53, %v8006_v0  ;;  %v821_v20 = vrot.slane %v764_v59, %v8006_v0 }
 0x221   : > { %3912 = vmatprep.subr.bf16.mxu0 %v6803_v27  ;;  %v917_v3 = vsel %vm915_vm4, %v803_v57, %v896_v61  ;;  %v900_v4 = vrot.slane %v876_v63, 7  ;;  %v6848_v11 = vld [vmem:[%s7847_s15 + $0x870] ss:$24 sps:$4 sm:$0xff]   ;;  %v6851_v15 = vld [vmem:[%s7847_s15 + $0x8a4] ss:$24 sps:$4 sm:$0xff]   ;;  %v895_v19 = vrot.slane %v854_v12, 7 }
 0x222   : > { %v8013_v7 = vpack.c.bf16 %v917_v3, %v917_v3  ;;  %v6853_v16 = vld [vmem:[%s7847_s15 + $0x2a0] ss:$24 sps:$4 sm:$0xff]   ;;  %v899_v21 = vrot.slane %v872_v13, 7  ;;  %v6855_v22 = vld [vmem:[%s7847_s15 + $0x2d4] ss:$24 sps:$4 sm:$0xff]   ;;  %s766_s25 = sshra.s32 %s765_s18, 3 }
 0x223   : > { %3831 = vmatpush1.bf16.msra.mxu1 %v6805_v28  ;;  %v921_v8 = vsel %vm915_vm4, %v825_v62, %v900_v4  ;;  %v6854_v17 = vld [vmem:[%s7847_s15 + $0x8a0] ss:$24 sps:$4 sm:$0xff]   ;;  %v6857_v23 = vld [vmem:[%s7847_s15 + $0x8d4] ss:$24 sps:$4 sm:$0xff]   ;;  %v6859_v24 = vld [vmem:[%s7847_s15 + $0x2d0] ss:$24 sps:$4 sm:$0xff]   ;;  %v916_v26 = vsel %vm915_vm4, %v799_v18, %v895_v19 }
 0x224   : > { %3913 = vmatpush1.bf16.msra.mxu0 %v6806_v29  ;;  %3832 = vmatprep.subr.bf16.mxu1 %v6807_v30  ;;  %v8017_v9 = vpack.c.bf16 %v921_v8, %v921_v8  ;;  %v6860_v25 = vld [vmem:[%s7847_s15 + $0x8d0] ss:$24 sps:$4 sm:$0xff]   ;;  %v920_v27 = vsel %vm915_vm4, %v821_v20, %v899_v21  ;;  %v6863_v28 = vld [vmem:[%s7847_s15 + $0x304] ss:$24 sps:$4 sm:$0xff]   ;;  %v8039_v30 = vpack.c.bf16 %v916_v26, %v916_v26  ;;  %s749_s23 = sand.u32 7, %s745_s17  ;;  %s6391_s20 = sshll.u32 %s746_s24, 4 }
 0x225   : > { %3914 = vmatprep.subr.bf16.mxu0 %v6809_v31  ;;  %3850 = vmatprep.mubr.bf16.mxu1 %v8013_v7  ;;  %v6866_v29 = vld [vmem:[%s7847_s15 + $0x904] ss:$24 sps:$4 sm:$0xff]   ;;  %v8041_v31 = vpack.c.bf16 %v920_v27, %v920_v27  ;;  %s769_s27 = sand.u32 7, %s765_s18  ;;  %s6393_s28 = sshll.u32 %s766_s25, 4  ;;  %v6896_v53 = vld [vmem:[%s7847_s15 + $0x9f4] ss:$24 sps:$4 sm:$0xff]  }
 0x226   : > { %3932 = vmatprep.mubr.bf16.mxu0 %v8017_v9  ;;  %v6875_v38 = vld [vmem:[%s7847_s15 + $0x364] ss:$24 sps:$4 sm:$0xff]   ;;  %s752_s29 = sadd.s32 %s6391_s20, %s749_s23  ;;  %s772_s17 = sadd.s32 %s6393_s28, %s769_s27  ;;  %v6891_v54 = vld [vmem:[%s7847_s15 + $0x3f0] ss:$24 sps:$4 sm:$0xff]   ;;  %v6897_v58 = vld [vmem:[%s7847_s15 + $0x420] ss:$24 sps:$4 sm:$0xff]  }
 0x227   : > { %3833 = vmatpush1.bf16.msra.mxu1 %v6811_v32  ;;  %v6861_v32 = vld [vmem:[%s7847_s15 + $0x300] ss:$24 sps:$4 sm:$0xff]   ;;  %v6902_v57 = vld [vmem:[%s7847_s15 + $0xa24] ss:$24 sps:$4 sm:$0xff]   ;;  %v6905_v60 = vld [vmem:[%s7847_s15 + $0x454] ss:$24 sps:$4 sm:$0xff]  }
 0x228   : > { %3915 = vmatpush1.bf16.msra.mxu0 %v6812_v33  ;;  %3834 = vmatprep.subr.bf16.mxu1 %v6813_v34  ;;  %v6864_v33 = vld [vmem:[%s7847_s15 + $0x900] ss:$24 sps:$4 sm:$0xff]   ;;  %v6869_v34 = vld [vmem:[%s7847_s15 + $0x334] ss:$24 sps:$4 sm:$0xff]   ;;  %s753_s18 = scalar_lea.vmem [#allocation2], %s752_s29  ;;  %s787_s24 = scalar_lea.vmem [#allocation3], %s752_s29 }
 0x229   : > { %3916 = vmatprep.subr.bf16.mxu0 %v6815_v35  ;;  %v6872_v35 = vld [vmem:[%s7847_s15 + $0x934] ss:$24 sps:$4 sm:$0xff]   ;;  %v6900_v59 = vld [vmem:[%s7847_s15 + $0xa20] ss:$24 sps:$4 sm:$0xff]   ;;  %s773_s25 = scalar_lea.vmem [#allocation2], %s772_s17  ;;  %s791_s23 = scalar_lea.vmem [#allocation3], %s772_s17 }
 0x22a   : > { %v8074_v61 = vld [vmem:[%s753_s18] ss:$8 sm:$0x3]  ;;  %v6911_v12 = vld [vmem:[%s7847_s15 + $0x484] ss:$24 sps:$4 sm:$0xff]   ;;  %s775_s20 = sadd.s32 4, %s7968_s19 }
 0x22b   : > { %3835 = vmatpush1.bf16.msra.mxu1 %v6817_v36  ;;  %v6867_v36 = vld [vmem:[%s7847_s15 + $0x330] ss:$24 sps:$4 sm:$0xff]   ;;  %v6909_v18 = vld [vmem:[%s7847_s15 + $0x480] ss:$24 sps:$4 sm:$0xff]   ;;  %v6917_v21 = vld [vmem:[%s7847_s15 + $0x4b4] ss:$24 sps:$4 sm:$0xff]  }
 0x22c   : > { %3917 = vmatpush1.bf16.msra.mxu0 %v6818_v37  ;;  %3836 = vmatprep.subr.bf16.mxu1 %v6819_v39  ;;  %v6870_v37 = vld [vmem:[%s7847_s15 + $0x930] ss:$24 sps:$4 sm:$0xff]   ;;  %v6878_v39 = vld [vmem:[%s7847_s15 + $0x964] ss:$24 sps:$4 sm:$0xff]   ;;  %v6912_v19 = vld [vmem:[%s7847_s15 + $0xa80] ss:$24 sps:$4 sm:$0xff]  }
 0x22d   : > { %3918 = vmatprep.subr.bf16.mxu0 %v6821_v40  ;;  %v6873_v40 = vld [vmem:[%s7847_s15 + $0x360] ss:$24 sps:$4 sm:$0xff]   ;;  %v6903_v8 = vld [vmem:[%s7847_s15 + $0x450] ss:$24 sps:$4 sm:$0xff]   ;;  %v6926_v26 = vld [vmem:[%s7847_s15 + $0xae4] ss:$24 sps:$4 sm:$0xff]  }
 0x22e   : > { %v8076_v62 = vld [vmem:[%s787_s24] ss:$8 sm:$0x3]  ;;  %s776_s27 = sshra.s32 %s775_s20, 3  ;;  %s779_s19 = sand.u32 7, %s775_s20 }
 0x22f   : > { %3837 = vmatpush1.bf16.msra.mxu1 %v6823_v41  ;;  %v6876_v41 = vld [vmem:[%s7847_s15 + $0x960] ss:$24 sps:$4 sm:$0xff]   ;;  %v867_v3 = vrot.slane %v8076_v62, %v7991_v49  ;;  %s6394_s28 = sshll.u32 %s776_s27, 4  ;;  %p6289_p1 = scmp.ne.s32.totalorder %s7691_s12, 4 }
 0x230   : > { %3919 = vmatpush1.bf16.msra.mxu0 %v6824_v43  ;;  %3838 = vmatprep.subr.bf16.mxu1 %v6825_v44  ;;  %v6881_v43 = vld [vmem:[%s7847_s15 + $0x394] ss:$24 sps:$4 sm:$0xff]   ;;  %v8078_v63 = vld [vmem:[%s773_s25] ss:$8 sm:$0x3]  ;;  %s782_s29 = sadd.s32 %s6394_s28, %s779_s19  ;;  %vm5611_vm5 = vcmask (!%p6289_p1), 73728  }
 0x231   : > { %3920 = vmatprep.subr.bf16.mxu0 %v6827_v45  ;;  %v6884_v44 = vld [vmem:[%s7847_s15 + $0x994] ss:$24 sps:$4 sm:$0xff]   ;;  %v6879_v45 = vld [vmem:[%s7847_s15 + $0x390] ss:$24 sps:$4 sm:$0xff]   ;;  %v6921_v27 = vld [vmem:[%s7847_s15 + $0x4e0] ss:$24 sps:$4 sm:$0xff]  }
 0x232   : > { %v8085_v4 = vld [vmem:[%s791_s23] ss:$8 sm:$0x3]  ;;  %s783_s17 = scalar_lea.vmem [#allocation2], %s782_s29  ;;  %s793_s18 = scalar_lea.vmem [#allocation3], %s782_s29  ;;  %vm5613_vm6 = vcmask (!%p6289_p1), 74753  }
 0x233   : > { %3839 = vmatpush1.bf16.msra.mxu1 %v6829_v46  ;;  %v6882_v46 = vld [vmem:[%s7847_s15 + $0x990] ss:$24 sps:$4 sm:$0xff]   ;;  %s9036_s19 = scalar_lea.vmem (!%p6289_p1), [#allocation7], %s7834_s26 }
 0x234   : > { %3921 = vmatpush1.bf16.msra.mxu0 %v6830_v47  ;;  %3840 = vmatprep.subr.bf16.mxu1 %v6831_v48  ;;  %v6887_v47 = vld [vmem:[%s7847_s15 + $0x3c4] ss:$24 sps:$4 sm:$0xff]  }
 0x235   : > { %3922 = vmatprep.subr.bf16.mxu0 %v6833_v50  ;;  %v6890_v48 = vld [vmem:[%s7847_s15 + $0x9c4] ss:$24 sps:$4 sm:$0xff]   ;;  %v6885_v50 = vld [vmem:[%s7847_s15 + $0x3c0] ss:$24 sps:$4 sm:$0xff]  }
 0x237   : > { %3841 = vmatpush1.bf16.msra.mxu1 %v6835_v51  ;;  %v6888_v51 = vld [vmem:[%s7847_s15 + $0x9c0] ss:$24 sps:$4 sm:$0xff]  }
 0x238   : > { %3923 = vmatpush1.bf16.msra.mxu0 %v6836_v52  ;;  %3842 = vmatprep.subr.bf16.mxu1 %v6837_v55  ;;  %v6893_v52 = vld [vmem:[%s7847_s15 + $0x3f4] ss:$24 sps:$4 sm:$0xff]   ;;  %v6894_v55 = vld [vmem:[%s7847_s15 + $0x9f0] ss:$24 sps:$4 sm:$0xff]  }
 0x239   : > { %3924 = vmatprep.subr.bf16.mxu0 %v6839_v56  ;;  %v6899_v56 = vld [vmem:[%s7847_s15 + $0x424] ss:$24 sps:$4 sm:$0xff]  }
 0x23b   : > { %3843 = vmatpush1.bf16.msra.mxu1 %v6841_v1  ;;  %v6908_v1 = vld [vmem:[%s7847_s15 + $0xa54] ss:$24 sps:$4 sm:$0xff]  }
 0x23c   : > { %3925 = vmatpush1.bf16.msra.mxu0 %v6842_v2  ;;  %3844 = vmatprep.subr.bf16.mxu1 %v6843_v5  ;;  %v814_v2 = vrot.slane %v8074_v61, %v7991_v49  ;;  %v836_v5 = vrot.slane %v8078_v63, %v7991_v49 }
 0x23d   : > { %3926 = vmatprep.subr.bf16.mxu0 %v6845_v6  ;;  %v885_v6 = vrot.slane %v8085_v4, %v7991_v49 }
 0x23f   : > { %3845 = vmatpush1.bf16.msra.mxu1 %v6847_v10  ;;  %v6906_v10 = vld [vmem:[%s7847_s15 + $0xa50] ss:$24 sps:$4 sm:$0xff]   ;;  %v902_v13 = vrot.slane %v885_v6, 7 }
 0x240   : > { %3927 = vmatpush1.bf16.msra.mxu0 %v6848_v11  ;;  %3846 = vmatprep.subr.bf16.mxu1 %v6849_v14  ;;  %v898_v11 = vrot.slane %v867_v3, 7  ;;  %v6914_v14 = vld [vmem:[%s7847_s15 + $0xa84] ss:$24 sps:$4 sm:$0xff]   ;;  %v6963_v6 = vld [vmem:[%s7847_s15 + $0xc30] ss:$24 sps:$4 sm:$0xff]  }
 0x241   : > { %3928 = vmatprep.subr.bf16.mxu0 %v6851_v15 }
 0x242   : > { %v919_v15 = vsel %vm915_vm4, %v814_v2, %v898_v11  ;;  %v6960_v2 = vld [vmem:[%s7847_s15 + $0x8] ss:$24 sps:$4 sm:$0xff]  }
 0x243   : > { %3847 = vmatpush1.bf16.msra.mxu1 %v6853_v16  ;;  %v8096_v16 = vpack.c.bf16 %v919_v15, %v919_v15  ;;  %v8159_v11 = vld [vmem:[%s783_s17] ss:$8 sm:$0x3] }
 0x244   : > { %3929 = vmatpush1.bf16.msra.mxu0 %v6854_v17  ;;  %3848 = vmatprep.subr.bf16.mxu1 %v6855_v22  ;;  %v923_v17 = vsel %vm915_vm4, %v836_v5, %v902_v13  ;;  %v6920_v22 = vld [vmem:[%s7847_s15 + $0xab4] ss:$24 sps:$4 sm:$0xff]  }
 0x245   : > { %3930 = vmatprep.subr.bf16.mxu0 %v6857_v23  ;;  %v8101_v20 = vpack.c.bf16 %v923_v17, %v923_v17  ;;  %v6915_v23 = vld [vmem:[%s7847_s15 + $0x4b0] ss:$24 sps:$4 sm:$0xff]   ;;  %v6968_v5 = vld [vmem:[%s7847_s15 + $0x3c] ss:$24 sps:$4 sm:$0xff]   ;;  %v6974_v13 = vld [vmem:[%s7847_s15 + $0x6c] ss:$24 sps:$4 sm:$0xff]  }
 0x246   : > { %v6969_v17 = vld [vmem:[%s7847_s15 + $0xc60] ss:$24 sps:$4 sm:$0xff]  }
 0x247   : > { %3849 = vmatpush1.bf16.msra.mxu1 %v6859_v24  ;;  %v6918_v24 = vld [vmem:[%s7847_s15 + $0xab0] ss:$24 sps:$4 sm:$0xff]  }
 0x248   : > { %3931 = vmatpush1.bf16.msra.mxu0 %v6860_v25  ;;  %3859 = vmatprep.subr.bf16.mxu1 %v6863_v28  ;;  %v6923_v25 = vld [vmem:[%s7847_s15 + $0x4e4] ss:$24 sps:$4 sm:$0xff]   ;;  %v6924_v28 = vld [vmem:[%s7847_s15 + $0xae0] ss:$24 sps:$4 sm:$0xff]  }
 0x249   : > { %3941 = vmatprep.subr.bf16.mxu0 %v6866_v29  ;;  %v6929_v29 = vld [vmem:[%s7847_s15 + $0x514] ss:$24 sps:$4 sm:$0xff]  }
 0x24a   : > { %3851 = vmatmul.mubr.bf16.vlgmr.msra.gmra.mrb[0].mxu1 %v8039_v30 }
 0x24b   : > { %3933 = vmatmul.mubr.bf16.vlgmr.msra.gmra.mrb[0].mxu0 %v8041_v31  ;;  %3860 = vmatpush1.bf16.msra.mxu1 %v6861_v32  ;;  %v6932_v32 = vld [vmem:[%s7847_s15 + $0xb14] ss:$24 sps:$4 sm:$0xff]  }
 0x24c   : > { %3942 = vmatpush1.bf16.msra.mxu0 %v6864_v33  ;;  %3861 = vmatprep.subr.bf16.mxu1 %v6869_v34  ;;  %v6927_v33 = vld [vmem:[%s7847_s15 + $0x510] ss:$24 sps:$4 sm:$0xff]  }
 0x24d   : > { %3943 = vmatprep.subr.bf16.mxu0 %v6872_v35  ;;  %3891 = vmatprep.mubr.bf16.mxu1 %v8096_v16  ;;  %v6930_v34 = vld [vmem:[%s7847_s15 + $0xb10] ss:$24 sps:$4 sm:$0xff]   ;;  %v6935_v35 = vld [vmem:[%s7847_s15 + $0x544] ss:$24 sps:$4 sm:$0xff]  }
 0x24e   : > { %3973 = vmatprep.mubr.bf16.mxu0 %v8101_v20 }
 0x24f   : > { %3862 = vmatpush1.bf16.msra.mxu1 %v6867_v36  ;;  %v6938_v36 = vld [vmem:[%s7847_s15 + $0xb44] ss:$24 sps:$4 sm:$0xff]  }
 0x250   : > { %3944 = vmatpush1.bf16.msra.mxu0 %v6870_v37  ;;  %3863 = vmatprep.subr.bf16.mxu1 %v6875_v38  ;;  %v6933_v37 = vld [vmem:[%s7847_s15 + $0x540] ss:$24 sps:$4 sm:$0xff]  }
 0x251   : > { %3945 = vmatprep.subr.bf16.mxu0 %v6878_v39  ;;  %v6936_v38 = vld [vmem:[%s7847_s15 + $0xb40] ss:$24 sps:$4 sm:$0xff]   ;;  %v6941_v39 = vld [vmem:[%s7847_s15 + $0x574] ss:$24 sps:$4 sm:$0xff]  }
 0x253   : > { %3864 = vmatpush1.bf16.msra.mxu1 %v6873_v40  ;;  %v6944_v40 = vld [vmem:[%s7847_s15 + $0xb74] ss:$24 sps:$4 sm:$0xff]  }
 0x254   : > { %3946 = vmatpush1.bf16.msra.mxu0 %v6876_v41  ;;  %3865 = vmatprep.subr.bf16.mxu1 %v6881_v43  ;;  %v6939_v41 = vld [vmem:[%s7847_s15 + $0x570] ss:$24 sps:$4 sm:$0xff]  }
 0x255   : > { %3947 = vmatprep.subr.bf16.mxu0 %v6884_v44  ;;  %v6942_v43 = vld [vmem:[%s7847_s15 + $0xb70] ss:$24 sps:$4 sm:$0xff]   ;;  %v6947_v44 = vld [vmem:[%s7847_s15 + $0x5a4] ss:$24 sps:$4 sm:$0xff]  }
 0x257   : > { %3866 = vmatpush1.bf16.msra.mxu1 %v6879_v45  ;;  %v863_v45 = vrot.slane %v8076_v62, %v8006_v0  ;;  %v6962_v62 = vld [vmem:[%s7847_s15 + $0xc] ss:$24 sps:$4 sm:$0xff]  }
 0x258   : > { %3948 = vmatpush1.bf16.msra.mxu0 %v6882_v46  ;;  %3867 = vmatprep.subr.bf16.mxu1 %v6887_v47  ;;  %v881_v46 = vrot.slane %v8085_v4, %v8006_v0  ;;  %v6950_v47 = vld [vmem:[%s7847_s15 + $0xba4] ss:$24 sps:$4 sm:$0xff]   ;;  %v6965_v4 = vld [vmem:[%s7847_s15 + $0xc34] ss:$24 sps:$4 sm:$0xff]  }
 0x259   : > { %3949 = vmatprep.subr.bf16.mxu0 %v6890_v48  ;;  %v6945_v48 = vld [vmem:[%s7847_s15 + $0x5a0] ss:$24 sps:$4 sm:$0xff]  }
 0x25b   : > { %3868 = vmatpush1.bf16.msra.mxu1 %v6885_v50  ;;  %v6948_v50 = vld [vmem:[%s7847_s15 + $0xba0] ss:$24 sps:$4 sm:$0xff]  }
 0x25c   : > { %3950 = vmatpush1.bf16.msra.mxu0 %v6888_v51  ;;  %3869 = vmatprep.subr.bf16.mxu1 %v6893_v52  ;;  %v6953_v51 = vld [vmem:[%s7847_s15 + $0x5d4] ss:$24 sps:$4 sm:$0xff]   ;;  %v810_v52 = vrot.slane %v8074_v61, %v8006_v0 }
 0x25d   : > { %3951 = vmatprep.subr.bf16.mxu0 %v6896_v53  ;;  %v897_v53 = vrot.slane %v863_v45, 7  ;;  %v7002_v45 = vld [vmem:[%s7847_s15 + $0x158] ss:$24 sps:$4 sm:$0xff]  }
 0x25f   : > { %3870 = vmatpush1.bf16.msra.mxu1 %v6891_v54  ;;  %v832_v54 = vrot.slane %v8078_v63, %v8006_v0 }
 0x260   : > { %3952 = vmatpush1.bf16.msra.mxu0 %v6894_v55  ;;  %3871 = vmatprep.subr.bf16.mxu1 %v6899_v56  ;;  %v901_v55 = vrot.slane %v881_v46, 7  ;;  %v6956_v56 = vld [vmem:[%s7847_s15 + $0xbd4] ss:$24 sps:$4 sm:$0xff]   ;;  %v7007_v46 = vld [vmem:[%s7847_s15 + $0xd84] ss:$24 sps:$4 sm:$0xff]  }
 0x261   : > { %3953 = vmatprep.subr.bf16.mxu0 %v6902_v57  ;;  %v6951_v57 = vld [vmem:[%s7847_s15 + $0x5d0] ss:$24 sps:$4 sm:$0xff]  }
 0x262   : > { %v922_v61 = vsel %vm915_vm4, %v832_v54, %v901_v55  ;;  %v7014_v54 = vld [vmem:[%s7847_s15 + $0x1b8] ss:$24 sps:$4 sm:$0xff]   ;;  %v7019_v55 = vld [vmem:[%s7847_s15 + $0xde4] ss:$24 sps:$4 sm:$0xff]  }
 0x263   : > { %3872 = vmatpush1.bf16.msra.mxu1 %v6897_v58  ;;  %v6954_v58 = vld [vmem:[%s7847_s15 + $0xbd0] ss:$24 sps:$4 sm:$0xff]   ;;  %v8150_v3 = vpack.c.bf16 %v922_v61, %v922_v61 }
 0x264   : > { %3954 = vmatpush1.bf16.msra.mxu0 %v6900_v59  ;;  %3873 = vmatprep.subr.bf16.mxu1 %v6905_v60  ;;  %v918_v59 = vsel %vm915_vm4, %v810_v52, %v897_v53  ;;  %v6959_v60 = vld [vmem:[%s7847_s15 + $0xc04] ss:$24 sps:$4 sm:$0xff]   ;;  %v7011_v53 = vld [vmem:[%s7847_s15 + $0xdb0] ss:$24 sps:$4 sm:$0xff]  }
 0x265   : > { %3955 = vmatprep.subr.bf16.mxu0 %v6908_v1  ;;  %v8146_v63 = vpack.c.bf16 %v918_v59, %v918_v59  ;;  %v6957_v1 = vld [vmem:[%s7847_s15 + $0xc00] ss:$24 sps:$4 sm:$0xff]   ;;  %v7016_v52 = vld [vmem:[%s7847_s15 + $0x1bc] ss:$24 sps:$4 sm:$0xff]   ;;  %v7023_v61 = vld [vmem:[%s7847_s15 + $0xe10] ss:$24 sps:$4 sm:$0xff]  }
 0x266   : > { %v7025_v59 = vld [vmem:[%s7847_s15 + $0xe14] ss:$24 sps:$4 sm:$0xff]  }
 0x267   : > { %3874 = vmatpush1.bf16.msra.mxu1 %v6903_v8  ;;  %v6966_v8 = vld [vmem:[%s7847_s15 + $0x38] ss:$24 sps:$4 sm:$0xff]  }
 0x268   : > { %3956 = vmatpush1.bf16.msra.mxu0 %v6906_v10  ;;  %3875 = vmatprep.subr.bf16.mxu1 %v6911_v12  ;;  %v6971_v10 = vld [vmem:[%s7847_s15 + $0xc64] ss:$24 sps:$4 sm:$0xff]   ;;  %v8161_v12 = vld [vmem:[%s793_s18] ss:$8 sm:$0x3] }
 0x269   : > { %3957 = vmatprep.subr.bf16.mxu0 %v6914_v14  ;;  %v847_v14 = vrot.slane %v8159_v11, %v7991_v49  ;;  %v894_v15 = vrot.slane %v8161_v12, %v7991_v49 }
 0x26b   : > { %3876 = vmatpush1.bf16.msra.mxu1 %v6909_v18  ;;  %v6972_v18 = vld [vmem:[%s7847_s15 + $0x68] ss:$24 sps:$4 sm:$0xff]  }
 0x26c   : > { %3958 = vmatpush1.bf16.msra.mxu0 %v6912_v19  ;;  %3877 = vmatprep.subr.bf16.mxu1 %v6917_v21  ;;  %v6977_v19 = vld [vmem:[%s7847_s15 + $0xc94] ss:$24 sps:$4 sm:$0xff]   ;;  %v904_v21 = vrot.slane %v894_v15, 7  ;;  %v890_v15 = vrot.slane %v8161_v12, %v8006_v0 }
 0x26d   : > { %3959 = vmatprep.subr.bf16.mxu0 %v6920_v22  ;;  %v6980_v22 = vld [vmem:[%s7847_s15 + $0x9c] ss:$24 sps:$4 sm:$0xff]  }
 0x26e   : > { %v7052_v12 = vld [vmem:[%s7847_s15 + $0x2dc] ss:$24 sps:$4 sm:$0xff]  }
 0x26f   : > { %3878 = vmatpush1.bf16.msra.mxu1 %v6915_v23  ;;  %v925_v23 = vsel %vm915_vm4, %v847_v14, %v904_v21  ;;  %v7043_v14 = vld [vmem:[%s7847_s15 + $0xea4] ss:$24 sps:$4 sm:$0xff]   ;;  %v7049_v21 = vld [vmem:[%s7847_s15 + $0xed4] ss:$24 sps:$4 sm:$0xff]  }
 0x270   : > { %3960 = vmatpush1.bf16.msra.mxu0 %v6918_v24  ;;  %3879 = vmatprep.subr.bf16.mxu1 %v6923_v25  ;;  %v6975_v24 = vld [vmem:[%s7847_s15 + $0xc90] ss:$24 sps:$4 sm:$0xff]   ;;  %v8175_v25 = vpack.c.bf16 %v925_v23, %v925_v23  ;;  %v903_v23 = vrot.slane %v890_v15, 7  ;;  %v7118_v15 = vld [vmem:[%s7847_s15 + $0x1f4] ss:$24 sps:$4 sm:$0xff]  }
 0x271   : > { %3961 = vmatprep.subr.bf16.mxu0 %v6926_v26  ;;  %v6978_v26 = vld [vmem:[%s7847_s15 + $0x98] ss:$24 sps:$4 sm:$0xff]  }
 0x273   : > { %3880 = vmatpush1.bf16.msra.mxu1 %v6921_v27  ;;  %v6983_v27 = vld [vmem:[%s7847_s15 + $0xcc4] ss:$24 sps:$4 sm:$0xff]  }
 0x274   : > { %3962 = vmatpush1.bf16.msra.mxu0 %v6924_v28  ;;  %3881 = vmatprep.subr.bf16.mxu1 %v6929_v29  ;;  %v6986_v28 = vld [vmem:[%s7847_s15 + $0xcc] ss:$24 sps:$4 sm:$0xff]   ;;  %v6981_v29 = vld [vmem:[%s7847_s15 + $0xcc0] ss:$24 sps:$4 sm:$0xff]  }
 0x275   : > { %3963 = vmatprep.subr.bf16.mxu0 %v6932_v32  ;;  %v6984_v32 = vld [vmem:[%s7847_s15 + $0xc8] ss:$24 sps:$4 sm:$0xff]  }
 0x277   : > { %3882 = vmatpush1.bf16.msra.mxu1 %v6927_v33  ;;  %v6989_v33 = vld [vmem:[%s7847_s15 + $0xcf4] ss:$24 sps:$4 sm:$0xff]  }
 0x278   : > { %3964 = vmatpush1.bf16.msra.mxu0 %v6930_v34  ;;  %3883 = vmatprep.subr.bf16.mxu1 %v6935_v35  ;;  %v6992_v34 = vld [vmem:[%s7847_s15 + $0xfc] ss:$24 sps:$4 sm:$0xff]   ;;  %v6987_v35 = vld [vmem:[%s7847_s15 + $0xcf0] ss:$24 sps:$4 sm:$0xff]  }
 0x279   : > { %3965 = vmatprep.subr.bf16.mxu0 %v6938_v36  ;;  %v6990_v36 = vld [vmem:[%s7847_s15 + $0xf8] ss:$24 sps:$4 sm:$0xff]  }
 0x27b   : > { %3884 = vmatpush1.bf16.msra.mxu1 %v6933_v37  ;;  %v6995_v37 = vld [vmem:[%s7847_s15 + $0xd24] ss:$24 sps:$4 sm:$0xff]  }
 0x27c   : > { %3966 = vmatpush1.bf16.msra.mxu0 %v6936_v38  ;;  %3885 = vmatprep.subr.bf16.mxu1 %v6941_v39  ;;  %v6998_v38 = vld [vmem:[%s7847_s15 + $0x12c] ss:$24 sps:$4 sm:$0xff]   ;;  %v6993_v39 = vld [vmem:[%s7847_s15 + $0xd20] ss:$24 sps:$4 sm:$0xff]  }
 0x27d   : > { %3967 = vmatprep.subr.bf16.mxu0 %v6944_v40  ;;  %v6996_v40 = vld [vmem:[%s7847_s15 + $0x128] ss:$24 sps:$4 sm:$0xff]  }
 0x27f   : > { %3886 = vmatpush1.bf16.msra.mxu1 %v6939_v41  ;;  %v7001_v41 = vld [vmem:[%s7847_s15 + $0xd54] ss:$24 sps:$4 sm:$0xff]  }
 0x280   : > { %3968 = vmatpush1.bf16.msra.mxu0 %v6942_v43  ;;  %3887 = vmatprep.subr.bf16.mxu1 %v6947_v44  ;;  %v7004_v43 = vld [vmem:[%s7847_s15 + $0x15c] ss:$24 sps:$4 sm:$0xff]   ;;  %v6999_v44 = vld [vmem:[%s7847_s15 + $0xd50] ss:$24 sps:$4 sm:$0xff]  }
 0x281   : > { %3969 = vmatprep.subr.bf16.mxu0 %v6950_v47  ;;  %v7010_v47 = vld [vmem:[%s7847_s15 + $0x18c] ss:$24 sps:$4 sm:$0xff]  }
 0x283   : > { %3888 = vmatpush1.bf16.msra.mxu1 %v6945_v48  ;;  %v7005_v48 = vld [vmem:[%s7847_s15 + $0xd80] ss:$24 sps:$4 sm:$0xff]  }
 0x284   : > { %3970 = vmatpush1.bf16.msra.mxu0 %v6948_v50  ;;  %3889 = vmatprep.subr.bf16.mxu1 %v6953_v51  ;;  %v7008_v50 = vld [vmem:[%s7847_s15 + $0x188] ss:$24 sps:$4 sm:$0xff]   ;;  %v7013_v51 = vld [vmem:[%s7847_s15 + $0xdb4] ss:$24 sps:$4 sm:$0xff]  }
 0x285   : > { %3971 = vmatprep.subr.bf16.mxu0 %v6956_v56  ;;  %v7022_v56 = vld [vmem:[%s7847_s15 + $0x1ec] ss:$24 sps:$4 sm:$0xff]  }
 0x287   : > { %3890 = vmatpush1.bf16.msra.mxu1 %v6951_v57  ;;  %v7017_v57 = vld [vmem:[%s7847_s15 + $0xde0] ss:$24 sps:$4 sm:$0xff]  }
 0x288   : > { %3972 = vmatpush1.bf16.msra.mxu0 %v6954_v58  ;;  %4023 = vmatprep.subr.bf16.mxu1 %v6962_v62  ;;  %v7020_v58 = vld [vmem:[%s7847_s15 + $0x1e8] ss:$24 sps:$4 sm:$0xff]   ;;  %v7026_v62 = vld [vmem:[%s7847_s15 + $0x218] ss:$24 sps:$4 sm:$0xff]  }
 0x289   : > { %3982 = vmatprep.subr.bf16.mxu0 %v6959_v60  ;;  %v7028_v60 = vld [vmem:[%s7847_s15 + $0x21c] ss:$24 sps:$4 sm:$0xff]  }
 0x28a   : > { %3892 = vmatmul.mubr.bf16.vlgmr.msra.gmra.mrb[0].mxu1 %v8146_v63 }
 0x28b   : > { %3974 = vmatmul.mubr.bf16.vlgmr.msra.gmra.mrb[0].mxu0 %v8150_v3  ;;  %4024 = vmatpush1.bf16.msra.mxu1 %v6960_v2  ;;  %v7034_v2 = vld [vmem:[%s7847_s15 + $0x24c] ss:$24 sps:$4 sm:$0xff]  }
 0x28c   : > { %3983 = vmatpush1.bf16.msra.mxu0 %v6957_v1  ;;  %4025 = vmatprep.subr.bf16.mxu1 %v6968_v5  ;;  %v7031_v1 = vld [vmem:[%s7847_s15 + $0xe44] ss:$24 sps:$4 sm:$0xff]   ;;  %v7032_v5 = vld [vmem:[%s7847_s15 + $0x248] ss:$24 sps:$4 sm:$0xff]  }
 0x28d   : > { %3984 = vmatprep.subr.bf16.mxu0 %v6965_v4  ;;  %4055 = vmatprep.mubr.bf16.mxu1 %v8013_v7  ;;  %v7029_v4 = vld [vmem:[%s7847_s15 + $0xe40] ss:$24 sps:$4 sm:$0xff]  }
 0x28e   : > { %4014 = vmatprep.mubr.bf16.mxu0 %v8175_v25 }
 0x28f   : > { %4026 = vmatpush1.bf16.msra.mxu1 %v6966_v8  ;;  %v7040_v8 = vld [vmem:[%s7847_s15 + $0x27c] ss:$24 sps:$4 sm:$0xff]  }
 0x290   : > { %3985 = vmatpush1.bf16.msra.mxu0 %v6963_v6  ;;  %4027 = vmatprep.subr.bf16.mxu1 %v6974_v13  ;;  %v7037_v6 = vld [vmem:[%s7847_s15 + $0xe74] ss:$24 sps:$4 sm:$0xff]   ;;  %v7038_v13 = vld [vmem:[%s7847_s15 + $0x278] ss:$24 sps:$4 sm:$0xff]  }
 0x291   : > { %3986 = vmatprep.subr.bf16.mxu0 %v6971_v10  ;;  %v7035_v10 = vld [vmem:[%s7847_s15 + $0xe70] ss:$24 sps:$4 sm:$0xff]  }
 0x293   : > { %4028 = vmatpush1.bf16.msra.mxu1 %v6972_v18  ;;  %v7041_v18 = vld [vmem:[%s7847_s15 + $0xea0] ss:$24 sps:$4 sm:$0xff]  }
 0x294   : > { %3987 = vmatpush1.bf16.msra.mxu0 %v6969_v17  ;;  %4029 = vmatprep.subr.bf16.mxu1 %v6980_v22  ;;  %v7046_v17 = vld [vmem:[%s7847_s15 + $0x2ac] ss:$24 sps:$4 sm:$0xff]   ;;  %v843_v22 = vrot.slane %v8159_v11, %v8006_v0 }
 0x295   : > { %3988 = vmatprep.subr.bf16.mxu0 %v6977_v19  ;;  %v7044_v19 = vld [vmem:[%s7847_s15 + $0x2a8] ss:$24 sps:$4 sm:$0xff]  }
 0x297   : > { %4030 = vmatpush1.bf16.msra.mxu1 %v6978_v26  ;;  %v7050_v26 = vld [vmem:[%s7847_s15 + $0x2d8] ss:$24 sps:$4 sm:$0xff]  }
 0x298   : > { %3989 = vmatpush1.bf16.msra.mxu0 %v6975_v24  ;;  %4031 = vmatprep.subr.bf16.mxu1 %v6986_v28  ;;  %v7047_v24 = vld [vmem:[%s7847_s15 + $0xed0] ss:$24 sps:$4 sm:$0xff]   ;;  %v7055_v28 = vld [vmem:[%s7847_s15 + $0x30c] ss:$24 sps:$4 sm:$0xff]  }
 0x299   : > { %3990 = vmatprep.subr.bf16.mxu0 %v6983_v27  ;;  %v924_v27 = vsel %vm915_vm4, %v843_v22, %v903_v23  ;;  %v7119_v22 = vld [vmem:[%s7847_s15 + $0x518] ss:$24 sps:$4 sm:$0xff]  }
 0x29a   : > { %v8234_v11 = vpack.c.bf16 %v924_v27, %v924_v27  ;;  %v7122_v23 = vld [vmem:[%s7847_s15 + $0x220] ss:$24 sps:$4 sm:$0xff]   ;;  %v7128_v27 = vld [vmem:[%s7847_s15 + $0x250] ss:$24 sps:$4 sm:$0xff]  }
 0x29b   : > { %4032 = vmatpush1.bf16.msra.mxu1 %v6984_v32  ;;  %v7053_v32 = vld [vmem:[%s7847_s15 + $0x308] ss:$24 sps:$4 sm:$0xff]  }
 0x29c   : > { %3991 = vmatpush1.bf16.msra.mxu0 %v6981_v29  ;;  %4033 = vmatprep.subr.bf16.mxu1 %v6992_v34  ;;  %v7058_v29 = vld [vmem:[%s7847_s15 + $0x14] ss:$24 sps:$4 sm:$0xff]  }
 0x29d   : > { %3992 = vmatprep.subr.bf16.mxu0 %v6989_v33  ;;  %v7056_v33 = vld [vmem:[%s7847_s15 + $0x10] ss:$24 sps:$4 sm:$0xff]   ;;  %v7061_v34 = vld [vmem:[%s7847_s15 + $0x33c] ss:$24 sps:$4 sm:$0xff]  }
 0x29f   : > { %4034 = vmatpush1.bf16.msra.mxu1 %v6990_v36  ;;  %v7059_v36 = vld [vmem:[%s7847_s15 + $0x338] ss:$24 sps:$4 sm:$0xff]  }
 0x2a0   : > { %3993 = vmatpush1.bf16.msra.mxu0 %v6987_v35  ;;  %4035 = vmatprep.subr.bf16.mxu1 %v6998_v38  ;;  %v7064_v35 = vld [vmem:[%s7847_s15 + $0x44] ss:$24 sps:$4 sm:$0xff]  }
 0x2a1   : > { %3994 = vmatprep.subr.bf16.mxu0 %v6995_v37  ;;  %v7062_v37 = vld [vmem:[%s7847_s15 + $0x40] ss:$24 sps:$4 sm:$0xff]   ;;  %v7067_v38 = vld [vmem:[%s7847_s15 + $0x36c] ss:$24 sps:$4 sm:$0xff]  }
 0x2a3   : > { %4036 = vmatpush1.bf16.msra.mxu1 %v6996_v40  ;;  %v7065_v40 = vld [vmem:[%s7847_s15 + $0x368] ss:$24 sps:$4 sm:$0xff]  }
 0x2a4   : > { %3995 = vmatpush1.bf16.msra.mxu0 %v6993_v39  ;;  %4037 = vmatprep.subr.bf16.mxu1 %v7004_v43  ;;  %v7070_v39 = vld [vmem:[%s7847_s15 + $0x74] ss:$24 sps:$4 sm:$0xff]  }
 0x2a5   : > { %3996 = vmatprep.subr.bf16.mxu0 %v7001_v41  ;;  %v7068_v41 = vld [vmem:[%s7847_s15 + $0x70] ss:$24 sps:$4 sm:$0xff]   ;;  %v7073_v43 = vld [vmem:[%s7847_s15 + $0x39c] ss:$24 sps:$4 sm:$0xff]  }
 0x2a7   : > { %4038 = vmatpush1.bf16.msra.mxu1 %v7002_v45  ;;  %v7071_v45 = vld [vmem:[%s7847_s15 + $0x398] ss:$24 sps:$4 sm:$0xff]  }
 0x2a8   : > { %3997 = vmatpush1.bf16.msra.mxu0 %v6999_v44  ;;  %4039 = vmatprep.subr.bf16.mxu1 %v7010_v47  ;;  %v7076_v44 = vld [vmem:[%s7847_s15 + $0xa4] ss:$24 sps:$4 sm:$0xff]   ;;  %v7082_v47 = vld [vmem:[%s7847_s15 + $0xd4] ss:$24 sps:$4 sm:$0xff]  }
 0x2a9   : > { %3998 = vmatprep.subr.bf16.mxu0 %v7007_v46  ;;  %v7074_v46 = vld [vmem:[%s7847_s15 + $0xa0] ss:$24 sps:$4 sm:$0xff]  }
 0x2ab   : > { %4040 = vmatpush1.bf16.msra.mxu1 %v7008_v50  ;;  %v7080_v50 = vld [vmem:[%s7847_s15 + $0xd0] ss:$24 sps:$4 sm:$0xff]  }
 0x2ac   : > { %3999 = vmatpush1.bf16.msra.mxu0 %v7005_v48  ;;  %4041 = vmatprep.subr.bf16.mxu1 %v7016_v52  ;;  %v7077_v48 = vld [vmem:[%s7847_s15 + $0x3c8] ss:$24 sps:$4 sm:$0xff]   ;;  %v7088_v52 = vld [vmem:[%s7847_s15 + $0x104] ss:$24 sps:$4 sm:$0xff]  }
 0x2ad   : > { %4000 = vmatprep.subr.bf16.mxu0 %v7013_v51  ;;  %v7085_v51 = vld [vmem:[%s7847_s15 + $0x3fc] ss:$24 sps:$4 sm:$0xff]  }
 0x2af   : > { %4042 = vmatpush1.bf16.msra.mxu1 %v7014_v54  ;;  %v7086_v54 = vld [vmem:[%s7847_s15 + $0x100] ss:$24 sps:$4 sm:$0xff]  }
 0x2b0   : > { %4001 = vmatpush1.bf16.msra.mxu0 %v7011_v53  ;;  %4043 = vmatprep.subr.bf16.mxu1 %v7022_v56  ;;  %v7083_v53 = vld [vmem:[%s7847_s15 + $0x3f8] ss:$24 sps:$4 sm:$0xff]   ;;  %v7094_v56 = vld [vmem:[%s7847_s15 + $0x134] ss:$24 sps:$4 sm:$0xff]  }
 0x2b1   : > { %4002 = vmatprep.subr.bf16.mxu0 %v7019_v55  ;;  %v7091_v55 = vld [vmem:[%s7847_s15 + $0x42c] ss:$24 sps:$4 sm:$0xff]  }
 0x2b3   : > { %4044 = vmatpush1.bf16.msra.mxu1 %v7020_v58  ;;  %v7092_v58 = vld [vmem:[%s7847_s15 + $0x130] ss:$24 sps:$4 sm:$0xff]  }
 0x2b4   : > { %4003 = vmatpush1.bf16.msra.mxu0 %v7017_v57  ;;  %4045 = vmatprep.subr.bf16.mxu1 %v7028_v60  ;;  %v7089_v57 = vld [vmem:[%s7847_s15 + $0x428] ss:$24 sps:$4 sm:$0xff]   ;;  %v7100_v60 = vld [vmem:[%s7847_s15 + $0x164] ss:$24 sps:$4 sm:$0xff]  }
 0x2b5   : > { %4004 = vmatprep.subr.bf16.mxu0 %v7025_v59  ;;  %v7097_v59 = vld [vmem:[%s7847_s15 + $0x45c] ss:$24 sps:$4 sm:$0xff]  }
 0x2b7   : > { %4046 = vmatpush1.bf16.msra.mxu1 %v7026_v62  ;;  %v7098_v62 = vld [vmem:[%s7847_s15 + $0x160] ss:$24 sps:$4 sm:$0xff]  }
 0x2b8   : > { %4005 = vmatpush1.bf16.msra.mxu0 %v7023_v61  ;;  %4047 = vmatprep.subr.bf16.mxu1 %v7034_v2  ;;  %v7095_v61 = vld [vmem:[%s7847_s15 + $0x458] ss:$24 sps:$4 sm:$0xff]   ;;  %v7106_v2 = vld [vmem:[%s7847_s15 + $0x194] ss:$24 sps:$4 sm:$0xff]  }
 0x2b9   : > { %4006 = vmatprep.subr.bf16.mxu0 %v7031_v1  ;;  %v7103_v1 = vld [vmem:[%s7847_s15 + $0x48c] ss:$24 sps:$4 sm:$0xff]  }
 0x2bb   : > { %4048 = vmatpush1.bf16.msra.mxu1 %v7032_v5  ;;  %v7104_v5 = vld [vmem:[%s7847_s15 + $0x190] ss:$24 sps:$4 sm:$0xff]  }
 0x2bc   : > { %4007 = vmatpush1.bf16.msra.mxu0 %v7029_v4  ;;  %4049 = vmatprep.subr.bf16.mxu1 %v7040_v8  ;;  %v7101_v4 = vld [vmem:[%s7847_s15 + $0x488] ss:$24 sps:$4 sm:$0xff]   ;;  %v7112_v8 = vld [vmem:[%s7847_s15 + $0x1c4] ss:$24 sps:$4 sm:$0xff]  }
 0x2bd   : > { %4008 = vmatprep.subr.bf16.mxu0 %v7037_v6  ;;  %v7109_v6 = vld [vmem:[%s7847_s15 + $0x4bc] ss:$24 sps:$4 sm:$0xff]  }
 0x2bf   : > { %4050 = vmatpush1.bf16.msra.mxu1 %v7038_v13  ;;  %v7110_v13 = vld [vmem:[%s7847_s15 + $0x1c0] ss:$24 sps:$4 sm:$0xff]  }
 0x2c0   : > { %4009 = vmatpush1.bf16.msra.mxu0 %v7035_v10  ;;  %4051 = vmatprep.subr.bf16.mxu1 %v7046_v17  ;;  %v7107_v10 = vld [vmem:[%s7847_s15 + $0x4b8] ss:$24 sps:$4 sm:$0xff]   ;;  %v7113_v17 = vld [vmem:[%s7847_s15 + $0x4e8] ss:$24 sps:$4 sm:$0xff]  }
 0x2c1   : > { %4010 = vmatprep.subr.bf16.mxu0 %v7043_v14  ;;  %v7115_v14 = vld [vmem:[%s7847_s15 + $0x4ec] ss:$24 sps:$4 sm:$0xff]  }
 0x2c3   : > { %4052 = vmatpush1.bf16.msra.mxu1 %v7044_v19  ;;  %v7121_v19 = vld [vmem:[%s7847_s15 + $0x51c] ss:$24 sps:$4 sm:$0xff]  }
 0x2c4   : > { %4011 = vmatpush1.bf16.msra.mxu0 %v7041_v18  ;;  %4053 = vmatprep.subr.bf16.mxu1 %v7052_v12  ;;  %v7116_v18 = vld [vmem:[%s7847_s15 + $0x1f0] ss:$24 sps:$4 sm:$0xff]   ;;  %v7127_v12 = vld [vmem:[%s7847_s15 + $0x54c] ss:$24 sps:$4 sm:$0xff]  }
 0x2c5   : > { %4012 = vmatprep.subr.bf16.mxu0 %v7049_v21  ;;  %v7124_v21 = vld [vmem:[%s7847_s15 + $0x224] ss:$24 sps:$4 sm:$0xff]  }
 0x2c7   : > { %4054 = vmatpush1.bf16.msra.mxu1 %v7050_v26  ;;  %v7125_v26 = vld [vmem:[%s7847_s15 + $0x548] ss:$24 sps:$4 sm:$0xff]  }
 0x2c8   : > { %4013 = vmatpush1.bf16.msra.mxu0 %v7047_v24  ;;  %4064 = vmatprep.subr.bf16.mxu1 %v7055_v28  ;;  %v7130_v24 = vld [vmem:[%s7847_s15 + $0x254] ss:$24 sps:$4 sm:$0xff]  }
 0x2c9   : > { %4228 = vmatprep.subr.bf16.mxu0 %v7058_v29  ;;  %v7133_v28 = vld [vmem:[%s7847_s15 + $0x57c] ss:$24 sps:$4 sm:$0xff]  }
 0x2ca   : > { %4056 = vmatmul.mubr.bf16.vlgmr.msra.gmra.mrb[4].mxu1 %v8039_v30  ;;  %v7136_v29 = vld [vmem:[%s7847_s15 + $0x284] ss:$24 sps:$4 sm:$0xff]  }
 0x2cb   : > { %4015 = vmatmul.mubr.bf16.vlgmr.msra.gmra.mrb[0].mxu0 %v8234_v11  ;;  %4065 = vmatpush1.bf16.msra.mxu1 %v7053_v32  ;;  %v7131_v32 = vld [vmem:[%s7847_s15 + $0x578] ss:$24 sps:$4 sm:$0xff]  }
 0x2cc   : > { %4229 = vmatpush1.bf16.msra.mxu0 %v7056_v33  ;;  %4066 = vmatprep.subr.bf16.mxu1 %v7061_v34  ;;  %v7134_v33 = vld [vmem:[%s7847_s15 + $0x280] ss:$24 sps:$4 sm:$0xff]   ;;  %v7139_v34 = vld [vmem:[%s7847_s15 + $0x5ac] ss:$24 sps:$4 sm:$0xff]  }
 0x2cd   : > { %4230 = vmatprep.subr.bf16.mxu0 %v7064_v35  ;;  %4096 = vmatprep.mubr.bf16.mxu1 %v8096_v16  ;;  %v7142_v35 = vld [vmem:[%s7847_s15 + $0x2b4] ss:$24 sps:$4 sm:$0xff]  }
 0x2ce   : > { %4260 = vmatprep.mubr.bf16.mxu0 %v8013_v7  ;;  %v7079_v7 = vld [vmem:[%s7847_s15 + $0x3cc] ss:$24 sps:$4 sm:$0xff]  }
 0x2cf   : > { %4067 = vmatpush1.bf16.msra.mxu1 %v7059_v36  ;;  %v7137_v36 = vld [vmem:[%s7847_s15 + $0x5a8] ss:$24 sps:$4 sm:$0xff]  }
 0x2d0   : > { %4231 = vmatpush1.bf16.msra.mxu0 %v7062_v37  ;;  %4068 = vmatprep.subr.bf16.mxu1 %v7067_v38  ;;  %v7140_v37 = vld [vmem:[%s7847_s15 + $0x2b0] ss:$24 sps:$4 sm:$0xff]   ;;  %v7145_v38 = vld [vmem:[%s7847_s15 + $0x5dc] ss:$24 sps:$4 sm:$0xff]  }
 0x2d1   : > { %4232 = vmatprep.subr.bf16.mxu0 %v7070_v39  ;;  %v7148_v39 = vld [vmem:[%s7847_s15 + $0x2e4] ss:$24 sps:$4 sm:$0xff]  }
 0x2d3   : > { %4069 = vmatpush1.bf16.msra.mxu1 %v7065_v40  ;;  %v7143_v40 = vld [vmem:[%s7847_s15 + $0x5d8] ss:$24 sps:$4 sm:$0xff]  }
 0x2d4   : > { %4233 = vmatpush1.bf16.msra.mxu0 %v7068_v41  ;;  %4070 = vmatprep.subr.bf16.mxu1 %v7073_v43  ;;  %v7146_v41 = vld [vmem:[%s7847_s15 + $0x2e0] ss:$24 sps:$4 sm:$0xff]   ;;  %v7151_v43 = vld [vmem:[%s7847_s15 + $0x60c] ss:$24 sps:$4 sm:$0xff]  }
 0x2d5   : > { %4234 = vmatprep.subr.bf16.mxu0 %v7076_v44  ;;  %v7154_v44 = vld [vmem:[%s7847_s15 + $0x314] ss:$24 sps:$4 sm:$0xff]  }
 0x2d7   : > { %4071 = vmatpush1.bf16.msra.mxu1 %v7071_v45  ;;  %v7149_v45 = vld [vmem:[%s7847_s15 + $0x608] ss:$24 sps:$4 sm:$0xff]  }
 0x2d8   : > { %4235 = vmatpush1.bf16.msra.mxu0 %v7074_v46  ;;  %4072 = vmatprep.subr.bf16.mxu1 %v7079_v7  ;;  %v7152_v46 = vld [vmem:[%s7847_s15 + $0x310] ss:$24 sps:$4 sm:$0xff]   ;;  %v7157_v7 = vld [vmem:[%s7847_s15 + $0x63c] ss:$24 sps:$4 sm:$0xff]  }
 0x2d9   : > { %4236 = vmatprep.subr.bf16.mxu0 %v7082_v47  ;;  %v7160_v47 = vld [vmem:[%s7847_s15 + $0x344] ss:$24 sps:$4 sm:$0xff]  }
 0x2db   : > { %4073 = vmatpush1.bf16.msra.mxu1 %v7077_v48  ;;  %v7155_v48 = vld [vmem:[%s7847_s15 + $0x638] ss:$24 sps:$4 sm:$0xff]  }
 0x2dc   : > { %4237 = vmatpush1.bf16.msra.mxu0 %v7080_v50  ;;  %4074 = vmatprep.subr.bf16.mxu1 %v7085_v51  ;;  %v7158_v50 = vld [vmem:[%s7847_s15 + $0x340] ss:$24 sps:$4 sm:$0xff]   ;;  %v7163_v51 = vld [vmem:[%s7847_s15 + $0x66c] ss:$24 sps:$4 sm:$0xff]  }
 0x2dd   : > { %4238 = vmatprep.subr.bf16.mxu0 %v7088_v52  ;;  %v7166_v52 = vld [vmem:[%s7847_s15 + $0x374] ss:$24 sps:$4 sm:$0xff]  }
 0x2df   : > { %4075 = vmatpush1.bf16.msra.mxu1 %v7083_v53  ;;  %v7161_v53 = vld [vmem:[%s7847_s15 + $0x668] ss:$24 sps:$4 sm:$0xff]  }
 0x2e0   : > { %4239 = vmatpush1.bf16.msra.mxu0 %v7086_v54  ;;  %4076 = vmatprep.subr.bf16.mxu1 %v7091_v55  ;;  %v7169_v54 = vld [vmem:[%s7847_s15 + $0x69c] ss:$24 sps:$4 sm:$0xff]  }
 0x2e1   : > { %4240 = vmatprep.subr.bf16.mxu0 %v7094_v56  ;;  %v7172_v55 = vld [vmem:[%s7847_s15 + $0x3a4] ss:$24 sps:$4 sm:$0xff]   ;;  %v7167_v56 = vld [vmem:[%s7847_s15 + $0x698] ss:$24 sps:$4 sm:$0xff]  }
 0x2e3   : > { %4077 = vmatpush1.bf16.msra.mxu1 %v7089_v57  ;;  %v7170_v57 = vld [vmem:[%s7847_s15 + $0x3a0] ss:$24 sps:$4 sm:$0xff]  }
 0x2e4   : > { %4241 = vmatpush1.bf16.msra.mxu0 %v7092_v58  ;;  %4078 = vmatprep.subr.bf16.mxu1 %v7097_v59  ;;  %v7178_v58 = vld [vmem:[%s7847_s15 + $0x3d4] ss:$24 sps:$4 sm:$0xff]   ;;  %v7173_v59 = vld [vmem:[%s7847_s15 + $0x6c8] ss:$24 sps:$4 sm:$0xff]  }
 0x2e5   : > { %4242 = vmatprep.subr.bf16.mxu0 %v7100_v60  ;;  %v7176_v60 = vld [vmem:[%s7847_s15 + $0x3d0] ss:$24 sps:$4 sm:$0xff]  }
 0x2e7   : > { %4079 = vmatpush1.bf16.msra.mxu1 %v7095_v61  ;;  %v7181_v61 = vld [vmem:[%s7847_s15 + $0x6fc] ss:$24 sps:$4 sm:$0xff]  }
 0x2e8   : > { %4243 = vmatpush1.bf16.msra.mxu0 %v7098_v62  ;;  %4080 = vmatprep.subr.bf16.mxu1 %v7103_v1  ;;  %v7184_v62 = vld [vmem:[%s7847_s15 + $0x404] ss:$24 sps:$4 sm:$0xff]   ;;  %v7179_v1 = vld [vmem:[%s7847_s15 + $0x6f8] ss:$24 sps:$4 sm:$0xff]  }
 0x2e9   : > { %4244 = vmatprep.subr.bf16.mxu0 %v7106_v2  ;;  %v7182_v2 = vld [vmem:[%s7847_s15 + $0x400] ss:$24 sps:$4 sm:$0xff]  }
 0x2eb   : > { %4081 = vmatpush1.bf16.msra.mxu1 %v7101_v4  ;;  %v7187_v4 = vld [vmem:[%s7847_s15 + $0x72c] ss:$24 sps:$4 sm:$0xff]  }
 0x2ec   : > { %4245 = vmatpush1.bf16.msra.mxu0 %v7104_v5  ;;  %4082 = vmatprep.subr.bf16.mxu1 %v7109_v6  ;;  %v7190_v5 = vld [vmem:[%s7847_s15 + $0x434] ss:$24 sps:$4 sm:$0xff]   ;;  %v7185_v6 = vld [vmem:[%s7847_s15 + $0x728] ss:$24 sps:$4 sm:$0xff]  }
 0x2ed   : > { %4246 = vmatprep.subr.bf16.mxu0 %v7112_v8  ;;  %v7188_v8 = vld [vmem:[%s7847_s15 + $0x430] ss:$24 sps:$4 sm:$0xff]  }
 0x2ef   : > { %4083 = vmatpush1.bf16.msra.mxu1 %v7107_v10  ;;  %v7193_v10 = vld [vmem:[%s7847_s15 + $0x75c] ss:$24 sps:$4 sm:$0xff]  }
 0x2f0   : > { %4247 = vmatpush1.bf16.msra.mxu0 %v7110_v13  ;;  %4084 = vmatprep.subr.bf16.mxu1 %v7115_v14  ;;  %v7196_v13 = vld [vmem:[%s7847_s15 + $0x464] ss:$24 sps:$4 sm:$0xff]   ;;  %v7191_v14 = vld [vmem:[%s7847_s15 + $0x758] ss:$24 sps:$4 sm:$0xff]  }
 0x2f1   : > { %4248 = vmatprep.subr.bf16.mxu0 %v7118_v15  ;;  %v7194_v15 = vld [vmem:[%s7847_s15 + $0x460] ss:$24 sps:$4 sm:$0xff]  }
 0x2f3   : > { %4085 = vmatpush1.bf16.msra.mxu1 %v7113_v17  ;;  %v7199_v17 = vld [vmem:[%s7847_s15 + $0x78c] ss:$24 sps:$4 sm:$0xff]  }
 0x2f4   : > { %4249 = vmatpush1.bf16.msra.mxu0 %v7116_v18  ;;  %4086 = vmatprep.subr.bf16.mxu1 %v7121_v19  ;;  %v7202_v18 = vld [vmem:[%s7847_s15 + $0x494] ss:$24 sps:$4 sm:$0xff]   ;;  %v7197_v19 = vld [vmem:[%s7847_s15 + $0x788] ss:$24 sps:$4 sm:$0xff]  }
 0x2f5   : > { %4250 = vmatprep.subr.bf16.mxu0 %v7124_v21  ;;  %v7200_v21 = vld [vmem:[%s7847_s15 + $0x490] ss:$24 sps:$4 sm:$0xff]  }
 0x2f7   : > { %4087 = vmatpush1.bf16.msra.mxu1 %v7119_v22  ;;  %v7205_v22 = vld [vmem:[%s7847_s15 + $0x7bc] ss:$24 sps:$4 sm:$0xff]  }
 0x2f8   : > { %4251 = vmatpush1.bf16.msra.mxu0 %v7122_v23  ;;  %4088 = vmatprep.subr.bf16.mxu1 %v7127_v12  ;;  %v7208_v23 = vld [vmem:[%s7847_s15 + $0x4c4] ss:$24 sps:$4 sm:$0xff]   ;;  %v7203_v12 = vld [vmem:[%s7847_s15 + $0x7b8] ss:$24 sps:$4 sm:$0xff]  }
 0x2f9   : > { %4252 = vmatprep.subr.bf16.mxu0 %v7130_v24  ;;  %v7206_v24 = vld [vmem:[%s7847_s15 + $0x4c0] ss:$24 sps:$4 sm:$0xff]  }
 0x2fb   : > { %4089 = vmatpush1.bf16.msra.mxu1 %v7125_v26  ;;  %v7211_v26 = vld [vmem:[%s7847_s15 + $0x7ec] ss:$24 sps:$4 sm:$0xff]  }
 0x2fc   : > { %4253 = vmatpush1.bf16.msra.mxu0 %v7128_v27  ;;  %4090 = vmatprep.subr.bf16.mxu1 %v7133_v28  ;;  %v7214_v27 = vld [vmem:[%s7847_s15 + $0x4f4] ss:$24 sps:$4 sm:$0xff]   ;;  %v7209_v28 = vld [vmem:[%s7847_s15 + $0x7e8] ss:$24 sps:$4 sm:$0xff]  }
 0x2fd   : > { %4254 = vmatprep.subr.bf16.mxu0 %v7136_v29  ;;  %v7212_v29 = vld [vmem:[%s7847_s15 + $0x4f0] ss:$24 sps:$4 sm:$0xff]  }
 0x2ff   : > { %4091 = vmatpush1.bf16.msra.mxu1 %v7131_v32  ;;  %v7217_v32 = vld [vmem:[%s7847_s15 + $0x81c] ss:$24 sps:$4 sm:$0xff]  }
 0x300   : > { %4255 = vmatpush1.bf16.msra.mxu0 %v7134_v33  ;;  %4092 = vmatprep.subr.bf16.mxu1 %v7139_v34  ;;  %v7220_v33 = vld [vmem:[%s7847_s15 + $0x524] ss:$24 sps:$4 sm:$0xff]   ;;  %v7215_v34 = vld [vmem:[%s7847_s15 + $0x818] ss:$24 sps:$4 sm:$0xff]  }
 0x301   : > { %4256 = vmatprep.subr.bf16.mxu0 %v7142_v35  ;;  %v7218_v35 = vld [vmem:[%s7847_s15 + $0x520] ss:$24 sps:$4 sm:$0xff]  }
 0x303   : > { %4093 = vmatpush1.bf16.msra.mxu1 %v7137_v36  ;;  %v7223_v36 = vld [vmem:[%s7847_s15 + $0x84c] ss:$24 sps:$4 sm:$0xff]  }
 0x304   : > { %4257 = vmatpush1.bf16.msra.mxu0 %v7140_v37  ;;  %4094 = vmatprep.subr.bf16.mxu1 %v7145_v38  ;;  %v7226_v37 = vld [vmem:[%s7847_s15 + $0x554] ss:$24 sps:$4 sm:$0xff]   ;;  %v7221_v38 = vld [vmem:[%s7847_s15 + $0x848] ss:$24 sps:$4 sm:$0xff]  }
 0x305   : > { %4258 = vmatprep.subr.bf16.mxu0 %v7148_v39  ;;  %v7224_v39 = vld [vmem:[%s7847_s15 + $0x550] ss:$24 sps:$4 sm:$0xff]  }
 0x307   : > { %4095 = vmatpush1.bf16.msra.mxu1 %v7143_v40  ;;  %v7229_v40 = vld [vmem:[%s7847_s15 + $0x87c] ss:$24 sps:$4 sm:$0xff]  }
 0x308   : > { %4259 = vmatpush1.bf16.msra.mxu0 %v7146_v41  ;;  %4105 = vmatprep.subr.bf16.mxu1 %v7151_v43  ;;  %v7232_v41 = vld [vmem:[%s7847_s15 + $0x584] ss:$24 sps:$4 sm:$0xff]   ;;  %v7227_v43 = vld [vmem:[%s7847_s15 + $0x878] ss:$24 sps:$4 sm:$0xff]  }
 0x309   : > { %4269 = vmatprep.subr.bf16.mxu0 %v7154_v44  ;;  %v7230_v44 = vld [vmem:[%s7847_s15 + $0x580] ss:$24 sps:$4 sm:$0xff]  }
 0x30a   : > { %4097 = vmatmul.mubr.bf16.vlgmr.msra.gmra.mrb[4].mxu1 %v8146_v63 }
 0x30b   : > { %4261 = vmatmul.mubr.bf16.vlgmr.msra.gmra.mrb[4].mxu0 %v8039_v30  ;;  %4106 = vmatpush1.bf16.msra.mxu1 %v7149_v45  ;;  %v7164_v30 = vld [vmem:[%s7847_s15 + $0x370] ss:$24 sps:$4 sm:$0xff]   ;;  %v7235_v45 = vld [vmem:[%s7847_s15 + $0x8ac] ss:$24 sps:$4 sm:$0xff]  }
 0x30c   : > { %4270 = vmatpush1.bf16.msra.mxu0 %v7152_v46  ;;  %4107 = vmatprep.subr.bf16.mxu1 %v7157_v7  ;;  %v7238_v46 = vld [vmem:[%s7847_s15 + $0x5b4] ss:$24 sps:$4 sm:$0xff]   ;;  %v7233_v7 = vld [vmem:[%s7847_s15 + $0x8a8] ss:$24 sps:$4 sm:$0xff]  }
 0x30d   : > { %4271 = vmatprep.subr.bf16.mxu0 %v7160_v47  ;;  %4137 = vmatprep.mubr.bf16.mxu1 %v8017_v9  ;;  %v7236_v47 = vld [vmem:[%s7847_s15 + $0x5b0] ss:$24 sps:$4 sm:$0xff]  }
 0x30e   : > { %4301 = vmatprep.mubr.bf16.mxu0 %v8096_v16  ;;  %v7175_v16 = vld [vmem:[%s7847_s15 + $0x6cc] ss:$24 sps:$4 sm:$0xff]  }
 0x30f   : > { %4108 = vmatpush1.bf16.msra.mxu1 %v7155_v48  ;;  %v7241_v48 = vld [vmem:[%s7847_s15 + $0x8dc] ss:$24 sps:$4 sm:$0xff]  }
 0x310   : > { %4272 = vmatpush1.bf16.msra.mxu0 %v7158_v50  ;;  %4109 = vmatprep.subr.bf16.mxu1 %v7163_v51  ;;  %v7244_v50 = vld [vmem:[%s7847_s15 + $0x5e4] ss:$24 sps:$4 sm:$0xff]   ;;  %v7239_v51 = vld [vmem:[%s7847_s15 + $0x8d8] ss:$24 sps:$4 sm:$0xff]  }
 0x311   : > { %4273 = vmatprep.subr.bf16.mxu0 %v7166_v52  ;;  %v7242_v52 = vld [vmem:[%s7847_s15 + $0x5e0] ss:$24 sps:$4 sm:$0xff]  }
 0x313   : > { %4110 = vmatpush1.bf16.msra.mxu1 %v7161_v53  ;;  %v7247_v53 = vld [vmem:[%s7847_s15 + $0x90c] ss:$24 sps:$4 sm:$0xff]  }
 0x314   : > { %4274 = vmatpush1.bf16.msra.mxu0 %v7164_v30  ;;  %4111 = vmatprep.subr.bf16.mxu1 %v7169_v54  ;;  %v7250_v30 = vld [vmem:[%s7847_s15 + $0x614] ss:$24 sps:$4 sm:$0xff]   ;;  %v7245_v54 = vld [vmem:[%s7847_s15 + $0x908] ss:$24 sps:$4 sm:$0xff]  }
 0x315   : > { %4275 = vmatprep.subr.bf16.mxu0 %v7172_v55  ;;  %v7248_v55 = vld [vmem:[%s7847_s15 + $0x610] ss:$24 sps:$4 sm:$0xff]  }
 0x317   : > { %4112 = vmatpush1.bf16.msra.mxu1 %v7167_v56  ;;  %v7253_v56 = vld [vmem:[%s7847_s15 + $0x93c] ss:$24 sps:$4 sm:$0xff]  }
 0x318   : > { %4276 = vmatpush1.bf16.msra.mxu0 %v7170_v57  ;;  %4113 = vmatprep.subr.bf16.mxu1 %v7175_v16  ;;  %v7256_v57 = vld [vmem:[%s7847_s15 + $0x644] ss:$24 sps:$4 sm:$0xff]   ;;  %v7251_v16 = vld [vmem:[%s7847_s15 + $0x938] ss:$24 sps:$4 sm:$0xff]  }
 0x319   : > { %4277 = vmatprep.subr.bf16.mxu0 %v7178_v58  ;;  %v7254_v58 = vld [vmem:[%s7847_s15 + $0x640] ss:$24 sps:$4 sm:$0xff]  }
 0x31b   : > { %4114 = vmatpush1.bf16.msra.mxu1 %v7173_v59  ;;  %v7259_v59 = vld [vmem:[%s7847_s15 + $0x96c] ss:$24 sps:$4 sm:$0xff]  }
 0x31c   : > { %4278 = vmatpush1.bf16.msra.mxu0 %v7176_v60  ;;  %4115 = vmatprep.subr.bf16.mxu1 %v7181_v61  ;;  %v7262_v60 = vld [vmem:[%s7847_s15 + $0x674] ss:$24 sps:$4 sm:$0xff]   ;;  %v7260_v61 = vld [vmem:[%s7847_s15 + $0x670] ss:$24 sps:$4 sm:$0xff]  }
 0x31d   : > { %4279 = vmatprep.subr.bf16.mxu0 %v7184_v62  ;;  %v7265_v62 = vld [vmem:[%s7847_s15 + $0x99c] ss:$24 sps:$4 sm:$0xff]  }
 0x31f   : > { %4116 = vmatpush1.bf16.msra.mxu1 %v7179_v1  ;;  %v7268_v1 = vld [vmem:[%s7847_s15 + $0x6a4] ss:$24 sps:$4 sm:$0xff]  }
 0x320   : > { %4280 = vmatpush1.bf16.msra.mxu0 %v7182_v2  ;;  %4117 = vmatprep.subr.bf16.mxu1 %v7187_v4  ;;  %v7263_v2 = vld [vmem:[%s7847_s15 + $0x998] ss:$24 sps:$4 sm:$0xff]  }
 0x321   : > { %4281 = vmatprep.subr.bf16.mxu0 %v7190_v5  ;;  %v7266_v4 = vld [vmem:[%s7847_s15 + $0x6a0] ss:$24 sps:$4 sm:$0xff]   ;;  %v7274_v5 = vld [vmem:[%s7847_s15 + $0x6d4] ss:$24 sps:$4 sm:$0xff]  }
 0x323   : > { %4118 = vmatpush1.bf16.msra.mxu1 %v7185_v6  ;;  %v7269_v6 = vld [vmem:[%s7847_s15 + $0x9c8] ss:$24 sps:$4 sm:$0xff]  }
 0x324   : > { %4282 = vmatpush1.bf16.msra.mxu0 %v7188_v8  ;;  %4119 = vmatprep.subr.bf16.mxu1 %v7193_v10  ;;  %v7272_v8 = vld [vmem:[%s7847_s15 + $0x6d0] ss:$24 sps:$4 sm:$0xff]   ;;  %v7277_v10 = vld [vmem:[%s7847_s15 + $0x9fc] ss:$24 sps:$4 sm:$0xff]  }
 0x325   : > { %4283 = vmatprep.subr.bf16.mxu0 %v7196_v13  ;;  %v7280_v13 = vld [vmem:[%s7847_s15 + $0x704] ss:$24 sps:$4 sm:$0xff]  }
 0x327   : > { %4120 = vmatpush1.bf16.msra.mxu1 %v7191_v14  ;;  %v7275_v14 = vld [vmem:[%s7847_s15 + $0x9f8] ss:$24 sps:$4 sm:$0xff]  }
 0x328   : > { %4284 = vmatpush1.bf16.msra.mxu0 %v7194_v15  ;;  %4121 = vmatprep.subr.bf16.mxu1 %v7199_v17  ;;  %v7278_v15 = vld [vmem:[%s7847_s15 + $0x700] ss:$24 sps:$4 sm:$0xff]   ;;  %v7283_v17 = vld [vmem:[%s7847_s15 + $0xa2c] ss:$24 sps:$4 sm:$0xff]  }
 0x329   : > { %4285 = vmatprep.subr.bf16.mxu0 %v7202_v18  ;;  %v7286_v18 = vld [vmem:[%s7847_s15 + $0x734] ss:$24 sps:$4 sm:$0xff]  }
 0x32b   : > { %4122 = vmatpush1.bf16.msra.mxu1 %v7197_v19 }
 0x32c   : > { %4286 = vmatpush1.bf16.msra.mxu0 %v7200_v21  ;;  %4123 = vmatprep.subr.bf16.mxu1 %v7205_v22 }
 0x32d   : > { %4287 = vmatprep.subr.bf16.mxu0 %v7208_v23  ;;  %v7281_v23 = vld [vmem:[%s7847_s15 + $0xa28] ss:$24 sps:$4 sm:$0xff]  }
 0x32f   : > { %4124 = vmatpush1.bf16.msra.mxu1 %v7203_v12  ;;  %v7284_v12 = vld [vmem:[%s7847_s15 + $0x730] ss:$24 sps:$4 sm:$0xff]  }
 0x330   : > { %4288 = vmatpush1.bf16.msra.mxu0 %v7206_v24  ;;  %4125 = vmatprep.subr.bf16.mxu1 %v7211_v26  ;;  %v7289_v26 = vld [vmem:[%s7847_s15 + $0xa5c] ss:$24 sps:$4 sm:$0xff]  }
 0x331   : > { %4289 = vmatprep.subr.bf16.mxu0 %v7214_v27  ;;  %v7292_v27 = vld [vmem:[%s7847_s15 + $0x764] ss:$24 sps:$4 sm:$0xff]  }
 0x333   : > { %4126 = vmatpush1.bf16.msra.mxu1 %v7209_v28  ;;  %v7287_v28 = vld [vmem:[%s7847_s15 + $0xa58] ss:$24 sps:$4 sm:$0xff]  }
 0x334   : > { %4290 = vmatpush1.bf16.msra.mxu0 %v7212_v29  ;;  %4127 = vmatprep.subr.bf16.mxu1 %v7217_v32  ;;  %v7290_v29 = vld [vmem:[%s7847_s15 + $0x760] ss:$24 sps:$4 sm:$0xff]   ;;  %v7295_v32 = vld [vmem:[%s7847_s15 + $0xa8c] ss:$24 sps:$4 sm:$0xff]  }
 0x335   : > { %4291 = vmatprep.subr.bf16.mxu0 %v7220_v33  ;;  %v7298_v33 = vld [vmem:[%s7847_s15 + $0x794] ss:$24 sps:$4 sm:$0xff]  }
 0x337   : > { %4128 = vmatpush1.bf16.msra.mxu1 %v7215_v34  ;;  %v7293_v34 = vld [vmem:[%s7847_s15 + $0xa88] ss:$24 sps:$4 sm:$0xff]  }
 0x338   : > { %4292 = vmatpush1.bf16.msra.mxu0 %v7218_v35  ;;  %4129 = vmatprep.subr.bf16.mxu1 %v7223_v36  ;;  %v7296_v35 = vld [vmem:[%s7847_s15 + $0x790] ss:$24 sps:$4 sm:$0xff]   ;;  %v7301_v36 = vld [vmem:[%s7847_s15 + $0xabc] ss:$24 sps:$4 sm:$0xff]  }
 0x339   : > { %4293 = vmatprep.subr.bf16.mxu0 %v7226_v37  ;;  %v7304_v37 = vld [vmem:[%s7847_s15 + $0x7c4] ss:$24 sps:$4 sm:$0xff]  }
 0x33b   : > { %4130 = vmatpush1.bf16.msra.mxu1 %v7221_v38  ;;  %v7299_v38 = vld [vmem:[%s7847_s15 + $0xab8] ss:$24 sps:$4 sm:$0xff]  }
 0x33c   : > { %4294 = vmatpush1.bf16.msra.mxu0 %v7224_v39  ;;  %4131 = vmatprep.subr.bf16.mxu1 %v7229_v40  ;;  %v7302_v39 = vld [vmem:[%s7847_s15 + $0x7c0] ss:$24 sps:$4 sm:$0xff]   ;;  %v7307_v40 = vld [vmem:[%s7847_s15 + $0xaec] ss:$24 sps:$4 sm:$0xff]  }
 0x33d   : > { %4295 = vmatprep.subr.bf16.mxu0 %v7232_v41  ;;  %v7310_v41 = vld [vmem:[%s7847_s15 + $0x7f4] ss:$24 sps:$4 sm:$0xff]  }
 0x33f   : > { %4132 = vmatpush1.bf16.msra.mxu1 %v7227_v43  ;;  %v7305_v43 = vld [vmem:[%s7847_s15 + $0xae8] ss:$24 sps:$4 sm:$0xff]  }
 0x340   : > { %4296 = vmatpush1.bf16.msra.mxu0 %v7230_v44  ;;  %4133 = vmatprep.subr.bf16.mxu1 %v7235_v45  ;;  %v7308_v44 = vld [vmem:[%s7847_s15 + $0x7f0] ss:$24 sps:$4 sm:$0xff]   ;;  %v7313_v45 = vld [vmem:[%s7847_s15 + $0xb1c] ss:$24 sps:$4 sm:$0xff]  }
 0x341   : > { %4297 = vmatprep.subr.bf16.mxu0 %v7238_v46  ;;  %v7316_v46 = vld [vmem:[%s7847_s15 + $0x824] ss:$24 sps:$4 sm:$0xff]  }
 0x343   : > { %4134 = vmatpush1.bf16.msra.mxu1 %v7233_v7  ;;  %v7311_v7 = vld [vmem:[%s7847_s15 + $0xb18] ss:$24 sps:$4 sm:$0xff]  }
 0x344   : > { %4298 = vmatpush1.bf16.msra.mxu0 %v7236_v47  ;;  %4135 = vmatprep.subr.bf16.mxu1 %v7241_v48  ;;  %v7314_v47 = vld [vmem:[%s7847_s15 + $0x820] ss:$24 sps:$4 sm:$0xff]   ;;  %v7319_v48 = vld [vmem:[%s7847_s15 + $0xb4c] ss:$24 sps:$4 sm:$0xff]  }
 0x345   : > { %4299 = vmatprep.subr.bf16.mxu0 %v7244_v50  ;;  %v7322_v50 = vld [vmem:[%s7847_s15 + $0x854] ss:$24 sps:$4 sm:$0xff]  }
 0x347   : > { %4136 = vmatpush1.bf16.msra.mxu1 %v7239_v51  ;;  %v7317_v51 = vld [vmem:[%s7847_s15 + $0xb48] ss:$24 sps:$4 sm:$0xff]  }
 0x348   : > { %4300 = vmatpush1.bf16.msra.mxu0 %v7242_v52  ;;  %4146 = vmatprep.subr.bf16.mxu1 %v7247_v53  ;;  %v7320_v52 = vld [vmem:[%s7847_s15 + $0x850] ss:$24 sps:$4 sm:$0xff]   ;;  %v7325_v53 = vld [vmem:[%s7847_s15 + $0xb7c] ss:$24 sps:$4 sm:$0xff]  }
 0x349   : > { %4310 = vmatprep.subr.bf16.mxu0 %v7250_v30  ;;  %v7328_v30 = vld [vmem:[%s7847_s15 + $0x884] ss:$24 sps:$4 sm:$0xff]  }
 0x34a   : > { %4138 = vmatmul.mubr.bf16.vlgmr.msra.gmra.mrb[4].mxu1 %v8041_v31 }
 0x34b   : > { %4302 = vmatmul.mubr.bf16.vlgmr.msra.gmra.mrb[4].mxu0 %v8146_v63  ;;  %4147 = vmatpush1.bf16.msra.mxu1 %v7245_v54  ;;  %v7257_v63 = vld [vmem:[%s7847_s15 + $0x968] ss:$24 sps:$4 sm:$0xff]   ;;  %v7323_v54 = vld [vmem:[%s7847_s15 + $0xb78] ss:$24 sps:$4 sm:$0xff]  }
 0x34c   : > { %4311 = vmatpush1.bf16.msra.mxu0 %v7248_v55  ;;  %4148 = vmatprep.subr.bf16.mxu1 %v7253_v56  ;;  %v7326_v55 = vld [vmem:[%s7847_s15 + $0x880] ss:$24 sps:$4 sm:$0xff]   ;;  %v7331_v56 = vld [vmem:[%s7847_s15 + $0xbac] ss:$24 sps:$4 sm:$0xff]  }
 0x34d   : > { %4312 = vmatprep.subr.bf16.mxu0 %v7256_v57  ;;  %4178 = vmatprep.mubr.bf16.mxu1 %v8101_v20  ;;  %v7334_v57 = vld [vmem:[%s7847_s15 + $0x8b4] ss:$24 sps:$4 sm:$0xff]  }
 0x34e   : > { %4342 = vmatprep.mubr.bf16.mxu0 %v8017_v9  ;;  %v7271_v9 = vld [vmem:[%s7847_s15 + $0x9cc] ss:$24 sps:$4 sm:$0xff]  }
 0x34f   : > { %4149 = vmatpush1.bf16.msra.mxu1 %v7251_v16  ;;  %v7329_v16 = vld [vmem:[%s7847_s15 + $0xba8] ss:$24 sps:$4 sm:$0xff]  }
 0x350   : > { %4313 = vmatpush1.bf16.msra.mxu0 %v7254_v58  ;;  %4150 = vmatprep.subr.bf16.mxu1 %v7259_v59  ;;  %v7332_v58 = vld [vmem:[%s7847_s15 + $0x8b0] ss:$24 sps:$4 sm:$0xff]   ;;  %v7337_v59 = vld [vmem:[%s7847_s15 + $0xbdc] ss:$24 sps:$4 sm:$0xff]  }
 0x351   : > { %4314 = vmatprep.subr.bf16.mxu0 %v7262_v60  ;;  %v7340_v60 = vld [vmem:[%s7847_s15 + $0x8e4] ss:$24 sps:$4 sm:$0xff]  }
 0x353   : > { %4151 = vmatpush1.bf16.msra.mxu1 %v7257_v63  ;;  %v7335_v63 = vld [vmem:[%s7847_s15 + $0xbd8] ss:$24 sps:$4 sm:$0xff]  }
 0x354   : > { %4315 = vmatpush1.bf16.msra.mxu0 %v7260_v61  ;;  %4152 = vmatprep.subr.bf16.mxu1 %v7265_v62  ;;  %v7338_v61 = vld [vmem:[%s7847_s15 + $0x8e0] ss:$24 sps:$4 sm:$0xff]   ;;  %v7343_v62 = vld [vmem:[%s7847_s15 + $0xc0c] ss:$24 sps:$4 sm:$0xff]  }
 0x355   : > { %4316 = vmatprep.subr.bf16.mxu0 %v7268_v1  ;;  %v7346_v1 = vld [vmem:[%s7847_s15 + $0x914] ss:$24 sps:$4 sm:$0xff]  }
 0x357   : > { %4153 = vmatpush1.bf16.msra.mxu1 %v7263_v2  ;;  %v7341_v2 = vld [vmem:[%s7847_s15 + $0xc08] ss:$24 sps:$4 sm:$0xff]  }
 0x358   : > { %4317 = vmatpush1.bf16.msra.mxu0 %v7266_v4  ;;  %4154 = vmatprep.subr.bf16.mxu1 %v7271_v9  ;;  %v7344_v4 = vld [vmem:[%s7847_s15 + $0x910] ss:$24 sps:$4 sm:$0xff]   ;;  %v7349_v9 = vld [vmem:[%s7847_s15 + $0xc3c] ss:$24 sps:$4 sm:$0xff]  }
 0x359   : > { %4318 = vmatprep.subr.bf16.mxu0 %v7274_v5  ;;  %v7352_v5 = vld [vmem:[%s7847_s15 + $0x944] ss:$24 sps:$4 sm:$0xff]  }
 0x35b   : > { %4155 = vmatpush1.bf16.msra.mxu1 %v7269_v6  ;;  %v7347_v6 = vld [vmem:[%s7847_s15 + $0xc38] ss:$24 sps:$4 sm:$0xff]  }
 0x35c   : > { %4319 = vmatpush1.bf16.msra.mxu0 %v7272_v8  ;;  %4156 = vmatprep.subr.bf16.mxu1 %v7277_v10  ;;  %v7350_v8 = vld [vmem:[%s7847_s15 + $0x940] ss:$24 sps:$4 sm:$0xff]   ;;  %v7355_v10 = vld [vmem:[%s7847_s15 + $0xc6c] ss:$24 sps:$4 sm:$0xff]  }
 0x35d   : > { %4320 = vmatprep.subr.bf16.mxu0 %v7280_v13  ;;  %v8400_v19 = vpop.f32.mrb[0].mxu1  ;;  %v7358_v13 = vld [vmem:[%s7847_s15 + $0x974] ss:$24 sps:$4 sm:$0xff]  }
 0x35e   : > { %v8402_v21 = vpop.f32.mrb[1].mxu1 }
 0x35f   : > { %v3897_v22 = vpop.f32.mrb[2].mxu1  ;;  %4157 = vmatpush1.bf16.msra.mxu1 %v7275_v14  ;;  %v7356_v14 = vld [vmem:[%s7847_s15 + $0x970] ss:$24 sps:$4 sm:$0xff]  }
 0x360   : > { %4321 = vmatpush1.bf16.msra.mxu0 %v7278_v15  ;;  %v3898_v24 = vpop.f32.mrb[3].mxu1  ;;  %4158 = vmatprep.subr.bf16.mxu1 %v7283_v17  ;;  %v7361_v15 = vld [vmem:[%s7847_s15 + $0xc9c] ss:$24 sps:$4 sm:$0xff]   ;;  %v7362_v22 = vld [vmem:[%s7847_s15 + $0x9a0] ss:$24 sps:$4 sm:$0xff]  }
 0x361   : > { %4322 = vmatprep.subr.bf16.mxu0 %v7286_v18  ;;  %v7364_v17 = vld [vmem:[%s7847_s15 + $0x9a4] ss:$24 sps:$4 sm:$0xff]   ;;  %v7359_v18 = vld [vmem:[%s7847_s15 + $0xc98] ss:$24 sps:$4 sm:$0xff]  }
 0x362   : > { %v7368_v24 = vld [vmem:[%s7847_s15 + $0x9d0] ss:$24 sps:$4 sm:$0xff]  }
 0x363   : > { %4159 = vmatpush1.bf16.msra.mxu1 %v7281_v23  ;;  %v7370_v23 = vld [vmem:[%s7847_s15 + $0x9d4] ss:$24 sps:$4 sm:$0xff]  }
 0x364   : > { %4323 = vmatpush1.bf16.msra.mxu0 %v7284_v12  ;;  %4160 = vmatprep.subr.bf16.mxu1 %v7289_v26  ;;  %v7365_v12 = vld [vmem:[%s7847_s15 + $0xcc8] ss:$24 sps:$4 sm:$0xff]   ;;  %v7373_v26 = vld [vmem:[%s7847_s15 + $0xcfc] ss:$24 sps:$4 sm:$0xff]  }
 0x365   : > { %4324 = vmatprep.subr.bf16.mxu0 %v7292_v27  ;;  %v7376_v27 = vld [vmem:[%s7847_s15 + $0xa04] ss:$24 sps:$4 sm:$0xff]  }
 0x367   : > { %4161 = vmatpush1.bf16.msra.mxu1 %v7287_v28  ;;  %v7371_v28 = vld [vmem:[%s7847_s15 + $0xcf8] ss:$24 sps:$4 sm:$0xff]  }
 0x368   : > { %4325 = vmatpush1.bf16.msra.mxu0 %v7290_v29  ;;  %4162 = vmatprep.subr.bf16.mxu1 %v7295_v32  ;;  %v7374_v29 = vld [vmem:[%s7847_s15 + $0xa00] ss:$24 sps:$4 sm:$0xff]   ;;  %v7379_v32 = vld [vmem:[%s7847_s15 + $0xd2c] ss:$24 sps:$4 sm:$0xff]  }
 0x369   : > { %4326 = vmatprep.subr.bf16.mxu0 %v7298_v33  ;;  %v7382_v33 = vld [vmem:[%s7847_s15 + $0xa34] ss:$24 sps:$4 sm:$0xff]  }
 0x36b   : > { %4163 = vmatpush1.bf16.msra.mxu1 %v7293_v34 }
 0x36c   : > { %4327 = vmatpush1.bf16.msra.mxu0 %v7296_v35  ;;  %4164 = vmatprep.subr.bf16.mxu1 %v7301_v36 }
 0x36d   : > { %4328 = vmatprep.subr.bf16.mxu0 %v7304_v37 }
 0x36f   : > { %4165 = vmatpush1.bf16.msra.mxu1 %v7299_v38 }
 0x370   : > { %4329 = vmatpush1.bf16.msra.mxu0 %v7302_v39  ;;  %4166 = vmatprep.subr.bf16.mxu1 %v7307_v40  ;;  %v7377_v39 = vld [vmem:[%s7847_s15 + $0xd28] ss:$24 sps:$4 sm:$0xff]  }
 0x371   : > { %4330 = vmatprep.subr.bf16.mxu0 %v7310_v41  ;;  %v7380_v40 = vld [vmem:[%s7847_s15 + $0xa30] ss:$24 sps:$4 sm:$0xff]  }
 0x373   : > { %4167 = vmatpush1.bf16.msra.mxu1 %v7305_v43  ;;  %v7388_v43 = vld [vmem:[%s7847_s15 + $0xa64] ss:$24 sps:$4 sm:$0xff]  }
 0x374   : > { %4331 = vmatpush1.bf16.msra.mxu0 %v7308_v44  ;;  %4168 = vmatprep.subr.bf16.mxu1 %v7313_v45  ;;  %v7386_v45 = vld [vmem:[%s7847_s15 + $0xa60] ss:$24 sps:$4 sm:$0xff]  }
 0x375   : > { %4332 = vmatprep.subr.bf16.mxu0 %v7316_v46  ;;  %v7391_v46 = vld [vmem:[%s7847_s15 + $0xd8c] ss:$24 sps:$4 sm:$0xff]  }
 0x377   : > { %4169 = vmatpush1.bf16.msra.mxu1 %v7311_v7  ;;  %v7394_v7 = vld [vmem:[%s7847_s15 + $0xa94] ss:$24 sps:$4 sm:$0xff]  }
 0x378   : > { %4333 = vmatpush1.bf16.msra.mxu0 %v7314_v47  ;;  %4170 = vmatprep.subr.bf16.mxu1 %v7319_v48  ;;  %v7389_v47 = vld [vmem:[%s7847_s15 + $0xd88] ss:$24 sps:$4 sm:$0xff]  }
 0x379   : > { %4334 = vmatprep.subr.bf16.mxu0 %v7322_v50  ;;  %v7392_v48 = vld [vmem:[%s7847_s15 + $0xa90] ss:$24 sps:$4 sm:$0xff]   ;;  %v7397_v50 = vld [vmem:[%s7847_s15 + $0xdbc] ss:$24 sps:$4 sm:$0xff]  }
 0x37b   : > { %4171 = vmatpush1.bf16.msra.mxu1 %v7317_v51  ;;  %v7400_v51 = vld [vmem:[%s7847_s15 + $0xac4] ss:$24 sps:$4 sm:$0xff]  }
 0x37c   : > { %4335 = vmatpush1.bf16.msra.mxu0 %v7320_v52  ;;  %4172 = vmatprep.subr.bf16.mxu1 %v7325_v53  ;;  %v7395_v52 = vld [vmem:[%s7847_s15 + $0xdb8] ss:$24 sps:$4 sm:$0xff]  }
 0x37d   : > { %4336 = vmatprep.subr.bf16.mxu0 %v7328_v30  ;;  %v7398_v53 = vld [vmem:[%s7847_s15 + $0xac0] ss:$24 sps:$4 sm:$0xff]   ;;  %v7403_v30 = vld [vmem:[%s7847_s15 + $0xdec] ss:$24 sps:$4 sm:$0xff]  }
 0x37f   : > { %4173 = vmatpush1.bf16.msra.mxu1 %v7323_v54  ;;  %v7406_v54 = vld [vmem:[%s7847_s15 + $0xaf4] ss:$24 sps:$4 sm:$0xff]  }
 0x380   : > { %4337 = vmatpush1.bf16.msra.mxu0 %v7326_v55  ;;  %4174 = vmatprep.subr.bf16.mxu1 %v7331_v56  ;;  %v7401_v55 = vld [vmem:[%s7847_s15 + $0xde8] ss:$24 sps:$4 sm:$0xff]  }
 0x381   : > { %4338 = vmatprep.subr.bf16.mxu0 %v7334_v57  ;;  %v7404_v56 = vld [vmem:[%s7847_s15 + $0xaf0] ss:$24 sps:$4 sm:$0xff]   ;;  %v7409_v57 = vld [vmem:[%s7847_s15 + $0xe1c] ss:$24 sps:$4 sm:$0xff]  }
 0x383   : > { %4175 = vmatpush1.bf16.msra.mxu1 %v7329_v16  ;;  %v7412_v16 = vld [vmem:[%s7847_s15 + $0xb24] ss:$24 sps:$4 sm:$0xff]  }
 0x384   : > { %4339 = vmatpush1.bf16.msra.mxu0 %v7332_v58  ;;  %4176 = vmatprep.subr.bf16.mxu1 %v7337_v59  ;;  %v7407_v58 = vld [vmem:[%s7847_s15 + $0xe18] ss:$24 sps:$4 sm:$0xff]  }
 0x385   : > { %4340 = vmatprep.subr.bf16.mxu0 %v7340_v60  ;;  %v7410_v59 = vld [vmem:[%s7847_s15 + $0xb20] ss:$24 sps:$4 sm:$0xff]   ;;  %v7415_v60 = vld [vmem:[%s7847_s15 + $0xe4c] ss:$24 sps:$4 sm:$0xff]  }
 0x387   : > { %4177 = vmatpush1.bf16.msra.mxu1 %v7335_v63  ;;  %v7418_v63 = vld [vmem:[%s7847_s15 + $0xb54] ss:$24 sps:$4 sm:$0xff]  }
 0x388   : > { %4341 = vmatpush1.bf16.msra.mxu0 %v7338_v61  ;;  %4187 = vmatprep.subr.bf16.mxu1 %v7343_v62  ;;  %v7413_v61 = vld [vmem:[%s7847_s15 + $0xe48] ss:$24 sps:$4 sm:$0xff]  }
 0x389   : > { %4351 = vmatprep.subr.bf16.mxu0 %v7346_v1  ;;  %v7416_v62 = vld [vmem:[%s7847_s15 + $0xb50] ss:$24 sps:$4 sm:$0xff]   ;;  %v7421_v1 = vld [vmem:[%s7847_s15 + $0xe7c] ss:$24 sps:$4 sm:$0xff]  }
 0x38a   : > { %4179 = vmatmul.mubr.bf16.vlgmr.msra.gmra.mrb[4].mxu1 %v8150_v3 }
 0x38b   : > { %4343 = vmatmul.mubr.bf16.vlgmr.msra.gmra.mrb[4].mxu0 %v8041_v31  ;;  %4188 = vmatpush1.bf16.msra.mxu1 %v7341_v2  ;;  %v7353_v31 = vld [vmem:[%s7847_s15 + $0xc68] ss:$24 sps:$4 sm:$0xff]   ;;  %v7424_v2 = vld [vmem:[%s7847_s15 + $0xb84] ss:$24 sps:$4 sm:$0xff]  }
 0x38c   : > { %4352 = vmatpush1.bf16.msra.mxu0 %v7344_v4  ;;  %4189 = vmatprep.subr.bf16.mxu1 %v7349_v9  ;;  %v7419_v4 = vld [vmem:[%s7847_s15 + $0xe78] ss:$24 sps:$4 sm:$0xff]  }
 0x38d   : > { %4353 = vmatprep.subr.bf16.mxu0 %v7352_v5  ;;  %4219 = vmatprep.mubr.bf16.mxu1 %v8175_v25  ;;  %v7422_v9 = vld [vmem:[%s7847_s15 + $0xb80] ss:$24 sps:$4 sm:$0xff]   ;;  %v7427_v5 = vld [vmem:[%s7847_s15 + $0xeac] ss:$24 sps:$4 sm:$0xff]  }
 0x38e   : > { %4383 = vmatprep.mubr.bf16.mxu0 %v8101_v20  ;;  %v7367_v20 = vld [vmem:[%s7847_s15 + $0xccc] ss:$24 sps:$4 sm:$0xff]  }
 0x38f   : > { %4190 = vmatpush1.bf16.msra.mxu1 %v7347_v6  ;;  %v7430_v6 = vld [vmem:[%s7847_s15 + $0xbb4] ss:$24 sps:$4 sm:$0xff]  }
 0x390   : > { %4354 = vmatpush1.bf16.msra.mxu0 %v7350_v8  ;;  %4191 = vmatprep.subr.bf16.mxu1 %v7355_v10  ;;  %v7425_v8 = vld [vmem:[%s7847_s15 + $0xea8] ss:$24 sps:$4 sm:$0xff]  }
 0x391   : > { %4355 = vmatprep.subr.bf16.mxu0 %v7358_v13  ;;  %v7428_v10 = vld [vmem:[%s7847_s15 + $0xbb0] ss:$24 sps:$4 sm:$0xff]   ;;  %v7433_v13 = vld [vmem:[%s7847_s15 + $0xedc] ss:$24 sps:$4 sm:$0xff]  }
 0x393   : > { %4192 = vmatpush1.bf16.msra.mxu1 %v7353_v31  ;;  %v7436_v31 = vld [vmem:[%s7847_s15 + $0xbe4] ss:$24 sps:$4 sm:$0xff]  }
 0x394   : > { %4356 = vmatpush1.bf16.msra.mxu0 %v7356_v14  ;;  %4193 = vmatprep.subr.bf16.mxu1 %v7361_v15  ;;  %v7431_v14 = vld [vmem:[%s7847_s15 + $0xed8] ss:$24 sps:$4 sm:$0xff]  }
 0x395   : > { %4357 = vmatprep.subr.bf16.mxu0 %v7364_v17  ;;  %v7434_v15 = vld [vmem:[%s7847_s15 + $0xbe0] ss:$24 sps:$4 sm:$0xff]   ;;  %v7439_v17 = vld [vmem:[%s7847_s15 + $0xc14] ss:$24 sps:$4 sm:$0xff]  }
 0x397   : > { %4194 = vmatpush1.bf16.msra.mxu1 %v7359_v18  ;;  %v7437_v18 = vld [vmem:[%s7847_s15 + $0xc10] ss:$24 sps:$4 sm:$0xff]  }
 0x398   : > { %4358 = vmatpush1.bf16.msra.mxu0 %v7362_v22  ;;  %4195 = vmatprep.subr.bf16.mxu1 %v7367_v20  ;;  %v7442_v22 = vld [vmem:[%s7847_s15 + $0xc44] ss:$24 sps:$4 sm:$0xff]   ;;  %v7440_v20 = vld [vmem:[%s7847_s15 + $0xc40] ss:$24 sps:$4 sm:$0xff]  }
 0x399   : > { %4359 = vmatprep.subr.bf16.mxu0 %v7370_v23  ;;  %v7445_v23 = vld [vmem:[%s7847_s15 + $0xc74] ss:$24 sps:$4 sm:$0xff]  }
 0x39b   : > { %4196 = vmatpush1.bf16.msra.mxu1 %v7365_v12  ;;  %v7443_v12 = vld [vmem:[%s7847_s15 + $0xc70] ss:$24 sps:$4 sm:$0xff]  }
 0x39c   : > { %4360 = vmatpush1.bf16.msra.mxu0 %v7368_v24  ;;  %4197 = vmatprep.subr.bf16.mxu1 %v7373_v26  ;;  %v7448_v24 = vld [vmem:[%s7847_s15 + $0xca4] ss:$24 sps:$4 sm:$0xff]   ;;  %v7446_v26 = vld [vmem:[%s7847_s15 + $0xca0] ss:$24 sps:$4 sm:$0xff]  }
 0x39d   : > { %4361 = vmatprep.subr.bf16.mxu0 %v7376_v27  ;;  %v7449_v27 = vld [vmem:[%s7847_s15 + $0xcd0] ss:$24 sps:$4 sm:$0xff]  }
 0x39e   : > { %v4016_v34 = vpop.f32.mrb[0].mxu0 }
 0x39f   : > { %v8473_v35 = vadd.f32 %v4016_v34, %v8400_v19  ;;  %v4018_v36 = vpop.f32.mrb[1].mxu0  ;;  %4198 = vmatpush1.bf16.msra.mxu1 %v7371_v28  ;;  %v7385_v19 = vld [vmem:[%s7847_s15 + $0xd5c] ss:$24 sps:$4 sm:$0xff]   ;;  %v7452_v28 = vld [vmem:[%s7847_s15 + $0xd00] ss:$24 sps:$4 sm:$0xff]  }
 0x3a0   : > { %v8476_v37 = vadd.f32 %v4018_v36, %v8402_v21  ;;  %v4020_v38 = vpop.f32.mrb[2].mxu0  ;;  %4362 = vmatpush1.bf16.msra.mxu0 %v7374_v29  ;;  %4199 = vmatprep.subr.bf16.mxu1 %v7379_v32  ;;  %v7383_v21 = vld [vmem:[%s7847_s15 + $0xd58] ss:$24 sps:$4 sm:$0xff]   ;;  %v7457_v29 = vld [vmem:[%s7847_s15 + $0xd34] ss:$24 sps:$4 sm:$0xff]  }
 0x3a1   : > { %v4021_v41 = vpop.f32.mrb[3].mxu0  ;;  %4363 = vmatprep.subr.bf16.mxu0 %v7382_v33  ;;  %v7455_v32 = vld [vmem:[%s7847_s15 + $0xd30] ss:$24 sps:$4 sm:$0xff]   ;;  %v7460_v33 = vld [vmem:[%s7847_s15 + $0xd64] ss:$24 sps:$4 sm:$0xff]  }
 0x3a2   : > { %v4439_v44 = vcombine.low %v8473_v35, %v8476_v37  ;;  %v7458_v34 = vld [vmem:[%s7847_s15 + $0xd60] ss:$24 sps:$4 sm:$0xff]   ;;  %v7463_v36 = vld [vmem:[%s7847_s15 + $0xd94] ss:$24 sps:$4 sm:$0xff]   ;;  %v7461_v38 = vld [vmem:[%s7847_s15 + $0xd90] ss:$24 sps:$4 sm:$0xff]  }
 0x3a3   : > { %4200 = vmatpush1.bf16.msra.mxu1 %v7377_v39  ;;  %v7466_v39 = vld [vmem:[%s7847_s15 + $0xdc4] ss:$24 sps:$4 sm:$0xff]   ;;  %v7469_v41 = vld [vmem:[%s7847_s15 + $0xdf4] ss:$24 sps:$4 sm:$0xff]  }
 0x3a4   : > { %4364 = vmatpush1.bf16.msra.mxu0 %v7380_v40  ;;  %4201 = vmatprep.subr.bf16.mxu1 %v7385_v19  ;;  %v7464_v40 = vld [vmem:[%s7847_s15 + $0xdc0] ss:$24 sps:$4 sm:$0xff]   ;;  %v7467_v19 = vld [vmem:[%s7847_s15 + $0xdf0] ss:$24 sps:$4 sm:$0xff]  }
 0x3a5   : > { %4365 = vmatprep.subr.bf16.mxu0 %v7388_v43  ;;  %v7472_v43 = vld [vmem:[%s7847_s15 + $0xe24] ss:$24 sps:$4 sm:$0xff]  }
 0x3a6   : > { %v7485_v35 = vld [vmem:[%s9020_s6 + $0x40] sm:$0xff] (!%p6289_p1)  }
 0x3a7   : > { %4202 = vmatpush1.bf16.msra.mxu1 %v7383_v21  ;;  %v7470_v21 = vld [vmem:[%s7847_s15 + $0xe20] ss:$24 sps:$4 sm:$0xff]  }
 0x3a8   : > { %4366 = vmatpush1.bf16.msra.mxu0 %v7386_v45  ;;  %4203 = vmatprep.subr.bf16.mxu1 %v7391_v46  ;;  %v7475_v45 = vld [vmem:[%s7847_s15 + $0xe54] ss:$24 sps:$4 sm:$0xff]   ;;  %v7473_v46 = vld [vmem:[%s7847_s15 + $0xe50] ss:$24 sps:$4 sm:$0xff]   ;;  %v7486_v37 = vld [vmem:[%s9020_s6 + $0xc0] sm:$0xff] (!%p6289_p1)  }
 0x3a9   : > { %4367 = vmatprep.subr.bf16.mxu0 %v7394_v7  ;;  %v7478_v7 = vld [vmem:[%s7847_s15 + $0xe84] ss:$24 sps:$4 sm:$0xff]  }
 0x3ab   : > { %4204 = vmatpush1.bf16.msra.mxu1 %v7389_v47  ;;  %v7476_v47 = vld [vmem:[%s7847_s15 + $0xe80] ss:$24 sps:$4 sm:$0xff]  }
 0x3ac   : > { %4368 = vmatpush1.bf16.msra.mxu0 %v7392_v48  ;;  %4205 = vmatprep.subr.bf16.mxu1 %v7397_v50  ;;  %v7481_v48 = vld [vmem:[%s7847_s15 + $0xeb4] ss:$24 sps:$4 sm:$0xff]   ;;  %v7479_v50 = vld [vmem:[%s7847_s15 + $0xeb0] ss:$24 sps:$4 sm:$0xff]  }
 0x3ad   : > { %4369 = vmatprep.subr.bf16.mxu0 %v7400_v51  ;;  %v7484_v51 = vld [vmem:[%s7847_s15 + $0xee4] ss:$24 sps:$4 sm:$0xff]  }
 0x3af   : > { %4206 = vmatpush1.bf16.msra.mxu1 %v7395_v52  ;;  %v7482_v52 = vld [vmem:[%s7847_s15 + $0xee0] ss:$24 sps:$4 sm:$0xff]  }
 0x3b0   : > { %4370 = vmatpush1.bf16.msra.mxu0 %v7398_v53  ;;  %4207 = vmatprep.subr.bf16.mxu1 %v7403_v30  ;;  %v7711_v53 = vmov 1983009808  }
 0x3b1   : > { %4371 = vmatprep.subr.bf16.mxu0 %v7406_v54  ;;  %v4442_v30 = vunpack.c.l.s4 %v7711_v53  ;;  %v4496_v53 = vsub.s32 (!%p6289_p1), 4, %v7982_v42 }
 0x3b3   : > { %4208 = vmatpush1.bf16.msra.mxu1 %v7401_v55  ;;  %v4443_v54 = vunpack.c.0.s8 %v4442_v30  ;;  %v7517_v30 = vld [vmem:[%s9020_s6 + $0x140] sm:$0xff] (!%p6289_p1)  }
 0x3b4   : > { %4372 = vmatpush1.bf16.msra.mxu0 %v7404_v56  ;;  %4209 = vmatprep.subr.bf16.mxu1 %v7409_v57 }
 0x3b5   : > { %4373 = vmatprep.subr.bf16.mxu0 %v7412_v16  ;;  %v4446_v55 = vsub.s32 %v4443_v54, %v7982_v42  ;;  %v4528_v54 = vsub.s32 (!%p6289_p1), 5, %v7982_v42 }
 0x3b7   : > { %4210 = vmatpush1.bf16.msra.mxu1 %v7407_v58 }
 0x3b8   : > { %4374 = vmatpush1.bf16.msra.mxu0 %v7410_v59  ;;  %4211 = vmatprep.subr.bf16.mxu1 %v7415_v60  ;;  %v4447_v60 = vrot.slane %v4439_v44, %v4446_v55  ;;  %v7487_v44 = vld [vmem:[%s9020_s6] sm:$0xff] (!%p6289_p1)  }
 0x3b9   : > { %4375 = vmatprep.subr.bf16.mxu0 %v7418_v63 }
 0x3bb   : > { %4212 = vmatpush1.bf16.msra.mxu1 %v7413_v61  ;;  %v926_v61 = vld [vmem:[#allocation4] sm:$0xff] }
 0x3bc   : > { %4376 = vmatpush1.bf16.msra.mxu0 %v7416_v62  ;;  %4213 = vmatprep.subr.bf16.mxu1 %v7421_v1 }
 0x3bd   : > { %4377 = vmatprep.subr.bf16.mxu0 %v7424_v2 }
 0x3bf   : > { %4214 = vmatpush1.bf16.msra.mxu1 %v7419_v4 }
 0x3c0   : > { %4378 = vmatpush1.bf16.msra.mxu0 %v7422_v9  ;;  %4215 = vmatprep.subr.bf16.mxu1 %v7427_v5  ;;  %v927_v5 = vld [vmem:[#allocation4 + $0x8] sm:$0xf] }
 0x3c1   : > { %4379 = vmatprep.subr.bf16.mxu0 %v7430_v6 }
 0x3c3   : > { %4216 = vmatpush1.bf16.msra.mxu1 %v7425_v8 }
 0x3c4   : > { %4380 = vmatpush1.bf16.msra.mxu0 %v7428_v10  ;;  %4217 = vmatprep.subr.bf16.mxu1 %v7433_v13  ;;  %v7488_v13 = vld [vmem:[%s9020_s6 + $0x80] sm:$0xff] (!%p6289_p1)  }
 0x3c5   : > { %4381 = vmatprep.subr.bf16.mxu0 %v7436_v31  ;;  %v7489_v31 = vld [vmem:[%s9020_s6 + $0x48] sm:$0xff] (!%p6289_p1)  }
 0x3c7   : > { %4218 = vmatpush1.bf16.msra.mxu1 %v7431_v14  ;;  %v7490_v14 = vld [vmem:[%s9020_s6 + $0xc8] sm:$0xff] (!%p6289_p1)  }
 0x3c8   : > { %4382 = vmatpush1.bf16.msra.mxu0 %v7434_v15  ;;  %6470 = vmatprep.subr.bf16.mxu1 (!%p6289_p1), %v7486_v37  ;;  %v7491_v15 = vld [vmem:[%s9020_s6 + $0x8] sm:$0xff] (!%p6289_p1)  }
 0x3c9   : > { %4392 = vmatprep.subr.bf16.mxu0 %v7439_v17  ;;  %v7492_v17 = vld [vmem:[%s9020_s6 + $0x88] sm:$0xff] (!%p6289_p1)  }
 0x3ca   : > { %4220 = vmatmul.mubr.bf16.vlgmr.msra.gmra.mrb[4].mxu1 %v8234_v11 }
 0x3cb   : > { %4384 = vmatmul.mubr.bf16.vlgmr.msra.gmra.mrb[4].mxu0 %v8150_v3  ;;  %v7451_v3 = vld [vmem:[%s7847_s15 + $0xcd4] ss:$24 sps:$4 sm:$0xff]   ;;  %6471 = vmatpush3.bf16.msra.mxu1 (!%p6289_p1), %v7488_v13 }
 0x3cc   : > { %4393 = vmatpush1.bf16.msra.mxu0 %v7437_v18  ;;  %4424 = vmatprep.mubr.bf16.mxu0 %v8175_v25  ;;  %v7454_v25 = vld [vmem:[%s7847_s15 + $0xd04] ss:$24 sps:$4 sm:$0xff]   ;;  %v7493_v18 = vld [vmem:[%s9020_s6 + $0x50] sm:$0xff] (!%p6289_p1)   ;;  %v7522_v13 = vld [vmem:[%s9020_s6 + $0x1c8] sm:$0xff] (!%p6289_p1)  }
 0x3cd   : > { %4394 = vmatprep.subr.bf16.mxu0 %v7442_v22  ;;  %6472 = vmatprep.subr.bf16.mxu1 (!%p6289_p1), %v7490_v14  ;;  %v7494_v22 = vld [vmem:[%s9020_s6 + $0xd0] sm:$0xff] (!%p6289_p1)   ;;  %v7523_v14 = vld [vmem:[%s9020_s6 + $0x108] sm:$0xff] (!%p6289_p1)  }
 0x3cf   : > { %6473 = vmatpush3.bf16.msra.mxu1 (!%p6289_p1), %v7492_v17  ;;  %v7524_v17 = vld [vmem:[%s9020_s6 + $0x188] sm:$0xff] (!%p6289_p1)  }
 0x3d0   : > { %4395 = vmatpush1.bf16.msra.mxu0 %v7440_v20  ;;  %v7495_v20 = vld [vmem:[%s9020_s6 + $0x10] sm:$0xff] (!%p6289_p1)   ;;  %6474 = vmatprep.subr.bf16.mxu1 (!%p6289_p1), %v7494_v22 }
 0x3d1   : > { %4396 = vmatprep.subr.bf16.mxu0 %v7445_v23  ;;  %v7496_v23 = vld [vmem:[%s9020_s6 + $0x90] sm:$0xff] (!%p6289_p1)  }
 0x3d2   : > { %v7525_v22 = vld [vmem:[%s9020_s6 + $0x150] sm:$0xff] (!%p6289_p1)  }
 0x3d3   : > { %6475 = vmatpush3.bf16.msra.mxu1 (!%p6289_p1), %v7496_v23  ;;  %v7526_v23 = vld [vmem:[%s9020_s6 + $0x1d0] sm:$0xff] (!%p6289_p1)  }
 0x3d4   : > { %4397 = vmatpush1.bf16.msra.mxu0 %v7443_v12  ;;  %v7497_v12 = vld [vmem:[%s9020_s6 + $0x58] sm:$0xff] (!%p6289_p1)  }
 0x3d5   : > { %4398 = vmatprep.subr.bf16.mxu0 %v7448_v24  ;;  %v7498_v24 = vld [vmem:[%s9020_s6 + $0xd8] sm:$0xff] (!%p6289_p1)  }
 0x3d6   : > { %6476 = vmatprep.subr.bf16.mxu1 (!%p6289_p1), %v7498_v24  ;;  %v7527_v24 = vld [vmem:[%s9020_s6 + $0x110] sm:$0xff] (!%p6289_p1)  }
 0x3d8   : > { %4399 = vmatpush1.bf16.msra.mxu0 %v7446_v26  ;;  %v7499_v26 = vld [vmem:[%s9020_s6 + $0x18] sm:$0xff] (!%p6289_p1)  }
 0x3d9   : > { %4400 = vmatprep.subr.bf16.mxu0 %v7451_v3  ;;  %v7500_v3 = vld [vmem:[%s9020_s6 + $0x98] sm:$0xff] (!%p6289_p1)  }
 0x3da   : > { %6477 = vmatpush3.bf16.msra.mxu1 (!%p6289_p1), %v7500_v3  ;;  %v7529_v3 = vld [vmem:[%s9020_s6 + $0x158] sm:$0xff] (!%p6289_p1)  }
 0x3dc   : > { %4401 = vmatpush1.bf16.msra.mxu0 %v7449_v27  ;;  %v7501_v27 = vld [vmem:[%s9020_s6 + $0x60] sm:$0xff] (!%p6289_p1)  }
 0x3dd   : > { %4402 = vmatprep.subr.bf16.mxu0 %v7454_v25  ;;  %v7502_v25 = vld [vmem:[%s9020_s6 + $0xe0] sm:$0xff] (!%p6289_p1)  }
 0x3de   : > { %6478 = vmatprep.subr.bf16.mxu1 (!%p6289_p1), %v7502_v25  ;;  %v7531_v25 = vld [vmem:[%s9020_s6 + $0x118] sm:$0xff] (!%p6289_p1)  }
 0x3e0   : > { %4403 = vmatpush1.bf16.msra.mxu0 %v7452_v28  ;;  %v7503_v28 = vld [vmem:[%s9020_s6 + $0x20] sm:$0xff] (!%p6289_p1)  }
 0x3e1   : > { %4404 = vmatprep.subr.bf16.mxu0 %v7457_v29  ;;  %v7504_v29 = vld [vmem:[%s9020_s6 + $0xa0] sm:$0xff] (!%p6289_p1)  }
 0x3e2   : > { %6479 = vmatpush3.bf16.msra.mxu1 (!%p6289_p1), %v7504_v29  ;;  %v7533_v29 = vld [vmem:[%s9020_s6 + $0x160] sm:$0xff] (!%p6289_p1)  }
 0x3e4   : > { %4405 = vmatpush1.bf16.msra.mxu0 %v7455_v32  ;;  %v7505_v32 = vld [vmem:[%s9020_s6 + $0x68] sm:$0xff] (!%p6289_p1)  }
 0x3e5   : > { %4406 = vmatprep.subr.bf16.mxu0 %v7460_v33  ;;  %v7506_v33 = vld [vmem:[%s9020_s6 + $0xe8] sm:$0xff] (!%p6289_p1)  }
 0x3e6   : > { %6480 = vmatprep.subr.bf16.mxu1 (!%p6289_p1), %v7506_v33  ;;  %v7535_v33 = vld [vmem:[%s9020_s6 + $0x120] sm:$0xff] (!%p6289_p1)  }
 0x3e8   : > { %4407 = vmatpush1.bf16.msra.mxu0 %v7458_v34  ;;  %v7507_v34 = vld [vmem:[%s9020_s6 + $0x28] sm:$0xff] (!%p6289_p1)  }
 0x3e9   : > { %4408 = vmatprep.subr.bf16.mxu0 %v7463_v36  ;;  %v7508_v36 = vld [vmem:[%s9020_s6 + $0xa8] sm:$0xff] (!%p6289_p1)  }
 0x3ea   : > { %6481 = vmatpush3.bf16.msra.mxu1 (!%p6289_p1), %v7508_v36  ;;  %v7537_v36 = vld [vmem:[%s9020_s6 + $0x168] sm:$0xff] (!%p6289_p1)  }
 0x3ec   : > { %4409 = vmatpush1.bf16.msra.mxu0 %v7461_v38  ;;  %v7509_v38 = vld [vmem:[%s9020_s6 + $0x70] sm:$0xff] (!%p6289_p1)  }
 0x3ed   : > { %4410 = vmatprep.subr.bf16.mxu0 %v7466_v39  ;;  %v7510_v39 = vld [vmem:[%s9020_s6 + $0xf0] sm:$0xff] (!%p6289_p1)  }
 0x3ee   : > { %6482 = vmatprep.subr.bf16.mxu1 (!%p6289_p1), %v7510_v39  ;;  %v7539_v39 = vld [vmem:[%s9020_s6 + $0x128] sm:$0xff] (!%p6289_p1)  }
 0x3f0   : > { %4411 = vmatpush1.bf16.msra.mxu0 %v7464_v40  ;;  %v7511_v40 = vld [vmem:[%s9020_s6 + $0x30] sm:$0xff] (!%p6289_p1)  }
 0x3f1   : > { %4412 = vmatprep.subr.bf16.mxu0 %v7469_v41  ;;  %v7512_v41 = vld [vmem:[%s9020_s6 + $0xb0] sm:$0xff] (!%p6289_p1)  }
 0x3f2   : > { %6483 = vmatpush3.bf16.msra.mxu1 (!%p6289_p1), %v7512_v41  ;;  %v7541_v41 = vld [vmem:[%s9020_s6 + $0x170] sm:$0xff] (!%p6289_p1)  }
 0x3f4   : > { %4413 = vmatpush1.bf16.msra.mxu0 %v7467_v19  ;;  %v7513_v19 = vld [vmem:[%s9020_s6 + $0x78] sm:$0xff] (!%p6289_p1)  }
 0x3f5   : > { %4414 = vmatprep.subr.bf16.mxu0 %v7472_v43  ;;  %v7514_v43 = vld [vmem:[%s9020_s6 + $0xf8] sm:$0xff] (!%p6289_p1)  }
 0x3f6   : > { %6484 = vmatprep.subr.bf16.mxu1 (!%p6289_p1), %v7514_v43  ;;  %v7543_v43 = vld [vmem:[%s9020_s6 + $0x130] sm:$0xff] (!%p6289_p1)  }
 0x3f8   : > { %4415 = vmatpush1.bf16.msra.mxu0 %v7470_v21  ;;  %v7515_v21 = vld [vmem:[%s9020_s6 + $0x38] sm:$0xff] (!%p6289_p1)  }
 0x3f9   : > { %4416 = vmatprep.subr.bf16.mxu0 %v7475_v45  ;;  %v4492_v45 = vsub.s32 (!%p6289_p1), 2, %v7982_v42 }
 0x3fc   : > { %4417 = vmatpush1.bf16.msra.mxu0 %v7473_v46  ;;  %v7516_v46 = vld [vmem:[%s9020_s6 + $0xb8] sm:$0xff] (!%p6289_p1)  }
 0x3fd   : > { %4418 = vmatprep.subr.bf16.mxu0 %v7478_v7  ;;  %v8657_v7 = vsub.s32 (!%p6289_p1), 3, %v7982_v42  ;;  %6485 = vmatpush3.bf16.msra.mxu1 (!%p6289_p1), %v7516_v46  ;;  %v7545_v46 = vld [vmem:[%s9020_s6 + $0x178] sm:$0xff] (!%p6289_p1)  }
 0x400   : > { %4419 = vmatpush1.bf16.msra.mxu0 %v7476_v47 }
 0x401   : > { %4420 = vmatprep.subr.bf16.mxu0 %v7481_v48  ;;  %v4476_v48 = vld [vmem:[%s9019_s5] sm:$0xff] (!%p6289_p1) }
 0x404   : > { %4421 = vmatpush1.bf16.msra.mxu0 %v7479_v50  ;;  %v4500_v50 = vsub.s32 (!%p6289_p1), 6, %v7982_v42 }
 0x405   : > { %4422 = vmatprep.subr.bf16.mxu0 %v7484_v51  ;;  %v4532_v51 = vsub.s32 (!%p6289_p1), 7, %v7982_v42 }
 0x408   : > { %4423 = vmatpush1.bf16.msra.mxu0 %v7482_v52 }
 0x409   : > { %6448 = vmatprep.subr.bf16.mxu0 (!%p6289_p1), %v7485_v35  ;;  %v7521_v35 = vld [vmem:[%s9020_s6 + $0x148] sm:$0xff] (!%p6289_p1)  }
 0x40b   : > { %4425 = vmatmul.mubr.bf16.vlgmr.msra.gmra.mrb[4].mxu0 %v8234_v11 }
 0x40c   : > { %6449 = vmatpush3.bf16.msra.mxu0 (!%p6289_p1), %v7487_v44 }
 0x40d   : > { %6450 = vmatprep.subr.bf16.mxu0 (!%p6289_p1), %v7489_v31 }
 0x410   : > { %6451 = vmatpush3.bf16.msra.mxu0 (!%p6289_p1), %v7491_v15 }
 0x411   : > { %6452 = vmatprep.subr.bf16.mxu0 (!%p6289_p1), %v7493_v18 }
 0x414   : > { %6453 = vmatpush3.bf16.msra.mxu0 (!%p6289_p1), %v7495_v20 }
 0x415   : > { %6454 = vmatprep.subr.bf16.mxu0 (!%p6289_p1), %v7497_v12 }
 0x418   : > { %6455 = vmatpush3.bf16.msra.mxu0 (!%p6289_p1), %v7499_v26  ;;  %v7528_v26 = vld [vmem:[%s9020_s6 + $0x190] sm:$0xff] (!%p6289_p1)  }
 0x419   : > { %6456 = vmatprep.subr.bf16.mxu0 (!%p6289_p1), %v7501_v27  ;;  %v7530_v27 = vld [vmem:[%s9020_s6 + $0x1d8] sm:$0xff] (!%p6289_p1)  }
 0x41c   : > { %6457 = vmatpush3.bf16.msra.mxu0 (!%p6289_p1), %v7503_v28  ;;  %v7532_v28 = vld [vmem:[%s9020_s6 + $0x198] sm:$0xff] (!%p6289_p1)  }
 0x41d   : > { %6458 = vmatprep.subr.bf16.mxu0 (!%p6289_p1), %v7505_v32  ;;  %v7534_v32 = vld [vmem:[%s9020_s6 + $0x1e0] sm:$0xff] (!%p6289_p1)  }
 0x420   : > { %6459 = vmatpush3.bf16.msra.mxu0 (!%p6289_p1), %v7507_v34  ;;  %v7536_v34 = vld [vmem:[%s9020_s6 + $0x1a0] sm:$0xff] (!%p6289_p1)  }
 0x421   : > { %6460 = vmatprep.subr.bf16.mxu0 (!%p6289_p1), %v7509_v38  ;;  %v7538_v38 = vld [vmem:[%s9020_s6 + $0x1e8] sm:$0xff] (!%p6289_p1)  }
 0x424   : > { %6461 = vmatpush3.bf16.msra.mxu0 (!%p6289_p1), %v7511_v40  ;;  %v7540_v40 = vld [vmem:[%s9020_s6 + $0x1a8] sm:$0xff] (!%p6289_p1)  }
 0x425   : > { %6462 = vmatprep.subr.bf16.mxu0 (!%p6289_p1), %v7513_v19  ;;  %v7542_v19 = vld [vmem:[%s9020_s6 + $0x1f0] sm:$0xff] (!%p6289_p1)  }
 0x428   : > { %6463 = vmatpush3.bf16.msra.mxu0 (!%p6289_p1), %v7515_v21  ;;  %v7544_v21 = vld [vmem:[%s9020_s6 + $0x1b0] sm:$0xff] (!%p6289_p1)  }
 0x429   : > { %6492 = vmatprep.subr.bf16.mxu0 (!%p6289_p1), %v7517_v30 }
 0x49d   : > { %v4221_v56 = vpop.f32.mrb[4].mxu1 }
 0x49e   : > { %v4223_v57 = vpop.f32.mrb[5].mxu1 }
 0x49f   : > { %v4440_v16 = vcombine.low %v4221_v56, %v4223_v57  ;;  %v4225_v58 = vpop.f32.mrb[6].mxu1 }
 0x4a0   : > { %v4226_v59 = vpop.f32.mrb[7].mxu1 }
 0x4a1   : > { %v4454_v63 = vrot.slane %v4440_v16, %v4446_v55 }
 0x4a3   : > { %v4455_v62 = vcombine.low %v4447_v60, %v4454_v63 }
 0x4a5   : > { %v4466_v1 = vadd.f32 %v4455_v62, %v926_v61 }
 0x4a7   : > { %4468 = vst [vmem:[#allocation4] sm:$0xff] %v4466_v1  ;;  %v7519_v1 = vld [vmem:[%s9020_s6 + $0x100] sm:$0xff] (!%p6289_p1)  }
 0x4ae   : > { %v4474_v47 = vld [vmem:[#allocation4] sm:$0xff] (!%p6289_p1) }
 0x4af   : > { %v4478_v52 = vadd.f32 (!%p6289_p1), %v4476_v48, %v4474_v47  ;;  %v7546_v47 = vld [vmem:[%s9020_s6 + $0x1f8] sm:$0xff] (!%p6289_p1)  }
 0x4b1   : > { %v4480_v56 = vmax.f32 (!%p6289_p1), %v4478_v52, 0.0  ;;  %v4477_v52 = vld [vmem:[%s9019_s5 + $0x8] sm:$0xf] (!%p6289_p1) }
 0x4b3   : > { %v4493_v57 = vrot.slane (!%p6289_p1), %v4480_v56, %v4492_v45  ;;  %v4555_v16 = vrot.slane (!%p6289_p1), %v4480_v56, %v8657_v7  ;;  %v8675_v58 = vrot.slane (!%p6289_p1), %v4480_v56, %v4500_v50  ;;  %v4563_v59 = vrot.slane (!%p6289_p1), %v4480_v56, %v4532_v51 }
 0x4b4   : > { %v8680_v60 = vrot.slane (!%p6289_p1), %v4480_v56, %v8006_v0  ;;  %v4551_v63 = vrot.slane (!%p6289_p1), %v4480_v56, %v7991_v49  ;;  %v4497_v61 = vrot.slane (!%p6289_p1), %v4480_v56, %v4496_v53  ;;  %v4559_v62 = vrot.slane (!%p6289_p1), %v4480_v56, %v4528_v54  ;;  %v7547_v53 = vld [vmem:[%s9020_s6 + $0x138] sm:$0xff] (!%p6289_p1)  }
 0x4de   : > { %v4426_v11 = vpop.f32.mrb[4].mxu0 }
 0x4df   : > { %v4428_v2 = vpop.f32.mrb[5].mxu0 }
 0x4e0   : > { %v4456_v4 = vcombine.low %v4426_v11, %v4428_v2  ;;  %v4430_v9 = vpop.f32.mrb[6].mxu0  ;;  %4473 = sbr.rel (%p6289_p1) target bundleno = 1540 (0x604), region = 60  ;;  %v4579_v11 = vsel (!%p6289_p1), %vm915_vm4, %v4493_v57, %v4555_v16  ;;  %v4581_v2 = vsel (!%p6289_p1), %vm915_vm4, %v8675_v58, %v4563_v59  ;;  %v7549_v16 = vld [vmem:[%s9020_s6 + $0x240] sm:$0xff] (!%p6289_p1)  }
 0x4e1   : > { %v4431_v6 = vpop.f32.mrb[7].mxu0  ;;  %v8692_v9 = vsub.f32 (!%p6289_p1), 0.0, %v4480_v56  ;;  %v7550_v59 = vld [vmem:[%s9020_s6 + $0x2c0] sm:$0xff] (!%p6289_p1)  }
 0x4e2   : > { %v4463_v8 = vrot.slane %v4456_v4, %v4446_v55  ;;  %v7518_v55 = vld [vmem:[%s9020_s6 + $0x1c0] sm:$0xff] (!%p6289_p1)   ;;  %v4593_v6 = vpack.c.bf16 (!%p6289_p1), %v4581_v2, %v4581_v2 }
 0x4e3   : > { %6514 = vmatprep.subr.bf16.mxu1 (!%p6289_p1), %v7518_v55  ;;  %v7520_v4 = vld [vmem:[%s9020_s6 + $0x180] sm:$0xff] (!%p6289_p1)   ;;  %v4525_v31 = vrot.slane (!%p6289_p1), %v8692_v9, %v8657_v7  ;;  %v4529_v15 = vrot.slane (!%p6289_p1), %v8692_v9, %v4528_v54  ;;  %v4521_v50 = vrot.slane (!%p6289_p1), %v8692_v9, %v7991_v49  ;;  %v7548_v54 = vld [vmem:[%s9020_s6 + $0x1b8] sm:$0xff] (!%p6289_p1)   ;;  %v4533_v55 = vrot.slane (!%p6289_p1), %v8692_v9, %v4532_v51 }
 0x4e4   : > { %v4467_v10 = vadd.f32 %v4463_v8, %v927_v5  ;;  %v4591_v5 = vpack.c.bf16 (!%p6289_p1), %v4579_v11, %v4579_v11  ;;  %v4578_v8 = vsel (!%p6289_p1), %vm915_vm4, %v8680_v60, %v4551_v63  ;;  %5443 = vmatprep.mubr.bf16.mxu1 (!%p6289_p1), %v4593_v6  ;;  %v7552_v2 = vld [vmem:[%s9020_s6 + $0x280] sm:$0xff] (!%p6289_p1)   ;;  %v7553_v6 = vld [vmem:[%s9020_s6 + $0x248] sm:$0xff] (!%p6289_p1)  }
 0x4e5   : > { %v4590_v37 = vpack.c.bf16 (!%p6289_p1), %v4578_v8, %v4578_v8  ;;  %v4585_v18 = vsel (!%p6289_p1), %vm915_vm4, %v4525_v31, %v4493_v57  ;;  %v8720_v12 = vsel (!%p6289_p1), %vm915_vm4, %v4529_v15, %v4497_v61  ;;  %v4584_v57 = vsel (!%p6289_p1), %vm915_vm4, %v4521_v50, %v8680_v60  ;;  %v7559_v31 = vld [vmem:[%s9020_s6 + $0x210] sm:$0xff] (!%p6289_p1)   ;;  %v7562_v15 = vld [vmem:[%s9020_s6 + $0x2d8] sm:$0xff] (!%p6289_p1)  }
 0x4e6   : > { %4469 = vst [vmem:[#allocation4 + $0x8] sm:$0xf] %v4467_v10  ;;  %v4580_v10 = vsel (!%p6289_p1), %vm915_vm4, %v4497_v61, %v4559_v62  ;;  %5403 = vmatprep.mubr.bf16.mxu0 (!%p6289_p1), %v4591_v5  ;;  %v4597_v20 = vpack.c.bf16 (!%p6289_p1), %v4585_v18, %v4585_v18  ;;  %v4596_v62 = vpack.c.bf16 (!%p6289_p1), %v4584_v57, %v4584_v57  ;;  %v7563_v18 = vld [vmem:[%s9020_s6 + $0x218] sm:$0xff] (!%p6289_p1)  }
 0x4e7   : > { %v4592_v44 = vpack.c.bf16 %v4580_v10, %v4580_v10  ;;  %5404 = vmatmul.mubr.bf16.vlgmr.msra.gmra.mrb[0].mxu0 %v4590_v37  ;;  %v4587_v42 = vsel %vm915_vm4, %v4533_v55, %v8675_v58  ;;  %v7554_v58 = vld [vmem:[%s9020_s6 + $0x2c8] sm:$0xff]  }
 0x4e8   : > { %6493 = vmatpush3.bf16.msra.mxu0 %v7519_v1  ;;  %v7551_v1 = vld [vmem:[%s9020_s6 + $0x200] sm:$0xff]   ;;  %v4599_v8 = vpack.c.bf16 %v4587_v42, %v4587_v42  ;;  %v7555_v10 = vld [vmem:[%s9020_s6 + $0x208] sm:$0xff]  }
 0x4e9   : > { %5444 = vmatmul.mubr.bf16.vlgmr.msra.gmra.mrb[0].mxu1 %v4592_v44  ;;  %6494 = vmatprep.subr.bf16.mxu0 %v7521_v35  ;;  %v7556_v37 = vld [vmem:[%s9020_s6 + $0x288] sm:$0xff]   ;;  %v7558_v44 = vld [vmem:[%s9020_s6 + $0x2d0] sm:$0xff]  }
 0x4ea   : > { %6515 = vmatpush3.bf16.msra.mxu1 %v7520_v4  ;;  %5523 = vmatprep.mubr.bf16.mxu1 %v4597_v20  ;;  %v7566_v20 = vld [vmem:[%s9020_s6 + $0x2e0] sm:$0xff]  }
 0x4eb   : > { %6516 = vmatprep.subr.bf16.mxu1 %v7522_v13  ;;  %v7557_v13 = vld [vmem:[%s9020_s6 + $0x250] sm:$0xff]  }
 0x4ec   : > { %6495 = vmatpush3.bf16.msra.mxu0 %v7523_v14  ;;  %v7560_v14 = vld [vmem:[%s9020_s6 + $0x290] sm:$0xff]  }
 0x4ed   : > { %6496 = vmatprep.subr.bf16.mxu0 %v7525_v22  ;;  %v4475_v48 = vld [vmem:[#allocation4 + $0x8] sm:$0xf]  ;;  %v7564_v22 = vld [vmem:[%s9020_s6 + $0x298] sm:$0xff]  }
 0x4ee   : > { %6517 = vmatpush3.bf16.msra.mxu1 %v7524_v17  ;;  %v4479_v30 = vadd.f32 %v4477_v52, %v4475_v48  ;;  %v7561_v17 = vld [vmem:[%s9020_s6 + $0x258] sm:$0xff]  }
 0x4ef   : > { %6518 = vmatprep.subr.bf16.mxu1 %v7526_v23  ;;  %v7565_v23 = vld [vmem:[%s9020_s6 + $0x260] sm:$0xff]  }
 0x4f0   : > { %6497 = vmatpush3.bf16.msra.mxu0 %v7527_v24  ;;  %v8796_v56 = vmax.f32 %v4479_v30, 0.0  ;;  %v7567_v24 = vld [vmem:[%s9020_s6 + $0x220] sm:$0xff]  }
 0x4f1   : > { %6498 = vmatprep.subr.bf16.mxu0 %v7529_v3  ;;  %v7570_v3 = vld [vmem:[%s9020_s6 + $0x2e8] sm:$0xff]  }
 0x4f2   : > { %6519 = vmatpush3.bf16.msra.mxu1 %v7528_v26  ;;  %v4509_v51 = vrot.slane %v8796_v56, %v4492_v45  ;;  %v4571_v63 = vrot.slane %v8796_v56, %v8657_v7  ;;  %v8813_v60 = vrot.slane %v8796_v56, %v8006_v0  ;;  %v4567_v61 = vrot.slane %v8796_v56, %v7991_v49  ;;  %v7568_v26 = vld [vmem:[%s9020_s6 + $0x2a0] sm:$0xff]  }
 0x4f3   : > { %6520 = vmatprep.subr.bf16.mxu1 %v7530_v27  ;;  %v4483_v45 = vsub.f32 0.0, %v8796_v56  ;;  %v7569_v27 = vld [vmem:[%s9020_s6 + $0x268] sm:$0xff]  }
 0x4f4   : > { %6499 = vmatpush3.bf16.msra.mxu0 %v7531_v25  ;;  %v4583_v11 = vsel %vm915_vm4, %v4509_v51, %v4571_v63  ;;  %v4582_v0 = vsel %vm915_vm4, %v8813_v60, %v4567_v61  ;;  %v7571_v25 = vld [vmem:[%s9020_s6 + $0x228] sm:$0xff]  }
 0x4f5   : > { %6500 = vmatprep.subr.bf16.mxu0 %v7533_v29  ;;  %v4595_v4 = vpack.c.bf16 %v4583_v11, %v4583_v11  ;;  %v4594_v9 = vpack.c.bf16 %v4582_v0, %v4582_v0  ;;  %v4541_v5 = vrot.slane %v4483_v45, %v8657_v7  ;;  %v7574_v29 = vld [vmem:[%s9020_s6 + $0x2f0] sm:$0xff]  }
 0x4f6   : > { %6521 = vmatpush3.bf16.msra.mxu1 %v7532_v28  ;;  %v7572_v28 = vld [vmem:[%s9020_s6 + $0x2a8] sm:$0xff]  }
 0x4f7   : > { %6522 = vmatprep.subr.bf16.mxu1 %v7534_v32  ;;  %5483 = vmatprep.mubr.bf16.mxu0 %v4595_v4  ;;  %v4589_v35 = vsel %vm915_vm4, %v4541_v5, %v4509_v51  ;;  %v7573_v32 = vld [vmem:[%s9020_s6 + $0x270] sm:$0xff]  }
 0x4f8   : > { %6501 = vmatpush3.bf16.msra.mxu0 %v7535_v33  ;;  %v4601_v7 = vpack.c.bf16 %v4589_v35, %v4589_v35  ;;  %v7576_v33 = vld [vmem:[%s9020_s6 + $0x2b0] sm:$0xff]  }
 0x4f9   : > { %6502 = vmatprep.subr.bf16.mxu0 %v7537_v36  ;;  %v7575_v36 = vld [vmem:[%s9020_s6 + $0x230] sm:$0xff]  }
 0x4fa   : > { %6523 = vmatpush3.bf16.msra.mxu1 %v7536_v34  ;;  %v4537_v34 = vrot.slane %v4483_v45, %v7991_v49  ;;  %v7580_v49 = vld [vmem:[%s9020_s6 + $0x2b8] sm:$0xff]  }
 0x4fb   : > { %6524 = vmatprep.subr.bf16.mxu1 %v7538_v38  ;;  %v7578_v38 = vld [vmem:[%s9020_s6 + $0x2f8] sm:$0xff]  }
 0x4fc   : > { %6503 = vmatpush3.bf16.msra.mxu0 %v7539_v39  ;;  %v7577_v39 = vld [vmem:[%s9020_s6 + $0x278] sm:$0xff]  }
 0x4fd   : > { %6504 = vmatprep.subr.bf16.mxu0 %v7541_v41  ;;  %v7579_v41 = vld [vmem:[%s9020_s6 + $0x238] sm:$0xff]  }
 0x4fe   : > { %6525 = vmatpush3.bf16.msra.mxu1 %v7540_v40  ;;  %v4588_v40 = vsel %vm915_vm4, %v4537_v34, %v8813_v60 }
 0x4ff   : > { %6526 = vmatprep.subr.bf16.mxu1 %v7542_v19  ;;  %v4600_v19 = vpack.c.bf16 %v4588_v40, %v4588_v40 }
 0x500   : > { %6505 = vmatpush3.bf16.msra.mxu0 %v7543_v43  ;;  %v4598_v43 = vpack.c.bf16 %v8720_v12, %v8720_v12 }
 0x501   : > { %6506 = vmatprep.subr.bf16.mxu0 %v7545_v46 }
 0x502   : > { %6527 = vmatpush3.bf16.msra.mxu1 %v7544_v21 }
 0x503   : > { %6528 = vmatprep.subr.bf16.mxu1 %v7546_v47  ;;  %v4794_v47 = vld [vmem:[%s9021_s7] sm:$0x3] }
 0x504   : > { %6507 = vmatpush3.bf16.msra.mxu0 %v7547_v53 }
 0x505   : > { %6536 = vmatprep.subr.bf16.mxu0 %v7549_v16 }
 0x506   : > { %6529 = vmatpush3.bf16.msra.mxu1 %v7548_v54 }
 0x507   : > { %6558 = vmatprep.subr.bf16.mxu1 %v7550_v59  ;;  %5484 = vmatmul.mubr.bf16.vlgmr.msra.gmra.mrb[4].mxu0 %v4594_v9 }
 0x508   : > { %6537 = vmatpush3.bf16.msra.mxu0 %v7551_v1  ;;  %5563 = vmatprep.mubr.bf16.mxu0 %v4599_v8 }
 0x509   : > { %5524 = vmatmul.mubr.bf16.vlgmr.msra.gmra.mrb[4].mxu1 %v4596_v62  ;;  %6538 = vmatprep.subr.bf16.mxu0 %v7553_v6 }
 0x50a   : > { %6559 = vmatpush3.bf16.msra.mxu1 %v7552_v2  ;;  %5603 = vmatprep.mubr.bf16.mxu1 %v4601_v7 }
 0x50b   : > { %6560 = vmatprep.subr.bf16.mxu1 %v7554_v58 }
 0x50c   : > { %6539 = vmatpush3.bf16.msra.mxu0 %v7555_v10 }
 0x50d   : > { %6540 = vmatprep.subr.bf16.mxu0 %v7557_v13 }
 0x50e   : > { %6561 = vmatpush3.bf16.msra.mxu1 %v7556_v37 }
 0x50f   : > { %6562 = vmatprep.subr.bf16.mxu1 %v7558_v44 }
 0x510   : > { %6541 = vmatpush3.bf16.msra.mxu0 %v7559_v31 }
 0x511   : > { %6542 = vmatprep.subr.bf16.mxu0 %v7561_v17 }
 0x512   : > { %6563 = vmatpush3.bf16.msra.mxu1 %v7560_v14 }
 0x513   : > { %6564 = vmatprep.subr.bf16.mxu1 %v7562_v15 }
 0x514   : > { %6543 = vmatpush3.bf16.msra.mxu0 %v7563_v18 }
 0x515   : > { %6544 = vmatprep.subr.bf16.mxu0 %v7565_v23 }
 0x516   : > { %6565 = vmatpush3.bf16.msra.mxu1 %v7564_v22 }
 0x517   : > { %6566 = vmatprep.subr.bf16.mxu1 %v7566_v20 }
 0x518   : > { %6545 = vmatpush3.bf16.msra.mxu0 %v7567_v24 }
 0x519   : > { %6546 = vmatprep.subr.bf16.mxu0 %v7569_v27 }
 0x51a   : > { %6567 = vmatpush3.bf16.msra.mxu1 %v7568_v26 }
 0x51b   : > { %6568 = vmatprep.subr.bf16.mxu1 %v7570_v3 }
 0x51c   : > { %6547 = vmatpush3.bf16.msra.mxu0 %v7571_v25 }
 0x51d   : > { %6548 = vmatprep.subr.bf16.mxu0 %v7573_v32 }
 0x51e   : > { %6569 = vmatpush3.bf16.msra.mxu1 %v7572_v28 }
 0x51f   : > { %6570 = vmatprep.subr.bf16.mxu1 %v7574_v29 }
 0x520   : > { %6549 = vmatpush3.bf16.msra.mxu0 %v7575_v36 }
 0x521   : > { %6550 = vmatprep.subr.bf16.mxu0 %v7577_v39 }
 0x522   : > { %6571 = vmatpush3.bf16.msra.mxu1 %v7576_v33 }
 0x523   : > { %6572 = vmatprep.subr.bf16.mxu1 %v7578_v38 }
 0x524   : > { %6551 = vmatpush3.bf16.msra.mxu0 %v7579_v41 }
 0x526   : > { %6573 = vmatpush3.bf16.msra.mxu1 %v7580_v49 }
 0x527   : > { %5564 = vmatmul.mubr.bf16.vlgmr.msra.gmra.mrb[8].mxu0 %v4598_v43 }
 0x529   : > { %5604 = vmatmul.mubr.bf16.vlgmr.msra.gmra.mrb[8].mxu1 %v4600_v19 }
 0x5ba   : > { %v6464_v21 = vpop.f32.mrb[0].mxu0 }
 0x5bb   : > { %v6465_v48 = vpop.f32.mrb[1].mxu0 }
 0x5bc   : > { %v6486_v46 = vpop.f32.mrb[0].mxu1  ;;  %v6466_v52 = vadd.f32 %v6465_v48, %v6464_v21  ;;  %v6467_v30 = vpop.f32.mrb[2].mxu0 }
 0x5bd   : > { %v6487_v50 = vpop.f32.mrb[1].mxu1  ;;  %v6468_v55 = vpop.f32.mrb[3].mxu0 }
 0x5be   : > { %v6488_v53 = vadd.f32 %v6487_v50, %v6486_v46  ;;  %v6489_v54 = vpop.f32.mrb[2].mxu1  ;;  %v5406_v57 = vadd.f32 %v6466_v52, %v4794_v47 }
 0x5bf   : > { %v6490_v56 = vpop.f32.mrb[3].mxu1 }
 0x5c0   : > { %v5446_v16 = vadd.f32 %v6488_v53, %v5406_v57 }
 0x5da   : > { %v6508_v59 = vpop.f32.mrb[4].mxu0 }
 0x5db   : > { %v6509_v63 = vpop.f32.mrb[5].mxu0 }
 0x5dc   : > { %v6530_v12 = vpop.f32.mrb[4].mxu1  ;;  %v6510_v62 = vadd.f32 %v6509_v63, %v6508_v59  ;;  %v6511_v1 = vpop.f32.mrb[6].mxu0 }
 0x5dd   : > { %v6531_v51 = vpop.f32.mrb[5].mxu1  ;;  %v6512_v45 = vpop.f32.mrb[7].mxu0 }
 0x5de   : > { %v6532_v60 = vadd.f32 %v6531_v51, %v6530_v12  ;;  %v6533_v61 = vpop.f32.mrb[6].mxu1  ;;  %v5486_v11 = vadd.f32 %v6510_v62, %v5446_v16 }
 0x5df   : > { %v6534_v42 = vpop.f32.mrb[7].mxu1 }
 0x5e0   : > { %v5526_v0 = vadd.f32 %v6532_v60, %v5486_v11 }
 0x5fa   : > { %v6552_v4 = vpop.f32.mrb[8].mxu0 }
 0x5fb   : > { %v6553_v58 = vpop.f32.mrb[9].mxu0 }
 0x5fc   : > { %v6574_v2 = vpop.f32.mrb[8].mxu1  ;;  %v6554_v8 = vadd.f32 %v6553_v58, %v6552_v4  ;;  %v6555_v10 = vpop.f32.mrb[10].mxu0 }
 0x5fd   : > { %v6575_v9 = vpop.f32.mrb[9].mxu1  ;;  %v6556_v37 = vpop.f32.mrb[11].mxu0 }
 0x5fe   : > { %v6576_v5 = vadd.f32 %v6575_v9, %v6574_v2  ;;  %v6577_v6 = vpop.f32.mrb[10].mxu1  ;;  %v5566_v7 = vadd.f32 %v6554_v8, %v5526_v0 }
 0x5ff   : > { %v6578_v35 = vpop.f32.mrb[11].mxu1 }
 0x600   : > { %v5606_v44 = vadd.f32 %v6576_v5, %v5566_v7 }
 0x602   : > { %5612 = vst.msk [vmem:[%s358_s14] sm:$0x1] %vm5611_vm5, %v5606_v44 }
 0x603   : > { %5614 = vst.msk [vmem:[%s9036_s19 - $0x1] sm:$0x2] %vm5613_vm6, %v5606_v44 }
 0x604 PF: > { %s6386_s28 = sshll.u32 %s7695_s13, 4  ;;  %s5632_s18 = sshll.u32 %s358_s14, 4  ;;  %s5633_s18 = int_to_ptr.vmem [resolvable:$true] %s5632_s18 }
 0x605   : > { %s8937_s17 = scalar_lea.hbm %s9022_s8, %s6386_s28  ;;  %s5616_s15 = scalar_lea.sflag [#allocation6], %s7834_s26 }
 0x606   : > { %s7581_s24 = scalar_lea.vmem %s5633_s18, 16  ;;  %s7712_s25 = smov [#allocation5]  }
 0x607   : > { %p7582_p2 = scmp.ne.s32.totalorder %s5633_s18, %s7581_s24  ;;  %s7585_s23 = sshll.u32 %s7712_s25, 4  ;;  %s7586_s23 = int_to_ptr.vmem [resolvable:$false] %s7585_s23 }
 0x608   : > { %s7587_s20 = scalar_lea.vmem %s7586_s23, 32  ;;  %p7588_p6 = scmp.lt.s32.totalorder %s5633_s18, %s7586_s23 }
 0x609   : > { %p7583_p4 = pnand %p7582_p2, %p7813_p3  ;;  %p7589_p7 = scmp.lt.s32.totalorder %s7587_s20, %s7581_s24 }
 0x60b   : > { %p7584_p5 = pneg %p7583_p4  ;;  %p7590_p8 = por %p7589_p7, %p7588_p6 }
 0x60d   : > { %p7591_p10 = pnand %p7590_p8, %p7584_p5 }
 0x60f   : > { %7594 = shalt.err (!%p7591_p10)
}
 0x610   : > { %s7595_s14 = scalar_lea.hbm %s8937_s17, 16  ;;  %s7599_s12 = scalar_lea.hbm %s9022_s8, 32 }
 0x611   : > { %p7596_p11 = scmp.ne.s32.totalorder %s8937_s17, %s7595_s14  ;;  %p7600_p0 = scmp.lt.u32.totalorder %s8937_s17, %s9022_s8 }
 0x612   : > { %p7601_p1 = scmp.lt.u32.totalorder %s7599_s12, %s7595_s14  ;;  %p7603_p4 = scmp.lt.u32.totalorder %s7595_s14, %s8937_s17 }
 0x613   : > { %p7597_p12 = pnand %p7596_p11, %p7813_p3 }
 0x614   : > { %p7602_p2 = por %p7601_p1, %p7600_p0 }
 0x615   : > { %p7598_p13 = pneg %p7597_p12 }
 0x616   : > { %p7604_p5 = por %p7603_p4, %p7602_p2 }
 0x618   : > { %p7605_p6 = pnand %p7604_p5, %p7598_p13 }
 0x61a   : > { %7608 = shalt.err (!%p7605_p6)
}
 0x61b   : > { %6684 = dma.vmem_to_hbm [thread:$0]  (%p7813_p3), %s5633_s18, 16, %s8937_s17, %s5616_s15  }
 0x61c   : > { %s8964_s20 = scalar_lea.hbm %s9023_s9, %s6386_s28  ;;  %s9037_s27 = scalar_lea.vmem [#allocation7], %s7834_s26 }
 0x61d   : > { %s5645_s19 = sshll.u32 %s9037_s27, 4  ;;  %s5620_s14 = scalar_lea.sflag [#allocation8], %s7834_s26  ;;  %s5646_s19 = int_to_ptr.vmem [resolvable:$true] %s5645_s19 }
 0x61e   : > { %s7609_s12 = scalar_lea.vmem %s5646_s19, 16  ;;  %s7713_s29 = smov [#allocation7]  }
 0x61f   : > { %p7610_p7 = scmp.ne.s32.totalorder %s5646_s19, %s7609_s12  ;;  %s7613_s25 = sshll.u32 %s7713_s29, 4  ;;  %s7614_s25 = int_to_ptr.vmem [resolvable:$false] %s7613_s25 }
 0x620   : > { %s7615_s0 = scalar_lea.vmem %s7614_s25, 32  ;;  %p7616_p11 = scmp.lt.s32.totalorder %s5646_s19, %s7614_s25 }
 0x621   : > { %p7611_p8 = pnand %p7610_p7, %p7813_p3  ;;  %p7617_p12 = scmp.lt.s32.totalorder %s7615_s0, %s7609_s12 }
 0x623   : > { %p7612_p10 = pneg %p7611_p8  ;;  %p7618_p13 = por %p7617_p12, %p7616_p11 }
 0x625   : > { %p7619_p0 = pnand %p7618_p13, %p7612_p10 }
 0x627   : > { %7622 = shalt.err (!%p7619_p0)
}
 0x628   : > { %s7623_s13 = scalar_lea.hbm %s8964_s20, 16  ;;  %s7627_s17 = scalar_lea.hbm %s9023_s9, 32 }
 0x629   : > { %p7624_p1 = scmp.ne.s32.totalorder %s8964_s20, %s7623_s13  ;;  %p7628_p5 = scmp.lt.u32.totalorder %s8964_s20, %s9023_s9 }
 0x62a   : > { %p7629_p6 = scmp.lt.u32.totalorder %s7627_s17, %s7623_s13  ;;  %p7631_p8 = scmp.lt.u32.totalorder %s7623_s13, %s8964_s20 }
 0x62b   : > { %p7625_p2 = pnand %p7624_p1, %p7813_p3 }
 0x62c   : > { %p7630_p7 = por %p7629_p6, %p7628_p5 }
 0x62d   : > { %p7626_p4 = pneg %p7625_p2 }
 0x62e   : > { %p7632_p10 = por %p7631_p8, %p7630_p7 }
 0x630   : > { %p7633_p11 = pnand %p7632_p10, %p7626_p4 }
 0x632   : > { %7636 = shalt.err (!%p7633_p11)
}
 0x633   : > { %6685 = dma.vmem_to_hbm [thread:$0]  (%p7813_p3), %s5646_s19, 16, %s8964_s20, %s5620_s14  }
 0x634 PF: > { %p6695_p12 = scmp.ge.s32.totalorder %s7707_s16, 2  ;;  %s5657_s0 = sand.u32 1, %s7679_s30  }
 0x635   : > { %s5658_s24 = scalar_lea.sflag [#allocation6], %s5657_s0 }
 0x636   : > { %p6689_p13 = pnand %p6695_p12, %p7823_p9 }
 0x638   : > { %7670 = dma.done.wait (!%p6689_p13), %s5658_s24, 16  }
 0x639   : > { %7672 = vsyncadd (!%p6689_p13), %s5658_s24, 4294967280  ;;  %s5666_s23 = scalar_lea.sflag [#allocation8], %s5657_s0 }
 0x63a   : > { %7674 = dma.done.wait (!%p6689_p13), %s5666_s23, 16  }
 0x63b   : > { %7676 = vsyncadd (!%p6689_p13), %s5666_s23, 4294967280  ;;  %s26_s16 = sadd.s32 1, %s7707_s16   ;;  %s9038_s21 = sld [smem:[#allocation15_spill]] }
 0x63c   : > { %p23_p0 = scmp.ge.s32.totalorder %s26_s16, 12   ;;  %s9039_s12 = sld [smem:[#allocation11_spill]] }
 0x63d   : > { %s9040_s13 = sld [smem:[#allocation12_spill]]  ;;  %s9041_s14 = sld [smem:[#allocation13_spill]] }
 0x63e   : > { %s9042_s15 = sld [smem:[#allocation14_spill]]  ;;  %s9043_s30 = smov %s7683_s10 }
 0x63f   : > { %s9044_s10 = smov %s7687_s11  ;;  %25 = sbr.rel (!%p23_p0) target bundleno = 9 (0x9), region = 125 }
 0x641   : > { %s9045_s11 = smov %s9038_s21 }
 0x646   :  { %5670 = vsyncpa [#allocation6], 1 }
 0x647   :  { %5672 = vsyncpa [#allocation6 + $0x1], 1 }
 0x648   :  { %5673 = vsyncpa [#allocation8], 1 }
 0x649   :  { %5675 = vsyncpa [#allocation8 + $0x1], 1 }

</bundles_post_ra>
